<compile_context>
chip_gen: v5e
topology: v5e:2x2
jax: 0.10.0
libtpu: 0.0.40
codegen_flags: <defaults>
</compile_context>

<pallas_src>
import functools

import jax
import jax.numpy as jnp
from jax.experimental import pallas as pl
from jax.experimental.pallas import tpu as pltpu

D = 128                    # latent_vec_dim (d)
HEAD_NUM = 8               # head_num
HEAD_DIM = D // HEAD_NUM   # 16
DROP_RATE = 0.1  # TODO(synk): dropout treated as identity (eval-mode semantics);
                 #             train-mode stochastic dropout is not reproduced.


def _mhsa_kernel(x_ref, w_ref, b_ref, o_ref, *, num_heads, head_dim,
                 compute_dtype, kv_chunk):
    """x_ref: (Bt, S, D); w_ref: (D, 3D) with the attention scale pre-folded
    into the Q columns; b_ref: (1, 3D) f32 (scale folded into bq);
    o_ref: (Bt, S, D)."""
    bt, s, d = x_ref.shape
    cdt = jnp.dtype(compute_dtype)
    low_precision = cdt != jnp.dtype(jnp.float32)

    # ---- fused QKV projection: one (Bt*S, D) x (D, 3D) MXU matmul ------------
    x2 = x_ref[...].reshape(bt * s, d).astype(cdt)
    qkv = jnp.dot(x2, w_ref[...], preferred_element_type=jnp.float32)
    qkv = qkv + b_ref[...]                                     # (Bt*S, 3D) f32

    # Lane-aligned 128-wide splits only (no narrow slicing).
    q = qkv[:, :d].reshape(bt, s, d).astype(cdt)
    k = qkv[:, d:2 * d].reshape(bt, s, d).astype(cdt)
    v = qkv[:, 2 * d:].reshape(bt, s, d).astype(cdt)

    # Per-head lane masks built from a lane iota (compile-time pattern).
    lane = jax.lax.broadcasted_iota(jnp.int32, (1, 1, d), 2)

    n_chunks = (s + kv_chunk - 1) // kv_chunk
    out_acc = jnp.zeros((bt, s, d), jnp.float32)   # lane-dense output accumulator

    # TODO(synk): if callers pad S, padded key positions are NOT masked in the
    #             softmax; add an additive key mask for padded inputs.
    for h in range(num_heads):
        lo = h * head_dim
        head_mask = ((lane >= lo) & (lane < lo + head_dim)).astype(cdt)  # (1,1,D)
        # Full-width masked operands: the 128-lane contraction is numerically
        # identical to the 16-lane per-head one (other lanes are exact zeros)
        # and takes the same number of MXU passes — but no relayout is needed
        # and the second matmul's output lands in the correct lanes directly.
        qh = q * head_mask
        vh = v * head_mask

        if n_chunks == 1:
            sc = jnp.einsum('bqd,bkd->bqk', qh, k,
                            preferred_element_type=jnp.float32)  # (Bt,S,S) f32
            sc = sc - jnp.max(sc, axis=-1, keepdims=True)
            p = jnp.exp(sc)                                      # softmax in f32
            denom = jnp.sum(p, axis=-1, keepdims=True)
            if low_precision:
                p = p * pl.reciprocal(denom, approx=True)
            else:
                p = p / denom                                    # exact f32 path
            out_acc = out_acc + jnp.einsum(
                'bqk,bkd->bqd', p.astype(cdt), vh,
                preferred_element_type=jnp.float32)              # (Bt,S,D) f32
        else:
            # Flash-style KV streaming: online max / sum; scores never exceed
            # (Bt, S, kv_chunk) per head.
            m_h = jnp.full((bt, s, 1), -jnp.inf, dtype=jnp.float32)
            l_h = jnp.zeros((bt, s, 1), dtype=jnp.float32)
            acc_h = jnp.zeros((bt, s, d), dtype=jnp.float32)
            for start in range(0, s, kv_chunk):
                size = min(kv_chunk, s - start)
                kc = k[:, start:start + size, :]
                vc = vh[:, start:start + size, :]
                sc = jnp.einsum('bqd,bkd->bqk', qh, kc,
                                preferred_element_type=jnp.float32)
                m_new = jnp.maximum(m_h, jnp.max(sc, axis=-1, keepdims=True))
                alpha = jnp.exp(m_h - m_new)
                p = jnp.exp(sc - m_new)
                l_h = alpha * l_h + jnp.sum(p, axis=-1, keepdims=True)
                acc_h = alpha * acc_h + jnp.einsum(
                    'bqk,bkd->bqd', p.astype(cdt), vc,
                    preferred_element_type=jnp.float32)
                m_h = m_new
            if low_precision:
                out_acc = out_acc + acc_h * pl.reciprocal(l_h, approx=True)
            else:
                out_acc = out_acc + acc_h / l_h

    # Single lane-dense store — no masked partial stores.
    o_ref[...] = out_acc.astype(o_ref.dtype)


def _num_tensorcores():
    """Best-effort count of TensorCores visible to one Pallas program."""
    try:
        kind = jax.devices()[0].device_kind.lower()
    except Exception:
        return 1
    if "v7" in kind:
        return 2
    if "v4" in kind or "v5p" in kind:   # megacore generations
        return 2
    return 1


def _vmem_capacity_bytes():
    try:
        cap = getattr(pltpu.get_tpu_info(), "vmem_capacity_bytes", None)
        if cap:
            return int(cap)
    except Exception:
        pass
    return 64 * 1024 * 1024   # conservative: v7x per-core VMEM


def _vmem_bytes_estimate(block_b, s, in_bytes, out_bytes, compute_bytes, kv_chunk):
    """Rough per-grid-step VMEM footprint (tiles + main compiler temps)."""
    bts = block_b * s
    kc = min(s, kv_chunk)
    tile_io = 2 * bts * D * in_bytes + 2 * bts * D * out_bytes   # dbl-buffered x / out
    weights = 2 * (D * 3 * D * in_bytes + 3 * D * 4)             # Wqkv + bias
    qkv_f32 = bts * 3 * D * 4                                    # projection output
    qkv_cdt = 3 * bts * D * compute_bytes                        # q / k / v
    masked = 2 * bts * D * compute_bytes                         # masked q / v (one head)
    scores = 2 * block_b * s * kc * 4                            # scores + probs
    accum = 2 * bts * D * 4 + 2 * bts * 4                        # out_acc + acc_h + m/l
    return tile_io + weights + qkv_f32 + qkv_cdt + masked + scores + accum


def _pick_block_b(batch, s, in_bytes, out_bytes, compute_bytes, kv_chunk,
                  num_cores, vmem_budget):
    """Largest divisor of `batch` that fits the VMEM budget.  Only multi-core
    chips (v7x / megacore) additionally prefer >= num_cores grid steps; on
    single-core chips a 1-step grid with a fat block is best."""
    fits = [bt for bt in range(1, batch + 1) if batch % bt == 0 and
            _vmem_bytes_estimate(bt, s, in_bytes, out_bytes, compute_bytes,
                                 kv_chunk) <= vmem_budget]
    if not fits:
        return 1
    need_steps = num_cores if num_cores > 1 else 1

    def goodness(bt):
        steps_ok = (batch // bt) >= need_steps     # keep every TensorCore busy
        m256 = (bt * s) % 256 == 0                 # fill the 256-deep MXU M dim
        return (steps_ok, m256, bt)

    return max(fits, key=goodness)


def mhsa_forward(x, wq, bq, wk, bk, wv, bv, *, use_bf16=True,
                 out_dtype=jnp.float32, block_b=None, kv_chunk=256):
    """x: (B, S, D).  w*: (D, D) laid out as (in, out) (i.e. torch W.T).  b*: (D,)."""
    B, S, d = x.shape
    assert d == D and S % 8 == 0, (B, S, d)
    assert kv_chunk % 8 == 0, kv_chunk

    inv_scale = 1.0 / jnp.sqrt(jnp.float32(HEAD_DIM))
    # Fuse QKV into one stacked weight; fold the attention scale into Q.
    wqkv = jnp.concatenate([wq * inv_scale, wk, wv], axis=1)             # (D, 3D)
    bqkv = jnp.concatenate([bq * inv_scale, bk, bv]).reshape(1, 3 * D)
    bqkv = bqkv.astype(jnp.float32)                                      # (1, 3D)

    # bf16 MXU operands on every generation (v5e is bf16-native too);
    # accumulation and softmax stay f32 inside the kernel.
    compute_dtype = jnp.bfloat16 if use_bf16 else jnp.float32
    x_in = x.astype(compute_dtype)
    wqkv = wqkv.astype(compute_dtype)

    in_bytes = jnp.dtype(compute_dtype).itemsize
    out_bytes = jnp.dtype(out_dtype).itemsize
    vmem_cap = _vmem_capacity_bytes()
    vmem_budget = vmem_cap // 2
    if block_b is None:
        block_b = _pick_block_b(B, S, in_bytes, out_bytes, in_bytes, kv_chunk,
                                _num_tensorcores(), vmem_budget)
    assert B % block_b == 0, (B, block_b)
    est = _vmem_bytes_estimate(block_b, S, in_bytes, out_bytes, in_bytes, kv_chunk)
    vmem_limit = int(min(vmem_cap * 3 // 4, max(32 * 1024 * 1024, 2 * est)))

    kernel = functools.partial(_mhsa_kernel, num_heads=HEAD_NUM,
                               head_dim=HEAD_DIM, compute_dtype=compute_dtype,
                               kv_chunk=kv_chunk)

    # TODO(synk): for v7x with tiny B (single-step grid) add a second parallel
    #             grid axis over query tiles so both TensorCores get work.
    return pl.pallas_call(
        kernel,
        out_shape=jax.ShapeDtypeStruct((B, S, D), out_dtype),
        grid_spec=pltpu.PrefetchScalarGridSpec(
            num_scalar_prefetch=0,
            grid=(B // block_b,),
            in_specs=[
                pl.BlockSpec((block_b, S, D), lambda b: (b, 0, 0)),   # x
                pl.BlockSpec((D, 3 * D), lambda b: (0, 0)),           # stacked Wqkv
                pl.BlockSpec((1, 3 * D), lambda b: (0, 0)),           # stacked bias
            ],
            out_specs=pl.BlockSpec((block_b, S, D), lambda b: (b, 0, 0)),
        ),
        compiler_params=pltpu.CompilerParams(
            dimension_semantics=("parallel",),
            vmem_limit_bytes=vmem_limit),
    )(x_in, wqkv, bqkv)


def mhsa_reference(x, wq, bq, wk, bk, wv, bv):
    """Plain-JAX reference mirroring the PyTorch forward exactly (f32)."""
    B, S, _ = x.shape
    q = x @ wq + bq
    k = x @ wk + bk
    v = x @ wv + bv
    q = q.reshape(B, S, HEAD_NUM, HEAD_DIM).transpose(0, 2, 1, 3)   # (B,H,S,hd)
    k = k.reshape(B, S, HEAD_NUM, HEAD_DIM).transpose(0, 2, 3, 1)   # (B,H,hd,S)
    v = v.reshape(B, S, HEAD_NUM, HEAD_DIM).transpose(0, 2, 1, 3)   # (B,H,S,hd)
    scale = jnp.sqrt(jnp.float32(HEAD_DIM))
    attn = jax.nn.softmax(q @ k / scale, axis=-1)
    out = attn @ v                                                  # (B,H,S,hd)
    return out.transpose(0, 2, 1, 3).reshape(B, S, D)


if __name__ == "__main__":
    key = jax.random.PRNGKey(0)
    kx, kwq, kbq, kwk, kbk, kwv, kbv = jax.random.split(key, 7)

    B, S = 4, 16
    x = jax.random.normal(kx, (B, S, D), dtype=jnp.float32)

    # Deterministic synthetic parameters (nn.Linear(d, d) x3).
    # torch stores W as (out, in); build (out, in) then transpose to (in, out).
    init = 1.0 / jnp.sqrt(jnp.float32(D))
    wq = jax.random.uniform(kwq, (D, D), minval=-init, maxval=init).T
    wk = jax.random.uniform(kwk, (D, D), minval=-init, maxval=init).T
    wv = jax.random.uniform(kwv, (D, D), minval=-init, maxval=init).T
    bq = jax.random.uniform(kbq, (D,), minval=-init, maxval=init)
    bk = jax.random.uniform(kbk, (D,), minval=-init, maxval=init)
    bv = jax.random.uniform(kbv, (D,), minval=-init, maxval=init)

    ref = mhsa_reference(x, wq, bq, wk, bk, wv, bv)

    # f32 operand path (single-pass softmax, exact divide) -- tight check.
    out_f32 = jax.block_until_ready(
        mhsa_forward(x, wq, bq, wk, bk, wv, bv, use_bf16=False))
    assert out_f32.shape == (B, S, D), out_f32.shape
    err_f32 = float(jnp.max(jnp.abs(out_f32 - ref)))
    assert jnp.allclose(out_f32, ref, atol=5e-3, rtol=5e-3), err_f32

    # f32 operand path with the flash-style KV chunk loop forced on (kv_chunk=8).
    out_flash = jax.block_until_ready(
        mhsa_forward(x, wq, bq, wk, bk, wv, bv, use_bf16=False, kv_chunk=8))
    err_flash = float(jnp.max(jnp.abs(out_flash - ref)))
    assert jnp.allclose(out_flash, ref, atol=5e-3, rtol=5e-3), err_flash

    # Default path: bf16 MXU operands everywhere, f32 accumulation + softmax.
    out_bf16 = jax.block_until_ready(mhsa_forward(x, wq, bq, wk, bk, wv, bv))
    err_bf16 = float(jnp.max(jnp.abs(out_bf16 - ref)))
    assert jnp.allclose(out_bf16, ref, atol=5e-2, rtol=5e-2), err_bf16

    # bf16 output variant (halves output HBM writeback when consumers allow).
    out_bf16o = jax.block_until_ready(
        mhsa_forward(x, wq, bq, wk, bk, wv, bv, out_dtype=jnp.bfloat16))
    out_bf16o = out_bf16o.astype(jnp.float32)
    err_bf16o = float(jnp.max(jnp.abs(out_bf16o - ref)))
    assert jnp.allclose(out_bf16o, ref, atol=5e-2, rtol=5e-2), err_bf16o

    print("KERNEL_OK")
</pallas_src>

<mosaic_0001>
module attributes {stable_mosaic.version = 11 : i64} {
  func.func @_mhsa_kernel(%arg0: i32, %arg1: memref<4x16x128xf32, #tpu.memory_space<vmem>>, %arg2: memref<128x384xf32, #tpu.memory_space<vmem>>, %arg3: memref<1x384xf32, #tpu.memory_space<vmem>>, %arg4: memref<4x16x128xf32, #tpu.memory_space<vmem>>) attributes {dimension_semantics = [#tpu.dimension_semantics<parallel>], iteration_bounds = array<i64: 1>, scalar_prefetch = 0 : i64, scratch_operands = 0 : i64, tpu.core_type = #tpu.core_type<tc>, window_params = [{transform_indices = @transform_0, window_bounds = array<i64: 4, 16, 128>}, {pipeline_mode = #tpu.pipeline_mode<synchronous>, transform_indices = @transform_1, window_bounds = array<i64: 128, 384>}, {pipeline_mode = #tpu.pipeline_mode<synchronous>, transform_indices = @transform_2, window_bounds = array<i64: 1, 384>}, {transform_indices = @transform_3, window_bounds = array<i64: 4, 16, 128>}]} {
    %c0 = arith.constant 0 : index
    %c0_0 = arith.constant 0 : index
    %c0_1 = arith.constant 0 : index
    %0 = vector.load %arg1[%c0, %c0_0, %c0_1] : memref<4x16x128xf32, #tpu.memory_space<vmem>>, vector<4x16x128xf32>
    %1 = vector.shape_cast %0 : vector<4x16x128xf32> to vector<64x128xf32>
    %c0_2 = arith.constant 0 : index
    %c0_3 = arith.constant 0 : index
    %2 = vector.load %arg2[%c0_2, %c0_3] : memref<128x384xf32, #tpu.memory_space<vmem>>, vector<128x384xf32>
    %cst = arith.constant dense<0.000000e+00> : vector<64x384xf32>
    %3 = tpu.matmul %1, %2, %cst {dimension_numbers = #tpu.dot_dimension_numbers<[1], [0], [0], [1], [0, 0, 1, 1], [], []>} : vector<64x128xf32>, vector<128x384xf32>, vector<64x384xf32> -> vector<64x384xf32>
    %c0_4 = arith.constant 0 : index
    %c0_5 = arith.constant 0 : index
    %4 = vector.load %arg3[%c0_4, %c0_5] : memref<1x384xf32, #tpu.memory_space<vmem>>, vector<1x384xf32>
    %5 = vector.broadcast %4 : vector<1x384xf32> to vector<64x384xf32>
    %6 = arith.addf %3, %5 : vector<64x384xf32>
    %7 = vector.extract_strided_slice %6 {offsets = [0, 0], sizes = [64, 128], strides = [1, 1]} : vector<64x384xf32> to vector<64x128xf32>
    %8 = vector.shape_cast %7 : vector<64x128xf32> to vector<4x16x128xf32>
    %9 = vector.extract_strided_slice %6 {offsets = [0, 128], sizes = [64, 128], strides = [1, 1]} : vector<64x384xf32> to vector<64x128xf32>
    %10 = vector.shape_cast %9 : vector<64x128xf32> to vector<4x16x128xf32>
    %11 = vector.extract_strided_slice %6 {offsets = [0, 256], sizes = [64, 128], strides = [1, 1]} : vector<64x384xf32> to vector<64x128xf32>
    %12 = vector.shape_cast %11 : vector<64x128xf32> to vector<4x16x128xf32>
    %13 = tpu.iota {dimensions = array<i32: 2>} : vector<1x1x128xi32>
    %cst_6 = arith.constant 0.000000e+00 : f32
    %14 = vector.broadcast %cst_6 : f32 to vector<4x16x128xf32>
    %c0_i32 = arith.constant 0 : i32
    %15 = vector.broadcast %c0_i32 : i32 to vector<1x1x128xi32>
    %16 = arith.cmpi sge, %13, %15 : vector<1x1x128xi32>
    %c16_i32 = arith.constant 16 : i32
    %17 = vector.broadcast %c16_i32 : i32 to vector<1x1x128xi32>
    %18 = arith.cmpi slt, %13, %17 : vector<1x1x128xi32>
    %19 = arith.andi %16, %18 : vector<1x1x128xi1>
    %20 = arith.extui %19 : vector<1x1x128xi1> to vector<1x1x128xi32>
    %21 = arith.sitofp %20 : vector<1x1x128xi32> to vector<1x1x128xf32>
    %22 = vector.broadcast %21 : vector<1x1x128xf32> to vector<4x16x128xf32>
    %23 = arith.mulf %8, %22 : vector<4x16x128xf32>
    %24 = vector.broadcast %21 : vector<1x1x128xf32> to vector<4x16x128xf32>
    %25 = arith.mulf %12, %24 : vector<4x16x128xf32>
    "tpu.trace_start"() <{level = 10 : i32, message = "bqd,bkd->bqk"}> : () -> ()
    %cst_7 = arith.constant dense<0.000000e+00> : vector<4x16x16xf32>
    %26 = tpu.matmul %23, %10, %cst_7 {dimension_numbers = #tpu.dot_dimension_numbers<[2], [2], [1], [1], [0, 0, 0, 1, 1, 1], [0], [0]>} : vector<4x16x128xf32>, vector<4x16x128xf32>, vector<4x16x16xf32> -> vector<4x16x16xf32>
    "tpu.trace_stop"() : () -> ()
    %cst_8 = arith.constant dense<0xFF800000> : vector<4x16xf32>
    %27 = vector.multi_reduction <maximumf>, %26, %cst_8 [2] : vector<4x16x16xf32> to vector<4x16xf32>
    %28 = vector.shape_cast %27 : vector<4x16xf32> to vector<4x16x1xf32>
    %29 = vector.broadcast %28 : vector<4x16x1xf32> to vector<4x16x16xf32>
    %30 = arith.subf %26, %29 : vector<4x16x16xf32>
    %31 = math.exp %30 : vector<4x16x16xf32>
    %cst_9 = arith.constant dense<0.000000e+00> : vector<4x16xf32>
    %32 = vector.multi_reduction <add>, %31, %cst_9 [2] : vector<4x16x16xf32> to vector<4x16xf32>
    %33 = vector.shape_cast %32 : vector<4x16xf32> to vector<4x16x1xf32>
    %34 = vector.broadcast %33 : vector<4x16x1xf32> to vector<4x16x16xf32>
    %35 = arith.divf %31, %34 : vector<4x16x16xf32>
    "tpu.trace_start"() <{level = 10 : i32, message = "bqk,bkd->bqd"}> : () -> ()
    %cst_10 = arith.constant dense<0.000000e+00> : vector<4x16x128xf32>
    %36 = tpu.matmul %35, %25, %cst_10 {dimension_numbers = #tpu.dot_dimension_numbers<[2], [1], [1], [2], [0, 0, 0, 1, 1, 2], [0], [0]>} : vector<4x16x16xf32>, vector<4x16x128xf32>, vector<4x16x128xf32> -> vector<4x16x128xf32>
    "tpu.trace_stop"() : () -> ()
    %37 = arith.addf %14, %36 : vector<4x16x128xf32>
    %c16_i32_11 = arith.constant 16 : i32
    %38 = vector.broadcast %c16_i32_11 : i32 to vector<1x1x128xi32>
    %39 = arith.cmpi sge, %13, %38 : vector<1x1x128xi32>
    %c32_i32 = arith.constant 32 : i32
    %40 = vector.broadcast %c32_i32 : i32 to vector<1x1x128xi32>
    %41 = arith.cmpi slt, %13, %40 : vector<1x1x128xi32>
    %42 = arith.andi %39, %41 : vector<1x1x128xi1>
    %43 = arith.extui %42 : vector<1x1x128xi1> to vector<1x1x128xi32>
    %44 = arith.sitofp %43 : vector<1x1x128xi32> to vector<1x1x128xf32>
    %45 = vector.broadcast %44 : vector<1x1x128xf32> to vector<4x16x128xf32>
    %46 = arith.mulf %8, %45 : vector<4x16x128xf32>
    %47 = vector.broadcast %44 : vector<1x1x128xf32> to vector<4x16x128xf32>
    %48 = arith.mulf %12, %47 : vector<4x16x128xf32>
    "tpu.trace_start"() <{level = 10 : i32, message = "bqd,bkd->bqk"}> : () -> ()
    %cst_12 = arith.constant dense<0.000000e+00> : vector<4x16x16xf32>
    %49 = tpu.matmul %46, %10, %cst_12 {dimension_numbers = #tpu.dot_dimension_numbers<[2], [2], [1], [1], [0, 0, 0, 1, 1, 1], [0], [0]>} : vector<4x16x128xf32>, vector<4x16x128xf32>, vector<4x16x16xf32> -> vector<4x16x16xf32>
    "tpu.trace_stop"() : () -> ()
    %cst_13 = arith.constant dense<0xFF800000> : vector<4x16xf32>
    %50 = vector.multi_reduction <maximumf>, %49, %cst_13 [2] : vector<4x16x16xf32> to vector<4x16xf32>
    %51 = vector.shape_cast %50 : vector<4x16xf32> to vector<4x16x1xf32>
    %52 = vector.broadcast %51 : vector<4x16x1xf32> to vector<4x16x16xf32>
    %53 = arith.subf %49, %52 : vector<4x16x16xf32>
    %54 = math.exp %53 : vector<4x16x16xf32>
    %cst_14 = arith.constant dense<0.000000e+00> : vector<4x16xf32>
    %55 = vector.multi_reduction <add>, %54, %cst_14 [2] : vector<4x16x16xf32> to vector<4x16xf32>
    %56 = vector.shape_cast %55 : vector<4x16xf32> to vector<4x16x1xf32>
    %57 = vector.broadcast %56 : vector<4x16x1xf32> to vector<4x16x16xf32>
    %58 = arith.divf %54, %57 : vector<4x16x16xf32>
    "tpu.trace_start"() <{level = 10 : i32, message = "bqk,bkd->bqd"}> : () -> ()
    %cst_15 = arith.constant dense<0.000000e+00> : vector<4x16x128xf32>
    %59 = tpu.matmul %58, %48, %cst_15 {dimension_numbers = #tpu.dot_dimension_numbers<[2], [1], [1], [2], [0, 0, 0, 1, 1, 2], [0], [0]>} : vector<4x16x16xf32>, vector<4x16x128xf32>, vector<4x16x128xf32> -> vector<4x16x128xf32>
    "tpu.trace_stop"() : () -> ()
    %60 = arith.addf %37, %59 : vector<4x16x128xf32>
    %c32_i32_16 = arith.constant 32 : i32
    %61 = vector.broadcast %c32_i32_16 : i32 to vector<1x1x128xi32>
    %62 = arith.cmpi sge, %13, %61 : vector<1x1x128xi32>
    %c48_i32 = arith.constant 48 : i32
    %63 = vector.broadcast %c48_i32 : i32 to vector<1x1x128xi32>
    %64 = arith.cmpi slt, %13, %63 : vector<1x1x128xi32>
    %65 = arith.andi %62, %64 : vector<1x1x128xi1>
    %66 = arith.extui %65 : vector<1x1x128xi1> to vector<1x1x128xi32>
    %67 = arith.sitofp %66 : vector<1x1x128xi32> to vector<1x1x128xf32>
    %68 = vector.broadcast %67 : vector<1x1x128xf32> to vector<4x16x128xf32>
    %69 = arith.mulf %8, %68 : vector<4x16x128xf32>
    %70 = vector.broadcast %67 : vector<1x1x128xf32> to vector<4x16x128xf32>
    %71 = arith.mulf %12, %70 : vector<4x16x128xf32>
    "tpu.trace_start"() <{level = 10 : i32, message = "bqd,bkd->bqk"}> : () -> ()
    %cst_17 = arith.constant dense<0.000000e+00> : vector<4x16x16xf32>
    %72 = tpu.matmul %69, %10, %cst_17 {dimension_numbers = #tpu.dot_dimension_numbers<[2], [2], [1], [1], [0, 0, 0, 1, 1, 1], [0], [0]>} : vector<4x16x128xf32>, vector<4x16x128xf32>, vector<4x16x16xf32> -> vector<4x16x16xf32>
    "tpu.trace_stop"() : () -> ()
    %cst_18 = arith.constant dense<0xFF800000> : vector<4x16xf32>
    %73 = vector.multi_reduction <maximumf>, %72, %cst_18 [2] : vector<4x16x16xf32> to vector<4x16xf32>
    %74 = vector.shape_cast %73 : vector<4x16xf32> to vector<4x16x1xf32>
    %75 = vector.broadcast %74 : vector<4x16x1xf32> to vector<4x16x16xf32>
    %76 = arith.subf %72, %75 : vector<4x16x16xf32>
    %77 = math.exp %76 : vector<4x16x16xf32>
    %cst_19 = arith.constant dense<0.000000e+00> : vector<4x16xf32>
    %78 = vector.multi_reduction <add>, %77, %cst_19 [2] : vector<4x16x16xf32> to vector<4x16xf32>
    %79 = vector.shape_cast %78 : vector<4x16xf32> to vector<4x16x1xf32>
    %80 = vector.broadcast %79 : vector<4x16x1xf32> to vector<4x16x16xf32>
    %81 = arith.divf %77, %80 : vector<4x16x16xf32>
    "tpu.trace_start"() <{level = 10 : i32, message = "bqk,bkd->bqd"}> : () -> ()
    %cst_20 = arith.constant dense<0.000000e+00> : vector<4x16x128xf32>
    %82 = tpu.matmul %81, %71, %cst_20 {dimension_numbers = #tpu.dot_dimension_numbers<[2], [1], [1], [2], [0, 0, 0, 1, 1, 2], [0], [0]>} : vector<4x16x16xf32>, vector<4x16x128xf32>, vector<4x16x128xf32> -> vector<4x16x128xf32>
    "tpu.trace_stop"() : () -> ()
    %83 = arith.addf %60, %82 : vector<4x16x128xf32>
    %c48_i32_21 = arith.constant 48 : i32
    %84 = vector.broadcast %c48_i32_21 : i32 to vector<1x1x128xi32>
    %85 = arith.cmpi sge, %13, %84 : vector<1x1x128xi32>
    %c64_i32 = arith.constant 64 : i32
    %86 = vector.broadcast %c64_i32 : i32 to vector<1x1x128xi32>
    %87 = arith.cmpi slt, %13, %86 : vector<1x1x128xi32>
    %88 = arith.andi %85, %87 : vector<1x1x128xi1>
    %89 = arith.extui %88 : vector<1x1x128xi1> to vector<1x1x128xi32>
    %90 = arith.sitofp %89 : vector<1x1x128xi32> to vector<1x1x128xf32>
    %91 = vector.broadcast %90 : vector<1x1x128xf32> to vector<4x16x128xf32>
    %92 = arith.mulf %8, %91 : vector<4x16x128xf32>
    %93 = vector.broadcast %90 : vector<1x1x128xf32> to vector<4x16x128xf32>
    %94 = arith.mulf %12, %93 : vector<4x16x128xf32>
    "tpu.trace_start"() <{level = 10 : i32, message = "bqd,bkd->bqk"}> : () -> ()
    %cst_22 = arith.constant dense<0.000000e+00> : vector<4x16x16xf32>
    %95 = tpu.matmul %92, %10, %cst_22 {dimension_numbers = #tpu.dot_dimension_numbers<[2], [2], [1], [1], [0, 0, 0, 1, 1, 1], [0], [0]>} : vector<4x16x128xf32>, vector<4x16x128xf32>, vector<4x16x16xf32> -> vector<4x16x16xf32>
    "tpu.trace_stop"() : () -> ()
    %cst_23 = arith.constant dense<0xFF800000> : vector<4x16xf32>
    %96 = vector.multi_reduction <maximumf>, %95, %cst_23 [2] : vector<4x16x16xf32> to vector<4x16xf32>
    %97 = vector.shape_cast %96 : vector<4x16xf32> to vector<4x16x1xf32>
    %98 = vector.broadcast %97 : vector<4x16x1xf32> to vector<4x16x16xf32>
    %99 = arith.subf %95, %98 : vector<4x16x16xf32>
    %100 = math.exp %99 : vector<4x16x16xf32>
    %cst_24 = arith.constant dense<0.000000e+00> : vector<4x16xf32>
    %101 = vector.multi_reduction <add>, %100, %cst_24 [2] : vector<4x16x16xf32> to vector<4x16xf32>
    %102 = vector.shape_cast %101 : vector<4x16xf32> to vector<4x16x1xf32>
    %103 = vector.broadcast %102 : vector<4x16x1xf32> to vector<4x16x16xf32>
    %104 = arith.divf %100, %103 : vector<4x16x16xf32>
    "tpu.trace_start"() <{level = 10 : i32, message = "bqk,bkd->bqd"}> : () -> ()
    %cst_25 = arith.constant dense<0.000000e+00> : vector<4x16x128xf32>
    %105 = tpu.matmul %104, %94, %cst_25 {dimension_numbers = #tpu.dot_dimension_numbers<[2], [1], [1], [2], [0, 0, 0, 1, 1, 2], [0], [0]>} : vector<4x16x16xf32>, vector<4x16x128xf32>, vector<4x16x128xf32> -> vector<4x16x128xf32>
    "tpu.trace_stop"() : () -> ()
    %106 = arith.addf %83, %105 : vector<4x16x128xf32>
    %c64_i32_26 = arith.constant 64 : i32
    %107 = vector.broadcast %c64_i32_26 : i32 to vector<1x1x128xi32>
    %108 = arith.cmpi sge, %13, %107 : vector<1x1x128xi32>
    %c80_i32 = arith.constant 80 : i32
    %109 = vector.broadcast %c80_i32 : i32 to vector<1x1x128xi32>
    %110 = arith.cmpi slt, %13, %109 : vector<1x1x128xi32>
    %111 = arith.andi %108, %110 : vector<1x1x128xi1>
    %112 = arith.extui %111 : vector<1x1x128xi1> to vector<1x1x128xi32>
    %113 = arith.sitofp %112 : vector<1x1x128xi32> to vector<1x1x128xf32>
    %114 = vector.broadcast %113 : vector<1x1x128xf32> to vector<4x16x128xf32>
    %115 = arith.mulf %8, %114 : vector<4x16x128xf32>
    %116 = vector.broadcast %113 : vector<1x1x128xf32> to vector<4x16x128xf32>
    %117 = arith.mulf %12, %116 : vector<4x16x128xf32>
    "tpu.trace_start"() <{level = 10 : i32, message = "bqd,bkd->bqk"}> : () -> ()
    %cst_27 = arith.constant dense<0.000000e+00> : vector<4x16x16xf32>
    %118 = tpu.matmul %115, %10, %cst_27 {dimension_numbers = #tpu.dot_dimension_numbers<[2], [2], [1], [1], [0, 0, 0, 1, 1, 1], [0], [0]>} : vector<4x16x128xf32>, vector<4x16x128xf32>, vector<4x16x16xf32> -> vector<4x16x16xf32>
    "tpu.trace_stop"() : () -> ()
    %cst_28 = arith.constant dense<0xFF800000> : vector<4x16xf32>
    %119 = vector.multi_reduction <maximumf>, %118, %cst_28 [2] : vector<4x16x16xf32> to vector<4x16xf32>
    %120 = vector.shape_cast %119 : vector<4x16xf32> to vector<4x16x1xf32>
    %121 = vector.broadcast %120 : vector<4x16x1xf32> to vector<4x16x16xf32>
    %122 = arith.subf %118, %121 : vector<4x16x16xf32>
    %123 = math.exp %122 : vector<4x16x16xf32>
    %cst_29 = arith.constant dense<0.000000e+00> : vector<4x16xf32>
    %124 = vector.multi_reduction <add>, %123, %cst_29 [2] : vector<4x16x16xf32> to vector<4x16xf32>
    %125 = vector.shape_cast %124 : vector<4x16xf32> to vector<4x16x1xf32>
    %126 = vector.broadcast %125 : vector<4x16x1xf32> to vector<4x16x16xf32>
    %127 = arith.divf %123, %126 : vector<4x16x16xf32>
    "tpu.trace_start"() <{level = 10 : i32, message = "bqk,bkd->bqd"}> : () -> ()
    %cst_30 = arith.constant dense<0.000000e+00> : vector<4x16x128xf32>
    %128 = tpu.matmul %127, %117, %cst_30 {dimension_numbers = #tpu.dot_dimension_numbers<[2], [1], [1], [2], [0, 0, 0, 1, 1, 2], [0], [0]>} : vector<4x16x16xf32>, vector<4x16x128xf32>, vector<4x16x128xf32> -> vector<4x16x128xf32>
    "tpu.trace_stop"() : () -> ()
    %129 = arith.addf %106, %128 : vector<4x16x128xf32>
    %c80_i32_31 = arith.constant 80 : i32
    %130 = vector.broadcast %c80_i32_31 : i32 to vector<1x1x128xi32>
    %131 = arith.cmpi sge, %13, %130 : vector<1x1x128xi32>
    %c96_i32 = arith.constant 96 : i32
    %132 = vector.broadcast %c96_i32 : i32 to vector<1x1x128xi32>
    %133 = arith.cmpi slt, %13, %132 : vector<1x1x128xi32>
    %134 = arith.andi %131, %133 : vector<1x1x128xi1>
    %135 = arith.extui %134 : vector<1x1x128xi1> to vector<1x1x128xi32>
    %136 = arith.sitofp %135 : vector<1x1x128xi32> to vector<1x1x128xf32>
    %137 = vector.broadcast %136 : vector<1x1x128xf32> to vector<4x16x128xf32>
    %138 = arith.mulf %8, %137 : vector<4x16x128xf32>
    %139 = vector.broadcast %136 : vector<1x1x128xf32> to vector<4x16x128xf32>
    %140 = arith.mulf %12, %139 : vector<4x16x128xf32>
    "tpu.trace_start"() <{level = 10 : i32, message = "bqd,bkd->bqk"}> : () -> ()
    %cst_32 = arith.constant dense<0.000000e+00> : vector<4x16x16xf32>
    %141 = tpu.matmul %138, %10, %cst_32 {dimension_numbers = #tpu.dot_dimension_numbers<[2], [2], [1], [1], [0, 0, 0, 1, 1, 1], [0], [0]>} : vector<4x16x128xf32>, vector<4x16x128xf32>, vector<4x16x16xf32> -> vector<4x16x16xf32>
    "tpu.trace_stop"() : () -> ()
    %cst_33 = arith.constant dense<0xFF800000> : vector<4x16xf32>
    %142 = vector.multi_reduction <maximumf>, %141, %cst_33 [2] : vector<4x16x16xf32> to vector<4x16xf32>
    %143 = vector.shape_cast %142 : vector<4x16xf32> to vector<4x16x1xf32>
    %144 = vector.broadcast %143 : vector<4x16x1xf32> to vector<4x16x16xf32>
    %145 = arith.subf %141, %144 : vector<4x16x16xf32>
    %146 = math.exp %145 : vector<4x16x16xf32>
    %cst_34 = arith.constant dense<0.000000e+00> : vector<4x16xf32>
    %147 = vector.multi_reduction <add>, %146, %cst_34 [2] : vector<4x16x16xf32> to vector<4x16xf32>
    %148 = vector.shape_cast %147 : vector<4x16xf32> to vector<4x16x1xf32>
    %149 = vector.broadcast %148 : vector<4x16x1xf32> to vector<4x16x16xf32>
    %150 = arith.divf %146, %149 : vector<4x16x16xf32>
    "tpu.trace_start"() <{level = 10 : i32, message = "bqk,bkd->bqd"}> : () -> ()
    %cst_35 = arith.constant dense<0.000000e+00> : vector<4x16x128xf32>
    %151 = tpu.matmul %150, %140, %cst_35 {dimension_numbers = #tpu.dot_dimension_numbers<[2], [1], [1], [2], [0, 0, 0, 1, 1, 2], [0], [0]>} : vector<4x16x16xf32>, vector<4x16x128xf32>, vector<4x16x128xf32> -> vector<4x16x128xf32>
    "tpu.trace_stop"() : () -> ()
    %152 = arith.addf %129, %151 : vector<4x16x128xf32>
    %c96_i32_36 = arith.constant 96 : i32
    %153 = vector.broadcast %c96_i32_36 : i32 to vector<1x1x128xi32>
    %154 = arith.cmpi sge, %13, %153 : vector<1x1x128xi32>
    %c112_i32 = arith.constant 112 : i32
    %155 = vector.broadcast %c112_i32 : i32 to vector<1x1x128xi32>
    %156 = arith.cmpi slt, %13, %155 : vector<1x1x128xi32>
    %157 = arith.andi %154, %156 : vector<1x1x128xi1>
    %158 = arith.extui %157 : vector<1x1x128xi1> to vector<1x1x128xi32>
    %159 = arith.sitofp %158 : vector<1x1x128xi32> to vector<1x1x128xf32>
    %160 = vector.broadcast %159 : vector<1x1x128xf32> to vector<4x16x128xf32>
    %161 = arith.mulf %8, %160 : vector<4x16x128xf32>
    %162 = vector.broadcast %159 : vector<1x1x128xf32> to vector<4x16x128xf32>
    %163 = arith.mulf %12, %162 : vector<4x16x128xf32>
    "tpu.trace_start"() <{level = 10 : i32, message = "bqd,bkd->bqk"}> : () -> ()
    %cst_37 = arith.constant dense<0.000000e+00> : vector<4x16x16xf32>
    %164 = tpu.matmul %161, %10, %cst_37 {dimension_numbers = #tpu.dot_dimension_numbers<[2], [2], [1], [1], [0, 0, 0, 1, 1, 1], [0], [0]>} : vector<4x16x128xf32>, vector<4x16x128xf32>, vector<4x16x16xf32> -> vector<4x16x16xf32>
    "tpu.trace_stop"() : () -> ()
    %cst_38 = arith.constant dense<0xFF800000> : vector<4x16xf32>
    %165 = vector.multi_reduction <maximumf>, %164, %cst_38 [2] : vector<4x16x16xf32> to vector<4x16xf32>
    %166 = vector.shape_cast %165 : vector<4x16xf32> to vector<4x16x1xf32>
    %167 = vector.broadcast %166 : vector<4x16x1xf32> to vector<4x16x16xf32>
    %168 = arith.subf %164, %167 : vector<4x16x16xf32>
    %169 = math.exp %168 : vector<4x16x16xf32>
    %cst_39 = arith.constant dense<0.000000e+00> : vector<4x16xf32>
    %170 = vector.multi_reduction <add>, %169, %cst_39 [2] : vector<4x16x16xf32> to vector<4x16xf32>
    %171 = vector.shape_cast %170 : vector<4x16xf32> to vector<4x16x1xf32>
    %172 = vector.broadcast %171 : vector<4x16x1xf32> to vector<4x16x16xf32>
    %173 = arith.divf %169, %172 : vector<4x16x16xf32>
    "tpu.trace_start"() <{level = 10 : i32, message = "bqk,bkd->bqd"}> : () -> ()
    %cst_40 = arith.constant dense<0.000000e+00> : vector<4x16x128xf32>
    %174 = tpu.matmul %173, %163, %cst_40 {dimension_numbers = #tpu.dot_dimension_numbers<[2], [1], [1], [2], [0, 0, 0, 1, 1, 2], [0], [0]>} : vector<4x16x16xf32>, vector<4x16x128xf32>, vector<4x16x128xf32> -> vector<4x16x128xf32>
    "tpu.trace_stop"() : () -> ()
    %175 = arith.addf %152, %174 : vector<4x16x128xf32>
    %c112_i32_41 = arith.constant 112 : i32
    %176 = vector.broadcast %c112_i32_41 : i32 to vector<1x1x128xi32>
    %177 = arith.cmpi sge, %13, %176 : vector<1x1x128xi32>
    %c128_i32 = arith.constant 128 : i32
    %178 = vector.broadcast %c128_i32 : i32 to vector<1x1x128xi32>
    %179 = arith.cmpi slt, %13, %178 : vector<1x1x128xi32>
    %180 = arith.andi %177, %179 : vector<1x1x128xi1>
    %181 = arith.extui %180 : vector<1x1x128xi1> to vector<1x1x128xi32>
    %182 = arith.sitofp %181 : vector<1x1x128xi32> to vector<1x1x128xf32>
    %183 = vector.broadcast %182 : vector<1x1x128xf32> to vector<4x16x128xf32>
    %184 = arith.mulf %8, %183 : vector<4x16x128xf32>
    %185 = vector.broadcast %182 : vector<1x1x128xf32> to vector<4x16x128xf32>
    %186 = arith.mulf %12, %185 : vector<4x16x128xf32>
    "tpu.trace_start"() <{level = 10 : i32, message = "bqd,bkd->bqk"}> : () -> ()
    %cst_42 = arith.constant dense<0.000000e+00> : vector<4x16x16xf32>
    %187 = tpu.matmul %184, %10, %cst_42 {dimension_numbers = #tpu.dot_dimension_numbers<[2], [2], [1], [1], [0, 0, 0, 1, 1, 1], [0], [0]>} : vector<4x16x128xf32>, vector<4x16x128xf32>, vector<4x16x16xf32> -> vector<4x16x16xf32>
    "tpu.trace_stop"() : () -> ()
    %cst_43 = arith.constant dense<0xFF800000> : vector<4x16xf32>
    %188 = vector.multi_reduction <maximumf>, %187, %cst_43 [2] : vector<4x16x16xf32> to vector<4x16xf32>
    %189 = vector.shape_cast %188 : vector<4x16xf32> to vector<4x16x1xf32>
    %190 = vector.broadcast %189 : vector<4x16x1xf32> to vector<4x16x16xf32>
    %191 = arith.subf %187, %190 : vector<4x16x16xf32>
    %192 = math.exp %191 : vector<4x16x16xf32>
    %cst_44 = arith.constant dense<0.000000e+00> : vector<4x16xf32>
    %193 = vector.multi_reduction <add>, %192, %cst_44 [2] : vector<4x16x16xf32> to vector<4x16xf32>
    %194 = vector.shape_cast %193 : vector<4x16xf32> to vector<4x16x1xf32>
    %195 = vector.broadcast %194 : vector<4x16x1xf32> to vector<4x16x16xf32>
    %196 = arith.divf %192, %195 : vector<4x16x16xf32>
    "tpu.trace_start"() <{level = 10 : i32, message = "bqk,bkd->bqd"}> : () -> ()
    %cst_45 = arith.constant dense<0.000000e+00> : vector<4x16x128xf32>
    %197 = tpu.matmul %196, %186, %cst_45 {dimension_numbers = #tpu.dot_dimension_numbers<[2], [1], [1], [2], [0, 0, 0, 1, 1, 2], [0], [0]>} : vector<4x16x16xf32>, vector<4x16x128xf32>, vector<4x16x128xf32> -> vector<4x16x128xf32>
    "tpu.trace_stop"() : () -> ()
    %198 = arith.addf %175, %197 : vector<4x16x128xf32>
    %c0_46 = arith.constant 0 : index
    %c0_47 = arith.constant 0 : index
    %c0_48 = arith.constant 0 : index
    %199 = vector.load %arg4[%c0_46, %c0_47, %c0_48] : memref<4x16x128xf32, #tpu.memory_space<vmem>>, vector<4x16x128xf32>
    tpu.vector_store %arg4[%c0_46, %c0_47, %c0_48], %198 {strides = array<i32>} : memref<4x16x128xf32, #tpu.memory_space<vmem>>, vector<4x16x128xf32>,
    return
  }
  func.func @transform_0(%arg0: i32) -> (i32, i32, i32) {
    %c0_i32 = arith.constant 0 : i32
    %c0_i32_0 = arith.constant 0 : i32
    %c0_i32_1 = arith.constant 0 : i32
    return %arg0, %c0_i32, %c0_i32_0 : i32, i32, i32
  }
  func.func @transform_1(%arg0: i32) -> (i32, i32) {
    %c0_i32 = arith.constant 0 : i32
    %c0_i32_0 = arith.constant 0 : i32
    %c0_i32_1 = arith.constant 0 : i32
    return %c0_i32, %c0_i32_0 : i32, i32
  }
  func.func @transform_2(%arg0: i32) -> (i32, i32) {
    %c0_i32 = arith.constant 0 : i32
    %c0_i32_0 = arith.constant 0 : i32
    %c0_i32_1 = arith.constant 0 : i32
    return %c0_i32, %c0_i32_0 : i32, i32
  }
  func.func @transform_3(%arg0: i32) -> (i32, i32, i32) {
    %c0_i32 = arith.constant 0 : i32
    %c0_i32_0 = arith.constant 0 : i32
    %c0_i32_1 = arith.constant 0 : i32
    return %arg0, %c0_i32, %c0_i32_0 : i32, i32, i32
  }
}

</mosaic_0001>

<bundles_post_ra>
// kernel: tpu_custom_call.1
= control target key start
LH: loop header
LB: loop body
LE: loop exit
PB: predicated region body
PF: predicated region fallthrough
CT: control target
= control target key end

     0   :  { %8 = vsyncpa [#allocation3], 0  ;;  %s5549_s0 = inlined_call_operand.hbm [shape: f32[4,16,128], index: 0, kind: input, shape index: {}]   ;;  %s5550_s1 = inlined_call_operand.hbm [shape: f32[128,384], index: 1, kind: input, shape index: {}]   ;;  %s5551_s2 = inlined_call_operand.hbm [shape: f32[1,384], index: 2, kind: input, shape index: {}]   ;;  %s5552_s3 = inlined_call_operand.hbm [shape: f32[4,16,128], index: 3, kind: output, shape index: {}]  }
   0x1   :  { %9 = vsyncpa [#allocation6], 0  ;;  %s28_s14 = sshll.u32 %s5550_s1, 4  ;;  %s29_s14 = int_to_ptr.hbm [resolvable:$true] %s28_s14 }
   0x2   :  { %10 = vsyncpa [#allocation4], 0  ;;  %s4135_s15 = smov [#allocation5]   ;;  %s15_s19 = sshll.u32 %s5549_s0, 4  ;;  %s16_s19 = int_to_ptr.hbm [resolvable:$true] %s15_s19 }
   0x3   :  { %s30_s16 = sshll.u32 %s4135_s15, 4  ;;  %s4136_s20 = smov 384   ;;  %s31_s16 = int_to_ptr.vmem [resolvable:$true] %s30_s16 }
   0x4   :  { %s4137_s21 = smov 24   ;;  %s4138_s22 = smov [#allocation2]  }
   0x5   :  { %36 = dma.hbm_to_vmem [thread:$0]  %s29_s14, 6144, %s31_s16, [#allocation6], %s4136_s20, %s4136_s20, %s4137_s21  }
   0x6   :  { %s17_s23 = sshll.u32 %s4138_s22, 4  ;;  %s4139_s24 = smov 128   ;;  %s18_s23 = int_to_ptr.vmem [resolvable:$true] %s17_s23 }
   0x7   :  { %s4140_s25 = smov 8   ;;  %s42_s27 = sshll.u32 %s5551_s2, 4  ;;  %s43_s27 = int_to_ptr.hbm [resolvable:$true] %s42_s27 }
   0x8   :  { %23 = dma.hbm_to_vmem [thread:$0]  %s16_s19, 1024, %s18_s23, [#allocation3], %s4139_s24, %s4139_s24, %s4140_s25  }
   0x9   :  { %s4141_s28 = smov [#allocation7]  }
   0xa   :  { %s44_s0 = sshll.u32 %s4141_s28, 4  ;;  %s45_s0 = int_to_ptr.vmem [resolvable:$true] %s44_s0 }
   0xb   :  { %47 = dma.hbm_to_vmem [thread:$0]  %s43_s27, 48, %s45_s0, [#allocation6]  }
   0xc   :  { %4129 = dma.done.wait [#allocation3], 1024  }
   0xd   :  { %4130 = vsyncadd [#allocation3], 4294966272 }
   0xe   :  { %4131 = dma.done.wait [#allocation6], 6192  }
   0xf   :  { %4132 = vsyncadd [#allocation6], 4294961104  ;;  %v114_v0 = vld [vmem:[#allocation5 + $0x170] sm:$0xff]  ;;  %v111_v1 = vld [vmem:[#allocation5 + $0x158] sm:$0xff]  ;;  %v247_v56 = vlaneseq  ;;  %v4142_v58 = vmov 0.0   ;;  %s4143_s2 = smov [#allocation8]  }
  0x10   :  { %165 = vmatpush.msra.mxu1 %v114_v0  ;;  %v108_v2 = vld [vmem:[#allocation5 + $0x140] sm:$0xff]  ;;  %v113_v3 = vld [vmem:[#allocation5 + $0x168] sm:$0xff]  ;;  %v110_v4 = vld [vmem:[#allocation5 + $0x150] sm:$0xff]  ;;  %s3678_s29 = sshll.u32 %s4143_s2, 4  ;;  %s3680_s5 = sshll.u32 %s5552_s3, 4  ;;  %s3679_s29 = int_to_ptr.vmem [resolvable:$true] %s3678_s29  ;;  %s3681_s5 = int_to_ptr.hbm [resolvable:$true] %s3680_s5 }
  0x11   :  { %124 = vmatpush.msra.mxu0 %v113_v3  ;;  %v105_v5 = vld [vmem:[#allocation5 + $0x128] sm:$0xff]  ;;  %v107_v6 = vld [vmem:[#allocation5 + $0x138] sm:$0xff]  ;;  %v102_v7 = vld [vmem:[#allocation5 + $0x110] sm:$0xff]  ;;  %v4176_v57 = vand.u32 127, %v247_v56 }
  0x12   :  { %166 = vmatpush.msra.mxu1 %v111_v1  ;;  %v104_v8 = vld [vmem:[#allocation5 + $0x120] sm:$0xff]  ;;  %v99_v9 = vld [vmem:[#allocation5 + $0xf8] sm:$0xff]  ;;  %v101_v10 = vld [vmem:[#allocation5 + $0x108] sm:$0xff] }
  0x13   :  { %125 = vmatpush.msra.mxu0 %v110_v4  ;;  %v96_v11 = vld [vmem:[#allocation5 + $0xe0] sm:$0xff]  ;;  %v98_v12 = vld [vmem:[#allocation5 + $0xf0] sm:$0xff]  ;;  %v93_v13 = vld [vmem:[#allocation5 + $0xc8] sm:$0xff]  ;;  %vm1092_vm0 = vcmp.ge.s32.totalorder %v4176_v57, 32  ;;  %vm1093_vm1 = vcmp.lt.s32.totalorder %v4176_v57, 48  ;;  %vm1521_vm3 = vcmp.ge.s32.totalorder %v4176_v57, 48 }
  0x14   :  { %167 = vmatpush.msra.mxu1 %v108_v2  ;;  %v95_v14 = vld [vmem:[#allocation5 + $0xd8] sm:$0xff]  ;;  %v90_v15 = vld [vmem:[#allocation5 + $0xb0] sm:$0xff]  ;;  %v92_v16 = vld [vmem:[#allocation5 + $0xc0] sm:$0xff]  ;;  %vm1522_vm4 = vcmp.lt.s32.totalorder %v4176_v57, 64  ;;  %vm1950_vm5 = vcmp.ge.s32.totalorder %v4176_v57, 64  ;;  %vm1951_vm7 = vcmp.lt.s32.totalorder %v4176_v57, 80 }
  0x15   :  { %126 = vmatpush.msra.mxu0 %v107_v6  ;;  %v87_v17 = vld [vmem:[#allocation5 + $0x98] sm:$0xff]  ;;  %v89_v18 = vld [vmem:[#allocation5 + $0xa8] sm:$0xff]  ;;  %v84_v19 = vld [vmem:[#allocation5 + $0x80] sm:$0xff]  ;;  %vm2379_vm8 = vcmp.ge.s32.totalorder %v4176_v57, 80  ;;  %vm2380_vm9 = vcmp.lt.s32.totalorder %v4176_v57, 96  ;;  %vm2808_vm10 = vcmp.ge.s32.totalorder %v4176_v57, 96 }
  0x16   :  { %168 = vmatpush.msra.mxu1 %v105_v5  ;;  %v86_v20 = vld [vmem:[#allocation5 + $0x90] sm:$0xff]  ;;  %v81_v21 = vld [vmem:[#allocation5 + $0x68] sm:$0xff]  ;;  %v83_v22 = vld [vmem:[#allocation5 + $0x78] sm:$0xff]  ;;  %vm2809_vm12 = vcmp.lt.s32.totalorder %v4176_v57, 112  ;;  %vm3237_vm13 = vcmp.ge.s32.totalorder %v4176_v57, 112 }
  0x17   :  { %127 = vmatpush.msra.mxu0 %v104_v8  ;;  %v78_v23 = vld [vmem:[#allocation5 + $0x50] sm:$0xff]  ;;  %v80_v24 = vld [vmem:[#allocation5 + $0x60] sm:$0xff]  ;;  %v75_v25 = vld [vmem:[#allocation5 + $0x38] sm:$0xff]  ;;  %v4201_v1 = vsel %vm3237_vm13, 1.0, %v4142_v58 }
  0x18   :  { %169 = vmatpush.msra.mxu1 %v102_v7  ;;  %v77_v26 = vld [vmem:[#allocation5 + $0x48] sm:$0xff]  ;;  %v72_v27 = vld [vmem:[#allocation5 + $0x20] sm:$0xff]  ;;  %v74_v28 = vld [vmem:[#allocation5 + $0x30] sm:$0xff]  ;;  %5571 = vst [vmem:[#allocation14_spill] sm:$0xff] %v4201_v1 }
  0x19   :  { %128 = vmatpush.msra.mxu0 %v101_v10  ;;  %v69_v29 = vld [vmem:[#allocation5 + $0x8] sm:$0xff]  ;;  %v71_v30 = vld [vmem:[#allocation5 + $0x18] sm:$0xff]  ;;  %v60_v31 = vld [vmem:[#allocation2] sm:$0xff] }
  0x1a   :  { %170 = vmatpush.msra.mxu1 %v99_v9  ;;  %v68_v32 = vld [vmem:[#allocation5] sm:$0xff]  ;;  %v61_v33 = vld [vmem:[#allocation2 + $0x8] sm:$0xff]  ;;  %v62_v34 = vld [vmem:[#allocation2 + $0x10] sm:$0xff] }
  0x1b   :  { %129 = vmatpush.msra.mxu0 %v98_v12  ;;  %v63_v35 = vld [vmem:[#allocation2 + $0x18] sm:$0xff]  ;;  %v112_v37 = vld [vmem:[#allocation5 + $0x160] sm:$0xff]  ;;  %v109_v38 = vld [vmem:[#allocation5 + $0x148] sm:$0xff] }
  0x1c   :  { %171 = vmatpush.msra.mxu1 %v96_v11  ;;  %v115_v36 = vld [vmem:[#allocation5 + $0x178] sm:$0xff]  ;;  %v64_v39 = vld [vmem:[#allocation2 + $0x20] sm:$0xff]  ;;  %v106_v40 = vld [vmem:[#allocation5 + $0x130] sm:$0xff] }
  0x1d   :  { %130 = vmatpush.msra.mxu0 %v95_v14  ;;  %206 = vmatpush.msra.mxu2 %v115_v36  ;;  %v103_v41 = vld [vmem:[#allocation5 + $0x118] sm:$0xff]  ;;  %v100_v42 = vld [vmem:[#allocation5 + $0x100] sm:$0xff]  ;;  %v97_v43 = vld [vmem:[#allocation5 + $0xe8] sm:$0xff] }
  0x1e   :  { %172 = vmatpush.msra.mxu1 %v93_v13  ;;  %v65_v44 = vld [vmem:[#allocation2 + $0x28] sm:$0xff]  ;;  %v94_v45 = vld [vmem:[#allocation5 + $0xd0] sm:$0xff]  ;;  %v91_v46 = vld [vmem:[#allocation5 + $0xb8] sm:$0xff] }
  0x1f   :  { %131 = vmatpush.msra.mxu0 %v92_v16  ;;  %207 = vmatpush.msra.mxu2 %v112_v37  ;;  %v88_v47 = vld [vmem:[#allocation5 + $0xa0] sm:$0xff]  ;;  %v85_v48 = vld [vmem:[#allocation5 + $0x88] sm:$0xff]  ;;  %v66_v49 = vld [vmem:[#allocation2 + $0x30] sm:$0xff] }
  0x20   :  { %173 = vmatpush.msra.mxu1 %v90_v15  ;;  %v82_v50 = vld [vmem:[#allocation5 + $0x70] sm:$0xff]  ;;  %v79_v51 = vld [vmem:[#allocation5 + $0x58] sm:$0xff]  ;;  %v76_v52 = vld [vmem:[#allocation5 + $0x40] sm:$0xff] }
  0x21   :  { %132 = vmatpush.msra.mxu0 %v89_v18  ;;  %208 = vmatpush.msra.mxu2 %v109_v38  ;;  %v67_v53 = vld [vmem:[#allocation2 + $0x38] sm:$0xff]  ;;  %v73_v54 = vld [vmem:[#allocation5 + $0x28] sm:$0xff]  ;;  %v70_v55 = vld [vmem:[#allocation5 + $0x10] sm:$0xff] }
  0x22   :  { %174 = vmatpush.msra.mxu1 %v87_v17  ;;  %vm1094_vm2 = vmand %vm1092_vm0, %vm1093_vm1  ;;  %v4195_v63 = vld [vmem:[#allocation7] sm:$0x7]  ;;  %vm250_vm0 = vcmp.lt.s32.totalorder %v4176_v57, 16  ;;  %vm555_vm1 = vcmp.ge.s32.totalorder %v4176_v57, 16 }
  0x23   :  { %133 = vmatpush.msra.mxu0 %v86_v20  ;;  %209 = vmatpush.msra.mxu2 %v106_v40  ;;  %v4181_v59 = vsel %vm1094_vm2, 1.0, %v4142_v58  ;;  %vm1523_vm6 = vmand %vm1521_vm3, %vm1522_vm4  ;;  %v4204_v2 = vperm.slane %v4195_v63, 0  ;;  %v4213_v5 = vperm.slane %v4195_v63, 1  ;;  %v4224_v10 = vsel %vm250_vm0, 1.0, %v4142_v58 }
  0x24   :  { %175 = vmatpush.msra.mxu1 %v84_v19  ;;  %v4191_v62 = vsel %vm1523_vm6, 1.0, %v4142_v58  ;;  %vm1952_vm11 = vmand %vm1950_vm5, %vm1951_vm7  ;;  %vm556_vm2 = vcmp.lt.s32.totalorder %v4176_v57, 32  ;;  %vm362_vm4 = vcmask 130048  }
  0x25   :  { %134 = vmatpush.msra.mxu0 %v83_v22  ;;  %210 = vmatpush.msra.mxu2 %v103_v41  ;;  %5569 = vst [vmem:[#allocation12_spill] sm:$0xff] %v4191_v62  ;;  %v4198_v0 = vsel %vm1952_vm11, 1.0, %v4142_v58  ;;  %vm2381_vm14 = vmand %vm2379_vm8, %vm2380_vm9 }
  0x26   :  { %176 = vmatpush.msra.mxu1 %v81_v21  ;;  %5570 = vst [vmem:[#allocation13_spill] sm:$0xff] %v4198_v0  ;;  %vm2810_vm15 = vmand %vm2808_vm10, %vm2809_vm12  ;;  %v4207_v3 = vsel %vm2381_vm14, 1.0, %v4142_v58 }
  0x27   :  { %135 = vmatpush.msra.mxu0 %v80_v24  ;;  %211 = vmatpush.msra.mxu2 %v100_v42  ;;  %5572 = vst [vmem:[#allocation15_spill] sm:$0xff] %v4207_v3  ;;  %v4210_v4 = vsel %vm2810_vm15, 1.0, %v4142_v58  ;;  %vm557_vm3 = vmand %vm555_vm1, %vm556_vm2 }
  0x28   :  { %177 = vmatpush.msra.mxu1 %v78_v23  ;;  %5573 = vst [vmem:[#allocation16_spill] sm:$0xff] %v4210_v4 }
  0x29   :  { %136 = vmatpush.msra.mxu0 %v77_v26  ;;  %212 = vmatpush.msra.mxu2 %v97_v43 }
  0x2a   :  { %178 = vmatpush.msra.mxu1 %v75_v25 }
  0x2b   :  { %137 = vmatpush.msra.mxu0 %v74_v28  ;;  %213 = vmatpush.msra.mxu2 %v94_v45 }
  0x2c   :  { %179 = vmatpush.msra.mxu1 %v72_v27 }
  0x2d   :  { %138 = vmatpush.msra.mxu0 %v71_v30  ;;  %214 = vmatpush.msra.mxu2 %v91_v46 }
  0x2e   :  { %180 = vmatpush.msra.mxu1 %v69_v29 }
  0x2f   :  { %181 = vmatmul.f32.vlgmr.msra.gmra.mxu1 %v60_v31  ;;  %139 = vmatpush.msra.mxu0 %v68_v32 }
  0x30   :  { %140 = vmatmul.f32.vlgmr.msra.gmra.mxu0 %v60_v31  ;;  %215 = vmatpush.msra.mxu2 %v88_v47 }
  0x32   :  { %216 = vmatpush.msra.mxu2 %v85_v48 }
  0x34   :  { %217 = vmatpush.msra.mxu2 %v82_v50 }
  0x36   :  { %218 = vmatpush.msra.mxu2 %v79_v51 }
  0x37   :  { %184 = vmatmul.f32.gmra.mxu1 %v61_v33 }
  0x38   :  { %143 = vmatmul.f32.gmra.mxu0 %v61_v33  ;;  %219 = vmatpush.msra.mxu2 %v76_v52 }
  0x3a   :  { %220 = vmatpush.msra.mxu2 %v73_v54 }
  0x3c   :  { %221 = vmatpush.msra.mxu2 %v70_v55 }
  0x3d   :  { %222 = vmatmul.f32.vlgmr.msra.gmra.mxu2 %v60_v31 }
  0x3f   :  { %187 = vmatmul.f32.gmra.mxu1 %v62_v34 }
  0x40   :  { %146 = vmatmul.f32.gmra.mxu0 %v62_v34 }
  0x45   :  { %225 = vmatmul.f32.gmra.mxu2 %v61_v33  ;;  %v4273_v33 = vsel %vm557_vm3, 1.0, %v4142_v58 }
  0x47   :  { %190 = vmatmul.f32.gmra.mxu1 %v63_v35 }
  0x48   :  { %149 = vmatmul.f32.gmra.mxu0 %v63_v35 }
  0x4d   :  { %228 = vmatmul.f32.gmra.mxu2 %v62_v34 }
  0x4f   :  { %193 = vmatmul.f32.gmra.mxu1 %v64_v39 }
  0x50   :  { %152 = vmatmul.f32.gmra.mxu0 %v64_v39 }
  0x55   :  { %231 = vmatmul.f32.gmra.mxu2 %v63_v35 }
  0x57   :  { %196 = vmatmul.f32.gmra.mxu1 %v65_v44 }
  0x58   :  { %155 = vmatmul.f32.gmra.mxu0 %v65_v44 }
  0x5d   :  { %234 = vmatmul.f32.gmra.mxu2 %v64_v39 }
  0x5f   :  { %199 = vmatmul.f32.gmra.mxu1 %v66_v49 }
  0x60   :  { %158 = vmatmul.f32.gmra.mxu0 %v66_v49 }
  0x65   :  { %237 = vmatmul.f32.gmra.mxu2 %v65_v44 }
  0x67   :  { %202 = vmatmul.f32.gmra.mxu1 %v67_v53 }
  0x68   :  { %161 = vmatmul.f32.gmra.mxu0 %v67_v53 }
  0x6d   :  { %240 = vmatmul.f32.gmra.mxu2 %v66_v49 }
  0x75   :  { %243 = vmatmul.f32.gmra.mxu2 %v67_v53 }
  0xac   :  { %v182_v60 = vpop.f32.mrf.mxu1 }
  0xad   :  { %v141_v61 = vpop.f32.mrf.mxu0  ;;  %v4227_v11 = vadd.f32 %v182_v60, %v4213_v5 }
  0xae   :  { %v4220_v8 = vadd.f32 %v141_v61, %v4204_v2 }
  0xb0   :  { %v254_v12 = vmul.f32 %v4224_v10, %v4220_v8  ;;  %v560_v50 = vmul.f32 %v4273_v33, %v4220_v8 }
  0xb4   :  { %v185_v6 = vpop.f32.mrf.mxu1 }
  0xb5   :  { %v4217_v7 = vadd.f32 %v185_v6, %v4213_v5  ;;  %v144_v9 = vpop.f32.mrf.mxu0 }
  0xb6   :  { %v4233_v14 = vadd.f32 %v144_v9, %v4204_v2 }
  0xb7   :  { %284 = vmatpush.xpose.msra.mxu3 %v4217_v7 }
  0xb8   :  { %v255_v16 = vmul.f32 %v4224_v10, %v4233_v14  ;;  %v561_v51 = vmul.f32 %v4273_v33, %v4233_v14 }
  0xbb   :  { %285 = vmatpush.xpose.msra.mxu3 %v4227_v11 }
  0xbc   :  { %v188_v13 = vpop.f32.mrf.mxu1 }
  0xbd   :  { %v147_v15 = vpop.f32.mrf.mxu0  ;;  %v4245_v21 = vadd.f32 %v188_v13, %v4213_v5 }
  0xbe   :  { %286 = vmatmul.f32.vlgmr.msra.gmra.mxu3 %v254_v12  ;;  %v4241_v19 = vadd.f32 %v147_v15, %v4204_v2 }
  0xc0   :  { %v256_v22 = vmul.f32 %v4224_v10, %v4241_v19  ;;  %v562_v52 = vmul.f32 %v4273_v33, %v4241_v19  ;;  %v223_v60 = vpop.f32.mrf.mxu2 }
  0xc4   :  { %v191_v17 = vpop.f32.mrf.mxu1 }
  0xc5   :  { %v4238_v18 = vadd.f32 %v191_v17, %v4213_v5  ;;  %v150_v20 = vpop.f32.mrf.mxu0 }
  0xc6   :  { %289 = vmatmul.f32.gmra.mxu3 %v255_v16  ;;  %v4251_v24 = vadd.f32 %v150_v20, %v4204_v2 }
  0xc7   :  { %307 = vmatpush.xpose.msrb.mxu3 %v4238_v18 }
  0xc8   :  { %v257_v26 = vmul.f32 %v4224_v10, %v4251_v24  ;;  %v563_v53 = vmul.f32 %v4273_v33, %v4251_v24  ;;  %v226_v6 = vpop.f32.mrf.mxu2 }
  0xcb   :  { %308 = vmatpush.xpose.msrb.mxu3 %v4245_v21 }
  0xcc   :  { %v194_v23 = vpop.f32.mrf.mxu1 }
  0xcd   :  { %v153_v25 = vpop.f32.mrf.mxu0  ;;  %v4270_v32 = vadd.f32 %v194_v23, %v4213_v5 }
  0xce   :  { %309 = vmatmul.f32.vlgmr.msrb.gmra.mxu3 %v256_v22  ;;  %v4261_v29 = vadd.f32 %v153_v25, %v4204_v2 }
  0xd0   :  { %5574 = vst [vmem:[#allocation17_spill] sm:$0xff] %v4261_v29  ;;  %v258_v34 = vmul.f32 %v4224_v10, %v4261_v29  ;;  %v564_v35 = vmul.f32 %v4273_v33, %v4261_v29  ;;  %v229_v13 = vpop.f32.mrf.mxu2 }
  0xd4   :  { %v197_v27 = vpop.f32.mrf.mxu1 }
  0xd5   :  { %v4258_v28 = vadd.f32 %v197_v27, %v4213_v5  ;;  %v156_v30 = vpop.f32.mrf.mxu0 }
  0xd6   :  { %312 = vmatmul.f32.gmra.mxu3 %v257_v26  ;;  %v4266_v31 = vadd.f32 %v156_v30, %v4204_v2 }
  0xd7   :  { %330 = vmatpush.xpose.msra.mxu3 %v4258_v28  ;;  %636 = vmatpush.xpose.msrb.mxu0 %v4258_v28 }
  0xd8   :  { %5575 = vst [vmem:[#allocation18_spill] sm:$0xff] %v4266_v31  ;;  %3766 = vmatpush.xpose.msrb.mxu2 %v4258_v28  ;;  %v565_v36 = vmul.f32 %v4273_v33, %v4266_v31  ;;  %v259_v39 = vmul.f32 %v4224_v10, %v4266_v31  ;;  %v232_v22 = vpop.f32.mrf.mxu2 }
  0xdb   :  { %331 = vmatpush.xpose.msra.mxu3 %v4270_v32  ;;  %637 = vmatpush.xpose.msrb.mxu0 %v4270_v32 }
  0xdc   :  { %3767 = vmatpush.xpose.msrb.mxu2 %v4270_v32  ;;  %v200_v37 = vpop.f32.mrf.mxu1 }
  0xdd   :  { %v159_v38 = vpop.f32.mrf.mxu0  ;;  %v4295_v43 = vadd.f32 %v200_v37, %v4213_v5 }
  0xde   :  { %332 = vmatmul.f32.vlgmr.msra.gmra.mxu3 %v258_v34  ;;  %638 = vmatmul.f32.vlgmr.msrb.gmra.mxu0 %v564_v35  ;;  %v4290_v42 = vadd.f32 %v159_v38, %v4204_v2 }
  0xdf   :  { %641 = vmatmul.f32.vlgmr.msrb.gmra.mxu2 %v565_v36 }
  0xe0   :  { %5576 = vst [vmem:[#allocation19_spill] sm:$0xff] %v4290_v42  ;;  %v260_v44 = vmul.f32 %v4224_v10, %v4290_v42  ;;  %v566_v45 = vmul.f32 %v4273_v33, %v4290_v42  ;;  %v235_v26 = vpop.f32.mrf.mxu2 }
  0xe4   :  { %v203_v40 = vpop.f32.mrf.mxu1 }
  0xe5   :  { %v4287_v41 = vadd.f32 %v203_v40, %v4213_v5  ;;  %v162_v46 = vpop.f32.mrf.mxu0 }
  0xe6   :  { %335 = vmatmul.f32.gmra.mxu3 %v259_v39  ;;  %v4305_v47 = vadd.f32 %v162_v46, %v4204_v2 }
  0xe7   :  { %353 = vmatpush.xpose.msrb.mxu3 %v4287_v41  ;;  %659 = vmatpush.xpose.msrb.mxu1 %v4287_v41 }
  0xe8   :  { %5577 = vst [vmem:[#allocation20_spill] sm:$0xff] %v4305_v47  ;;  %v261_v48 = vmul.f32 %v4224_v10, %v4305_v47  ;;  %v567_v49 = vmul.f32 %v4273_v33, %v4305_v47  ;;  %v238_v34 = vpop.f32.mrf.mxu2 }
  0xeb   :  { %354 = vmatpush.xpose.msrb.mxu3 %v4295_v43  ;;  %660 = vmatpush.xpose.msrb.mxu1 %v4295_v43 }
  0xee   :  { %355 = vmatmul.f32.vlgmr.msrb.gmra.mxu3 %v260_v44  ;;  %661 = vmatmul.f32.vlgmr.msrb.gmra.mxu1 %v566_v45 }
  0xef   :  { %590 = vmatpush.xpose.msra.mxu3 %v4217_v7 }
  0xf0   :  { %v241_v39 = vpop.f32.mrf.mxu2 }
  0xf3   :  { %591 = vmatpush.xpose.msra.mxu3 %v4227_v11 }
  0xf6   :  { %358 = vmatmul.f32.gmra.mxu3 %v261_v48  ;;  %664 = vmatmul.f32.gmra.mxu1 %v567_v49  ;;  %v120_v48 = vperm.slane %v4195_v63, 2 }
  0xf7   :  { %613 = vmatpush.xpose.msrb.mxu3 %v4238_v18 }
  0xf8   :  { %v244_v46 = vpop.f32.mrf.mxu2 }
  0xfb   :  { %614 = vmatpush.xpose.msrb.mxu3 %v4245_v21 }
  0xfe   :  { %592 = vmatmul.f32.vlgmr.msra.gmra.mxu3 %v560_v50 }
 0x106   :  { %595 = vmatmul.f32.gmra.mxu3 %v561_v51  ;;  %v4377_v51 = vadd.f32 %v226_v6, %v120_v48 }
 0x10e   :  { %615 = vmatmul.f32.vlgmr.msrb.gmra.mxu3 %v562_v52  ;;  %v4379_v52 = vadd.f32 %v223_v60, %v120_v48  ;;  %v263_v60 = vmul.f32 %v4224_v10, %v4377_v51 }
 0x110   :  { %v262_v6 = vmul.f32 %v4224_v10, %v4379_v52 }
 0x116   :  { %618 = vmatmul.f32.gmra.mxu3 %v563_v53 }
 0x141   :  { %v4322_v54 = vpop.f32.mrf.mxu3 }
 0x142   :  { %v363_v55 = vsel %vm362_vm4, %v4322_v54, -inf }
 0x143   :  { %364 = vmax.xlane.f32.xlu2 %v363_v55  ;;  %v569_v55 = vmul.f32 %v4273_v33, %v4377_v51 }
 0x145   :  { %880 = vmatpush.msra.mxu2 %v569_v55 }
 0x149   :  { %v4326_v56 = vpop.f32.mrf.mxu3 }
 0x14a   :  { %v366_v44 = vsel %vm362_vm4, %v4326_v56, -inf }
 0x151   :  { %v4328_v57 = vpop.f32.mrf.mxu3 }
 0x152   :  { %v369_v58 = vsel %vm362_vm4, %v4328_v57, -inf }
 0x153   :  { %370 = vmax.xlane.f32.xlu2 %v369_v58 }
 0x159   :  { %v4332_v61 = vpop.f32.mrf.mxu3 }
 0x15a   :  { %v372_v50 = vsel %vm362_vm4, %v4332_v61, -inf }
 0x15b   :  { %v4334_v2 = vpop.f32.mrf.mxu0 }
 0x15c   :  { %v680_v5 = vsel %vm362_vm4, %v4334_v2, -inf }
 0x15d   :  { %681 = vmax.xlane.f32.xlu2 %v680_v5  ;;  %v568_v5 = vmul.f32 %v4273_v33, %v4379_v52 }
 0x15f   :  { %881 = vmatpush.msra.mxu2 %v568_v5 }
 0x161   :  { %v4338_v9 = vpop.f32.mrf.mxu3  ;;  %996 = vmatpush.msrb.mxu2 %v263_v60 }
 0x162   :  { %v375_v25 = vsel %vm362_vm4, %v4338_v9, -inf  ;;  %v4381_v53 = vpop.f32.mrf.mxu2 }
 0x163   :  { %v683_v58 = vsel %vm362_vm4, %v4381_v53, -inf  ;;  %997 = vmatpush.msrb.mxu2 %v262_v6 }
 0x169   :  { %v4340_v12 = vpop.f32.mrf.mxu3 }
 0x16b   :  { %v4342_v15 = vpop.f32.mrf.mxu1 }
 0x16c   :  { %v686_v49 = vsel %vm362_vm4, %v4342_v15, -inf }
 0x171   :  { %v4344_v16 = vpop.f32.mrf.mxu3 }
 0x172   :  { %v381_v63 = vsel %vm362_vm4, %v4344_v16, -inf }
 0x173   :  { %v4346_v17 = vpop.f32.mrf.mxu1 }
 0x174   :  { %v689_v20 = vsel %vm362_vm4, %v4346_v17, -inf }
 0x175   :  { %690 = vmax.xlane.f32.xlu2 %v689_v20  ;;  %v4395_v20 = vadd.f32 %v229_v13, %v120_v48  ;;  %v4407_v13 = vadd.f32 %v238_v34, %v120_v48  ;;  %v4419_v34 = vadd.f32 %v244_v46, %v120_v48 }
 0x177   :  { %v269_v5 = vmul.f32 %v4224_v10, %v4419_v34 }
 0x179   :  { %v4350_v23 = vpop.f32.mrf.mxu3 }
 0x17d   :  { %376 = vmax.xlane.f32.xlu2 %v375_v25  ;;  %v4397_v25 = vadd.f32 %v232_v22, %v120_v48  ;;  %v4409_v22 = vadd.f32 %v235_v26, %v120_v48  ;;  %v4421_v26 = vadd.f32 %v241_v39, %v120_v48 }
 0x17f   :  { %v266_v55 = vmul.f32 %v4224_v10, %v4409_v22  ;;  %5578 = vst [vmem:[#allocation21_spill] sm:$0xff] %v4421_v26  ;;  %v268_v60 = vmul.f32 %v4224_v10, %v4421_v26 }
 0x181   :  { %v4354_v27 = vpop.f32.mrf.mxu3 }
 0x182   :  { %v668_v30 = vsel %vm362_vm4, %v4354_v27, -inf }
 0x183   :  { %669 = vmax.xlane.f32.xlu0 %v668_v30  ;;  %v571_v30 = vmul.f32 %v4273_v33, %v4397_v25 }
 0x185   :  { %909 = vmatpush.msra.mxu3 %v571_v30 }
 0x189   :  { %v4358_v35 = vpop.f32.mrf.mxu3 }
 0x18a   :  { %v671_v36 = vsel %vm362_vm4, %v4358_v35, -inf }
 0x18b   :  { %672 = vmax.xlane.f32.xlu1 %v671_v36  ;;  %v570_v36 = vmul.f32 %v4273_v33, %v4395_v20 }
 0x18d   :  { %910 = vmatpush.msra.mxu3 %v570_v36 }
 0x191   :  { %v4362_v37 = vpop.f32.mrf.mxu3 }
 0x192   :  { %v674_v38 = vsel %vm362_vm4, %v4362_v37, -inf }
 0x193   :  { %675 = vmax.xlane.f32.xlu0 %v674_v38  ;;  %v265_v38 = vmul.f32 %v4224_v10, %v4397_v25 }
 0x195   :  { %1025 = vmatpush.msrb.mxu3 %v265_v38 }
 0x199   :  { %v4366_v40 = vpop.f32.mrf.mxu3 }
 0x19a   :  { %v677_v45 = vsel %vm362_vm4, %v4366_v40, -inf }
 0x19b   :  { %367 = vmax.xlane.f32.xlu0 %v366_v44  ;;  %678 = vmax.xlane.f32.xlu1 %v677_v45  ;;  %v264_v44 = vmul.f32 %v4224_v10, %v4395_v20  ;;  %v573_v45 = vmul.f32 %v4273_v33, %v4407_v13 }
 0x19d   :  { %1026 = vmatpush.msrb.mxu3 %v264_v44  ;;  %938 = vmatpush.msra.mxu0 %v573_v45 }
 0x1a3   :  { %687 = vmax.xlane.f32.xlu0 %v686_v49  ;;  %373 = vmax.xlane.f32.xlu1 %v372_v50  ;;  %v572_v49 = vmul.f32 %v4273_v33, %v4409_v22  ;;  %v267_v50 = vmul.f32 %v4224_v10, %v4407_v13 }
 0x1a5   :  { %939 = vmatpush.msra.mxu0 %v572_v49 }
 0x1a7   :  { %1054 = vmatpush.msrb.mxu0 %v267_v50 }
 0x1a9   :  { %1055 = vmatpush.msrb.mxu0 %v266_v55 }
 0x1ab   :  { %382 = vmax.xlane.f32.xlu0 %v381_v63  ;;  %684 = vmax.xlane.f32.xlu1 %v683_v58  ;;  %v575_v63 = vmul.f32 %v4273_v33, %v4419_v34  ;;  %v574_v58 = vmul.f32 %v4273_v33, %v4421_v26 }
 0x1ad   :  { %967 = vmatpush.msra.mxu1 %v575_v63 }
 0x1af   :  { %968 = vmatpush.msra.mxu1 %v574_v58  ;;  %v378_v58 = vsel %vm362_vm4, %v4340_v12, -inf }
 0x1b1   :  { %1083 = vmatpush.msrb.mxu1 %v269_v5 }
 0x1b3   :  { %1084 = vmatpush.msrb.mxu1 %v268_v60 }
 0x1b6   :  { %v365_v46 = vpop.xlane.xlu2 %364 }
 0x1c6   :  { %v371_v30 = vpop.xlane.xlu2 %370 }
 0x1c7   :  { %v389_v33 = vsub.f32 %v4328_v57, %v371_v30  ;;  %v387_v30 = vsub.f32 %v4322_v54, %v365_v46 }
 0x1c9   :  { %v399_v44 = vmul.f32 1.442695, %v389_v33 }
 0x1d0   :  { %v682_v45 = vpop.xlane.xlu2 %681 }
 0x1d1   :  { %v696_v55 = vsub.f32 %v4334_v2, %v682_v45 }
 0x1d3   :  { %v708_v57 = vmul.f32 1.442695, %v696_v55 }
 0x1e8   :  { %v691_v60 = vpop.xlane.xlu2 %690 }
 0x1e9   :  { %v699_v2 = vsub.f32 %v4346_v17, %v691_v60 }
 0x1f6   :  { %v670_v6 = vpop.xlane.xlu0 %669 }
 0x1f7   :  { %v692_v39 = vsub.f32 %v4354_v27, %v670_v6 }
 0x1f9   :  { %v700_v48 = vmul.f32 1.442695, %v692_v39 }
 0x1fb   :  { %3777 = vpow2.f32 %v700_v48 }
 0x1fc   :  { %3779 = vpow2.f32 %v399_v44 }
 0x1fe   :  { %v673_v49 = vpop.xlane.xlu1 %672 }
 0x1ff   :  { %v693_v27 = vsub.f32 %v4358_v35, %v673_v49  ;;  %v395_v49 = vmul.f32 1.442695, %v387_v30 }
 0x201   :  { %v4432_v36 = vpop.eup %3777  ;;  %v702_v5 = vmul.f32 1.442695, %v693_v27 }
 0x202   :  { %v716_v38 = vsel %vm362_vm4, %v4432_v36, 0.0  ;;  %v4442_v39 = vpop.eup %3779 }
 0x203   :  { %717 = vadd.xlane.f32.xlu0 %v716_v38  ;;  %v417_v33 = vsel %vm362_vm4, %v4442_v39, 0.0 }
 0x206   :  { %v676_v10 = vpop.xlane.xlu0 %675 }
 0x207   :  { %v694_v50 = vsub.f32 %v4362_v37, %v676_v10 }
 0x209   :  { %v704_v63 = vmul.f32 1.442695, %v694_v50 }
 0x20b   :  { %3781 = vpow2.f32 %v704_v63  ;;  %379 = vmax.xlane.f32.xlu0 %v378_v58 }
 0x20c   :  { %3783 = vpow2.f32 %v708_v57 }
 0x20d   :  { %3785 = vpow2.f32 %v702_v5 }
 0x20e   :  { %v679_v6 = vpop.xlane.xlu1 %678  ;;  %v368_v44 = vpop.xlane.xlu0 %367 }
 0x20f   :  { %v695_v48 = vsub.f32 %v4366_v40, %v679_v6  ;;  %v714_v40 = vmul.f32 1.442695, %v699_v2  ;;  %v388_v54 = vsub.f32 %v4326_v56, %v368_v44 }
 0x211   :  { %v4445_v37 = vpop.eup %3781  ;;  %v706_v35 = vmul.f32 1.442695, %v695_v48  ;;  %v397_v58 = vmul.f32 1.442695, %v388_v54 }
 0x212   :  { %v722_v38 = vsel %vm362_vm4, %v4445_v37, 0.0  ;;  %v4453_v45 = vpop.eup %3783 }
 0x213   :  { %418 = vadd.xlane.f32.xlu0 %v417_v33  ;;  %723 = vadd.xlane.f32.xlu1 %v722_v38  ;;  %3787 = vpow2.f32 %v706_v35  ;;  %v4455_v17 = vpop.eup %3785  ;;  %v728_v55 = vsel %vm362_vm4, %v4453_v45, 0.0  ;;  %v384_v35 = vsel %vm362_vm4, %v4350_v23, -inf  ;;  %v377_v38 = vpop.xlane.xlu2 %376 }
 0x214   :  { %3789 = vpow2.f32 %v714_v40  ;;  %v719_v27 = vsel %vm362_vm4, %v4455_v17, 0.0 }
 0x215   :  { %3791 = vpow2.f32 %v395_v49 }
 0x216   :  { %v374_v10 = vpop.xlane.xlu1 %373  ;;  %v688_v57 = vpop.xlane.xlu0 %687  ;;  %3793 = vpow2.f32 %v397_v58 }
 0x217   :  { %v390_v50 = vsub.f32 %v4332_v61, %v374_v10  ;;  %v698_v61 = vsub.f32 %v4342_v15, %v688_v57 }
 0x219   :  { %v4458_v46 = vpop.eup %3787  ;;  %v401_v56 = vmul.f32 1.442695, %v390_v50  ;;  %v712_v33 = vmul.f32 1.442695, %v698_v61 }
 0x21a   :  { %v725_v63 = vsel %vm362_vm4, %v4458_v46, 0.0  ;;  %v4467_v5 = vpop.eup %3789 }
 0x21b   :  { %729 = vadd.xlane.f32.xlu0 %v728_v55  ;;  %720 = vadd.xlane.f32.xlu1 %v719_v27  ;;  %v4469_v6 = vpop.eup %3791  ;;  %3795 = vpow2.f32 %v401_v56  ;;  %v737_v2 = vsel %vm362_vm4, %v4467_v5, 0.0 }
 0x21c   :  { %726 = vadd.xlane.f32.xlu2 %v725_v63  ;;  %v411_v30 = vsel %vm362_vm4, %v4469_v6, 0.0  ;;  %v4479_v40 = vpop.eup %3793  ;;  %3797 = vpow2.f32 %v712_v33 }
 0x21d   :  { %v414_v54 = vsel %vm362_vm4, %v4479_v40, 0.0 }
 0x21e   :  { %v685_v60 = vpop.xlane.xlu1 %684  ;;  %v383_v15 = vpop.xlane.xlu0 %382 }
 0x21f   :  { %v697_v48 = vsub.f32 %v4381_v53, %v685_v60  ;;  %v391_v53 = vsub.f32 %v4338_v9, %v377_v38  ;;  %v393_v10 = vsub.f32 %v4344_v16, %v383_v15 }
 0x221   :  { %v710_v44 = vmul.f32 1.442695, %v697_v48  ;;  %v4481_v49 = vpop.eup %3795  ;;  %v403_v55 = vmul.f32 1.442695, %v391_v53  ;;  %v407_v27 = vmul.f32 1.442695, %v393_v10 }
 0x222   :  { %v420_v50 = vsel %vm362_vm4, %v4481_v49, 0.0  ;;  %v4489_v63 = vpop.eup %3797 }
 0x223   :  { %738 = vadd.xlane.f32.xlu0 %v737_v2  ;;  %385 = vmax.xlane.f32.xlu1 %v384_v35  ;;  %3799 = vpow2.f32 %v710_v44  ;;  %v734_v9 = vsel %vm362_vm4, %v4489_v63, 0.0 }
 0x224   :  { %412 = vadd.xlane.f32.xlu2 %v411_v30  ;;  %3801 = vpow2.f32 %v403_v55 }
 0x225   :  { %3803 = vpow2.f32 %v407_v27 }
 0x229   :  { %v4491_v58 = vpop.eup %3799 }
 0x22a   :  { %v731_v16 = vsel %vm362_vm4, %v4491_v58, 0.0  ;;  %v4497_v57 = vpop.eup %3801 }
 0x22b   :  { %415 = vadd.xlane.f32.xlu1 %v414_v54  ;;  %v4499_v56 = vpop.eup %3803  ;;  %v423_v60 = vsel %vm362_vm4, %v4497_v57, 0.0 }
 0x22c   :  { %421 = vadd.xlane.f32.xlu2 %v420_v50  ;;  %v429_v61 = vsel %vm362_vm4, %v4499_v56, 0.0 }
 0x233   :  { %735 = vadd.xlane.f32.xlu1 %v734_v9 }
 0x234   :  { %732 = vadd.xlane.f32.xlu2 %v731_v16 }
 0x23b   :  { %424 = vadd.xlane.f32.xlu1 %v423_v60 }
 0x23c   :  { %430 = vadd.xlane.f32.xlu2 %v429_v61 }
 0x276   :  { %v718_v48 = vpop.xlane.xlu0 %717 }
 0x277   :  { %3805 = vrcp.f32 %v718_v48  ;;  %v751_v44 = vand.u32 2147483648, %v718_v48  ;;  %v749_v10 = vand.u32 2147483647, %v718_v48  ;;  %vm745_vm6 = vweird.f32 %v718_v48 }
 0x279   :  { %v752_v50 = vor.u32 1.1754944e-38, %v751_v44  ;;  %vm750_vm8 = vcmp.eq.f32.partialorder %v749_v10, 8.507059e+37 }
 0x27d   :  { %v3806_v2 = vpop.eup %3805 }
 0x27e   :  { %v741_v35 = vmul.f32 %v3806_v2, %v718_v48  ;;  %v380_v30 = vpop.xlane.xlu0 %379  ;;  %vm746_vm5 = vweird.f32 %v3806_v2 }
 0x27f   :  { %v392_v33 = vsub.f32 %v4340_v12, %v380_v30  ;;  %vm747_vm7 = vmor %vm745_vm6, %vm746_vm5 }
 0x280   :  { %v742_v38 = vsub.f32 1.0, %v741_v35 }
 0x281   :  { %v405_v15 = vmul.f32 1.442695, %v392_v33 }
 0x282   :  { %v743_v53 = vmul.f32 %v3806_v2, %v742_v38 }
 0x283   :  { %3807 = vpow2.f32 %v405_v15 }
 0x284   :  { %v744_v54 = vadd.f32 %v3806_v2, %v743_v53 }
 0x286   :  { %v748_v55 = vsel %vm747_vm7, %v3806_v2, %v744_v54  ;;  %v4506_v27 = vpop.xlane.xlu0 %418  ;;  %v724_v9 = vpop.xlane.xlu1 %723 }
 0x287   :  { %v753_v16 = vsel %vm750_vm8, %v752_v50, %v748_v55  ;;  %3809 = vrcp.f32 %v4506_v27  ;;  %v476_v44 = vand.u32 2147483648, %v4506_v27  ;;  %v779_v53 = vand.u32 2147483647, %v724_v9 }
 0x288   :  { %3811 = vrcp.f32 %v724_v9  ;;  %v754_v60 = vmul.f32 %v4432_v36, %v753_v16  ;;  %v781_v10 = vand.u32 2147483648, %v724_v9  ;;  %vm775_vm10 = vweird.f32 %v724_v9 }
 0x289   :  { %v4509_v12 = vpop.eup %3807  ;;  %vm470_vm11 = vweird.f32 %v4506_v27  ;;  %vm780_vm14 = vcmp.eq.f32.partialorder %v779_v53, 8.507059e+37 }
 0x28a   :  { %5579 = vst [vmem:[#allocation22_spill] sm:$0xff] %v4509_v12  ;;  %v426_v61 = vsel %vm362_vm4, %v4509_v12, 0.0  ;;  %3696 = vmatmul.msk.f32.vlgmr.msra.gmra.mxu2 %vm362_vm4, %v754_v60  ;;  %v4531_v60 = vor.u32 1.1754944e-38, %v476_v44 }
 0x28b   :  { %427 = vadd.xlane.f32.xlu0 %v426_v61  ;;  %1127 = vmatpush.xpose.msra.mxu2 %v4217_v7 }
 0x28d   :  { %v4516_v48 = vpop.eup %3809 }
 0x28e   :  { %v3812_v2 = vpop.eup %3811  ;;  %v730_v35 = vpop.xlane.xlu0 %729  ;;  %v466_v36 = vmul.f32 %v4516_v48, %v4506_v27  ;;  %vm471_vm12 = vweird.f32 %v4516_v48 }
 0x28f   :  { %v4518_v30 = vpop.xlane.xlu1 %720  ;;  %v771_v33 = vmul.f32 %v3812_v2, %v724_v9  ;;  %3813 = vrcp.f32 %v730_v35  ;;  %v4520_v38 = vpop.xlane.xlu2 %726  ;;  %1128 = vmatpush.xpose.msra.mxu2 %v4227_v11  ;;  %vm776_vm9 = vweird.f32 %v3812_v2  ;;  %v809_v1 = vand.u32 2147483647, %v730_v35  ;;  %vm4588_vm7 = vmor %vm470_vm11, %vm471_vm12 }
 0x290   :  { %3815 = vrcp.f32 %v4520_v38  ;;  %v467_v16 = vsub.f32 1.0, %v466_v36  ;;  %vm777_vm13 = vmor %vm775_vm10, %vm776_vm9  ;;  %vm805_vm15 = vweird.f32 %v730_v35  ;;  %v811_v36 = vand.u32 2147483648, %v730_v35 }
 0x291   :  { %v772_v15 = vsub.f32 1.0, %v771_v33  ;;  %3817 = vrcp.f32 %v4518_v30  ;;  %v782_v33 = vor.u32 1.1754944e-38, %v781_v10  ;;  %vm790_vm0 = vweird.f32 %v4520_v38 }
 0x292   :  { %v796_v53 = vand.u32 2147483648, %v4520_v38  ;;  %vm4551_vm1 = vcmp.eq.f32.partialorder %v809_v1, 8.507059e+37  ;;  %vm760_vm8 = vweird.f32 %v4518_v30 }
 0x293   :  { %v773_v54 = vmul.f32 %v3812_v2, %v772_v15 }
 0x295   :  { %v4529_v55 = vpop.eup %3813  ;;  %v774_v61 = vadd.f32 %v3812_v2, %v773_v54 }
 0x296   :  { %v4533_v4 = vpop.eup %3815  ;;  %v801_v15 = vmul.f32 %v4529_v55, %v730_v35  ;;  %v4542_v54 = vpop.xlane.xlu0 %738  ;;  %vm806_vm2 = vweird.f32 %v4529_v55 }
 0x297   :  { %v386_v50 = vpop.xlane.xlu1 %385  ;;  %v4538_v9 = vpop.eup %3817  ;;  %v778_v3 = vsel %vm777_vm13, %v3812_v2, %v774_v61  ;;  %v786_v44 = vmul.f32 %v4533_v4, %v4520_v38  ;;  %v468_v2 = vmul.f32 %v4516_v48, %v467_v16  ;;  %vm4568_vm3 = vmor %vm805_vm15, %vm806_vm2  ;;  %vm791_vm6 = vweird.f32 %v4533_v4 }
 0x298   :  { %v4544_v0 = vpop.xlane.xlu2 %412  ;;  %v783_v62 = vsel %vm780_vm14, %v782_v33, %v778_v3  ;;  %v802_v47 = vsub.f32 1.0, %v801_v15  ;;  %v756_v10 = vmul.f32 %v4538_v9, %v4518_v30  ;;  %v766_v15 = vand.u32 2147483648, %v4518_v30  ;;  %vm792_vm11 = vmor %vm790_vm0, %vm791_vm6 }
 0x299   :  { %v787_v42 = vsub.f32 1.0, %v786_v44  ;;  %3819 = vrcp.f32 %v4544_v0  ;;  %v394_v16 = vsub.f32 %v4350_v23, %v386_v50  ;;  %v784_v1 = vmul.f32 %v4445_v37, %v783_v62 }
 0x29a   :  { %v803_v31 = vmul.f32 %v4529_v55, %v802_v47  ;;  %v757_v3 = vsub.f32 1.0, %v756_v10  ;;  %3821 = vrcp.f32 %v4542_v54  ;;  %v812_v44 = vor.u32 1.1754944e-38, %v811_v36 }
 0x29b   :  { %v788_v33 = vmul.f32 %v4533_v4, %v787_v42  ;;  %v764_v47 = vand.u32 2147483647, %v4518_v30  ;;  %v469_v26 = vadd.f32 %v4516_v48, %v468_v2  ;;  %v409_v42 = vmul.f32 1.442695, %v394_v16  ;;  %3698 = vmatmul.msk.f32.vlgmr.msra.gmra.mxu3 %vm362_vm4, %v784_v1 }
 0x29c   :  { %v804_v29 = vadd.f32 %v4529_v55, %v803_v31  ;;  %v758_v12 = vmul.f32 %v4538_v9, %v757_v3  ;;  %vm761_vm5 = vweird.f32 %v4538_v9  ;;  %v794_v62 = vand.u32 2147483647, %v4520_v38  ;;  %1150 = vmatpush.xpose.msra.mxu3 %v4238_v18 }
 0x29d   :  { %v789_v35 = vadd.f32 %v4533_v4, %v788_v33  ;;  %3823 = vpow2.f32 %v409_v42  ;;  %vm762_vm9 = vmor %vm760_vm8, %vm761_vm5  ;;  %vm765_vm10 = vcmp.eq.f32.partialorder %v764_v47, 8.507059e+37  ;;  %v473_v30 = vsel %vm4588_vm7, %v4516_v48, %v469_v26 }
 0x29e   :  { %v808_v31 = vsel %vm4568_vm3, %v4529_v55, %v804_v29  ;;  %v759_v37 = vadd.f32 %v4538_v9, %v758_v12  ;;  %v797_v29 = vor.u32 1.1754944e-38, %v796_v53  ;;  %v767_v55 = vor.u32 1.1754944e-38, %v766_v15 }
 0x29f   :  { %v4579_v23 = vpop.xlane.xlu1 %415  ;;  %v3820_v50 = vpop.eup %3819  ;;  %v813_v3 = vsel %vm4551_vm1, %v812_v44, %v808_v31  ;;  %v444_v53 = vand.u32 2147483647, %v4544_v0  ;;  %vm795_vm12 = vcmp.eq.f32.partialorder %v794_v62, 8.507059e+37  ;;  %v446_v15 = vand.u32 2147483648, %v4544_v0 }
 0x2a0   :  { %v4593_v2 = vpop.xlane.xlu2 %421  ;;  %v4595_v12 = vpop.eup %3821  ;;  %v436_v33 = vmul.f32 %v3820_v50, %v4544_v0  ;;  %1151 = vmatpush.xpose.msra.mxu3 %v4245_v21  ;;  %v763_v16 = vsel %vm762_vm9, %v4538_v9, %v759_v37  ;;  %v793_v1 = vsel %vm792_vm11, %v4533_v4, %v789_v35  ;;  %v814_v47 = vmul.f32 %v4453_v45, %v813_v3 }
 0x2a1   :  { %3825 = vrcp.f32 %v4593_v2  ;;  %v846_v26 = vmul.f32 %v4595_v12, %v4542_v54  ;;  %v768_v48 = vsel %vm765_vm10, %v767_v55, %v763_v16  ;;  %v798_v44 = vsel %vm795_vm12, %v797_v29, %v793_v1 }
 0x2a2   :  { %3827 = vrcp.f32 %v4579_v23  ;;  %v437_v61 = vsub.f32 1.0, %v436_v33  ;;  %vm441_vm13 = vweird.f32 %v3820_v50  ;;  %v769_v38 = vmul.f32 %v4455_v17, %v768_v48  ;;  %3700 = vmatmul.msk.f32.vlgmr.msra.gmra.mxu0 %vm362_vm4, %v814_v47 }
 0x2a3   :  { %v799_v42 = vmul.f32 %v4458_v46, %v798_v44  ;;  %v4621_v62 = vpop.eup %3823  ;;  %v5586_v31 = vand.u32 2147483647, %v4506_v27  ;;  %v1106_v4 = vmul.f32 %v4181_v59, %v4377_v51  ;;  %v4630_v9 = vmul.f32 %v4181_v59, %v4379_v52  ;;  %1173 = vmatpush.xpose.msra.mxu0 %v4258_v28 }
 0x2a4   :  { %v438_v10 = vmul.f32 %v3820_v50, %v437_v61  ;;  %vm440_vm15 = vweird.f32 %v4544_v0  ;;  %3697 = vmatmul.msk.f32.gmra.mxu2 %vm362_vm4, %v769_v38  ;;  %v432_v46 = vsel %vm362_vm4, %v4621_v62, 0.0  ;;  %v847_v36 = vsub.f32 1.0, %v846_v26 }
 0x2a5   :  { %vm475_vm14 = vcmp.eq.f32.partialorder %v5586_v31, 8.507059e+37  ;;  %3699 = vmatmul.msk.f32.gmra.mxu3 %vm362_vm4, %v799_v42  ;;  %vm442_vm0 = vmor %vm440_vm15, %vm441_vm13  ;;  %v447_v29 = vor.u32 1.1754944e-38, %v446_v15  ;;  %433 = vadd.xlane.f32.xlu1 %v432_v46  ;;  %vm445_vm1 = vcmp.eq.f32.partialorder %v444_v53, 8.507059e+37  ;;  %v491_v61 = vand.u32 2147483648, %v4593_v2 }
 0x2a6   :  { %v478_v17 = vsel %vm475_vm14, %v4531_v60, %v473_v30  ;;  %v439_v37 = vadd.f32 %v3820_v50, %v438_v10  ;;  %v461_v15 = vand.u32 2147483648, %v4579_v23  ;;  %v1108_v26 = vmul.f32 %v4181_v59, %v4397_v25 }
 0x2a7   :  { %v4632_v45 = vpop.eup %3825  ;;  %v4640_v27 = vpop.xlane.xlu1 %735  ;;  %v848_v53 = vmul.f32 %v4595_v12, %v847_v36  ;;  %v856_v48 = vand.u32 2147483648, %v4542_v54  ;;  %1174 = vmatpush.xpose.msra.mxu0 %v4270_v32  ;;  %v479_v47 = vmul.f32 %v4442_v39, %v478_v17  ;;  %vm485_vm2 = vweird.f32 %v4593_v2 }
 0x2a8   :  { %v4642_v35 = vpop.eup %3827  ;;  %v481_v60 = vmul.f32 %v4632_v45, %v4593_v2  ;;  %v4648_v0 = vpop.xlane.xlu2 %732  ;;  %3829 = vrcp.f32 %v4640_v27  ;;  %v443_v55 = vsel %vm442_vm0, %v3820_v50, %v439_v37  ;;  %v1107_v50 = vmul.f32 %v4181_v59, %v4395_v20 }
 0x2a9   :  { %v451_v3 = vmul.f32 %v4642_v35, %v4579_v23  ;;  %3831 = vrcp.f32 %v4648_v0  ;;  %v448_v33 = vsel %vm445_vm1, %v447_v29, %v443_v55  ;;  %vm455_vm3 = vweird.f32 %v4579_v23 }
 0x2aa   :  { %v482_v30 = vsub.f32 1.0, %v481_v60  ;;  %v449_v1 = vmul.f32 %v4469_v6, %v448_v33  ;;  %v459_v10 = vand.u32 2147483647, %v4579_v23  ;;  %v492_v42 = vor.u32 1.1754944e-38, %v491_v61 }
 0x2ab   :  { %v452_v16 = vsub.f32 1.0, %v451_v3  ;;  %v462_v31 = vor.u32 1.1754944e-38, %v461_v15  ;;  %vm456_vm5 = vweird.f32 %v4642_v35  ;;  %v489_v37 = vand.u32 2147483647, %v4593_v2 }
 0x2ac   :  { %v483_v44 = vmul.f32 %v4632_v45, %v482_v30  ;;  %3704 = vmatmul.msk.f32.vlgmr.msrb.gmra.mxu2 %vm362_vm4, %v449_v1  ;;  %vm486_vm6 = vweird.f32 %v4632_v45  ;;  %v4685_v3 = vadd.f32 %v4595_v12, %v848_v53  ;;  %vm851_vm7 = vweird.f32 %v4595_v12  ;;  %vm457_vm10 = vmor %vm455_vm3, %vm456_vm5 }
 0x2ad   :  { %v453_v6 = vmul.f32 %v4642_v35, %v452_v16  ;;  %3706 = vmatmul.msk.f32.vlgmr.msrb.gmra.mxu3 %vm362_vm4, %v479_v47  ;;  %1417 = vmatpush.msrb.mxu2 %v1106_v4  ;;  %vm850_vm8 = vweird.f32 %v4542_v54  ;;  %vm835_vm9 = vweird.f32 %v4640_v27  ;;  %vm460_vm11 = vcmp.eq.f32.partialorder %v459_v10, 8.507059e+37  ;;  %vm487_vm12 = vmor %vm485_vm2, %vm486_vm6 }
 0x2ae   :  { %v3830_v38 = vpop.eup %3829  ;;  %v484_v29 = vadd.f32 %v4632_v45, %v483_v44  ;;  %1446 = vmatpush.msrb.mxu3 %v1108_v26  ;;  %v826_v30 = vand.u32 2147483648, %v4648_v0  ;;  %v839_v61 = vand.u32 2147483647, %v4640_v27  ;;  %v841_v15 = vand.u32 2147483648, %v4640_v27  ;;  %vm4726_vm6 = vmor %vm850_vm8, %vm851_vm7 }
 0x2af   :  { %v3832_v46 = vpop.eup %3831  ;;  %v831_v36 = vmul.f32 %v3830_v38, %v4640_v27  ;;  %v4675_v39 = vpop.xlane.xlu1 %424  ;;  %v454_v17 = vadd.f32 %v4642_v35, %v453_v6  ;;  %1418 = vmatpush.msrb.mxu2 %v4630_v9  ;;  %vm836_vm13 = vweird.f32 %v3830_v38  ;;  %vm490_vm14 = vcmp.eq.f32.partialorder %v489_v37, 8.507059e+37 }
 0x2b0   :  { %v816_v60 = vmul.f32 %v3832_v46, %v4648_v0  ;;  %v4681_v55 = vpop.xlane.xlu2 %430  ;;  %3833 = vrcp.f32 %v4675_v39  ;;  %1447 = vmatpush.msrb.mxu3 %v1107_v50  ;;  %v488_v1 = vsel %vm487_vm12, %v4632_v45, %v484_v29  ;;  %v824_v44 = vand.u32 2147483647, %v4648_v0  ;;  %vm837_vm1 = vmor %vm835_vm9, %vm836_vm13 }
 0x2b1   :  { %v832_v33 = vsub.f32 1.0, %v831_v36  ;;  %3835 = vrcp.f32 %v4681_v55  ;;  %v458_v23 = vsel %vm457_vm10, %v4642_v35, %v454_v17  ;;  %v493_v50 = vsel %vm490_vm14, %v492_v42, %v488_v1 }
 0x2b2   :  { %v817_v4 = vsub.f32 1.0, %v816_v60  ;;  %v463_v53 = vsel %vm460_vm11, %v462_v31, %v458_v23  ;;  %vm821_vm15 = vweird.f32 %v3832_v46  ;;  %vm820_vm0 = vweird.f32 %v4648_v0 }
 0x2b3   :  { %v833_v16 = vmul.f32 %v3830_v38, %v832_v33  ;;  %v464_v9 = vmul.f32 %v4479_v40, %v463_v53  ;;  %v842_v2 = vor.u32 1.1754944e-38, %v841_v15  ;;  %v494_v35 = vmul.f32 %v4481_v49, %v493_v50  ;;  %vm822_vm3 = vmor %vm820_vm0, %vm821_vm15 }
 0x2b4   :  { %v818_v26 = vmul.f32 %v3832_v46, %v817_v4  ;;  %v827_v31 = vor.u32 1.1754944e-38, %v826_v30  ;;  %vm840_vm2 = vcmp.eq.f32.partialorder %v839_v61, 8.507059e+37  ;;  %vm825_vm5 = vcmp.eq.f32.partialorder %v824_v44, 8.507059e+37 }
 0x2b5   :  { %v834_v47 = vadd.f32 %v3830_v38, %v833_v16  ;;  %3705 = vmatmul.msk.f32.gmra.mxu2 %vm362_vm4, %v464_v9  ;;  %3707 = vmatmul.msk.f32.gmra.mxu3 %vm362_vm4, %v494_v35  ;;  %v506_v60 = vand.u32 2147483648, %v4675_v39  ;;  %v504_v30 = vand.u32 2147483647, %v4675_v39  ;;  %vm500_vm7 = vweird.f32 %v4675_v39 }
 0x2b6   :  { %v3834_v6 = vpop.eup %3833  ;;  %v819_v45 = vadd.f32 %v3832_v46, %v818_v26  ;;  %v1097_v16 = vmul.f32 %v4181_v59, %v4220_v8  ;;  %v536_v1 = vand.u32 2147483648, %v4681_v55  ;;  %vm530_vm13 = vweird.f32 %v4681_v55 }
 0x2b7   :  { %v4711_v10 = vpop.eup %3835  ;;  %v838_v37 = vsel %vm837_vm1, %v3830_v38, %v834_v47  ;;  %v496_v36 = vmul.f32 %v3834_v6, %v4675_v39  ;;  %v854_v38 = vand.u32 2147483647, %v4542_v54  ;;  %vm501_vm9 = vweird.f32 %v3834_v6 }
 0x2b8   :  { %v843_v40 = vsel %vm840_vm2, %v842_v2, %v838_v37  ;;  %v526_v0 = vmul.f32 %v4711_v10, %v4681_v55  ;;  %v823_v27 = vsel %vm822_vm3, %v3832_v46, %v819_v45  ;;  %vm502_vm10 = vmor %vm500_vm7, %vm501_vm9  ;;  %v507_v23 = vor.u32 1.1754944e-38, %v506_v60  ;;  %v5589_v45 = vld [vmem:[#allocation21_spill] sm:$0xff] }
 0x2b9   :  { %v497_v49 = vsub.f32 1.0, %v496_v36  ;;  %v828_v42 = vsel %vm825_vm5, %v827_v31, %v823_v27  ;;  %v844_v17 = vmul.f32 %v4489_v63, %v843_v40  ;;  %v853_v63 = vsel %vm4726_vm6, %v4595_v12, %v4685_v3 }
 0x2ba   :  { %v527_v29 = vsub.f32 1.0, %v526_v0  ;;  %v829_v33 = vmul.f32 %v4491_v58, %v828_v42  ;;  %v857_v58 = vor.u32 1.1754944e-38, %v856_v48  ;;  %vm855_vm8 = vcmp.eq.f32.partialorder %v854_v38, 8.507059e+37 }
 0x2bb   :  { %v498_v46 = vmul.f32 %v3834_v6, %v497_v49  ;;  %3702 = vmatmul.msk.f32.vlgmr.msra.gmra.mxu1 %vm362_vm4, %v844_v17  ;;  %v1099_v12 = vmul.f32 %v4181_v59, %v4241_v19  ;;  %vm531_vm11 = vweird.f32 %v4711_v10  ;;  %vm505_vm12 = vcmp.eq.f32.partialorder %v504_v30, 8.507059e+37 }
 0x2bc   :  { %v528_v61 = vmul.f32 %v4711_v10, %v527_v29  ;;  %3701 = vmatmul.msk.f32.gmra.mxu0 %vm362_vm4, %v829_v33  ;;  %1196 = vmatpush.xpose.msra.mxu1 %v4287_v41  ;;  %v858_v54 = vsel %vm855_vm8, %v857_v58, %v853_v63  ;;  %v534_v26 = vand.u32 2147483647, %v4681_v55  ;;  %vm532_vm14 = vmor %vm530_vm13, %vm531_vm11  ;;  %v1110_v9 = vmul.f32 %v4181_v59, %v4407_v13  ;;  %v5590_v29 = vld [vmem:[#allocation22_spill] sm:$0xff]  ;;  %v5591_v33 = vld [vmem:[#allocation17_spill] sm:$0xff] }
 0x2bd   :  { %v499_v15 = vadd.f32 %v3834_v6, %v498_v46  ;;  %1129 = vmatmul.f32.vlgmr.msra.gmra.mxu2 %v1097_v16  ;;  %1152 = vmatmul.f32.vlgmr.msra.gmra.mxu3 %v1099_v12  ;;  %v859_v53 = vmul.f32 %v4467_v5, %v858_v54  ;;  %v537_v50 = vor.u32 1.1754944e-38, %v536_v1  ;;  %v1098_v5 = vmul.f32 %v4181_v59, %v4233_v14  ;;  %v5592_v63 = vld [vmem:[#allocation18_spill] sm:$0xff] }
 0x2be   :  { %v529_v48 = vadd.f32 %v4711_v10, %v528_v61  ;;  %1556 = vmatpush.xpose.msra.mxu2 %v4217_v7  ;;  %1579 = vmatpush.xpose.msra.mxu3 %v4238_v18  ;;  %vm535_vm15 = vcmp.eq.f32.partialorder %v534_v26, 8.507059e+37  ;;  %v1112_v35 = vmul.f32 %v4181_v59, %v4419_v34  ;;  %v1101_v4 = vmul.f32 %v4181_v59, %v5591_v33 }
 0x2bf   :  { %v503_v3 = vsel %vm502_vm10, %v3834_v6, %v499_v15  ;;  %v1100_v6 = vmul.f32 %v4181_v59, %v4251_v24  ;;  %v1102_v58 = vmul.f32 %v4181_v59, %v5592_v63 }
 0x2c0   :  { %v508_v39 = vsel %vm505_vm12, %v507_v23, %v503_v3  ;;  %1197 = vmatpush.xpose.msra.mxu1 %v4295_v43  ;;  %v533_v47 = vsel %vm532_vm14, %v4711_v10, %v529_v48  ;;  %v1111_v10 = vmul.f32 %v4181_v59, %v5589_v45 }
 0x2c1   :  { %v509_v44 = vmul.f32 %v4497_v57, %v508_v39  ;;  %v1109_v57 = vmul.f32 %v4181_v59, %v4409_v22  ;;  %v538_v55 = vsel %vm535_vm15, %v537_v50, %v533_v47 }
 0x2c2   :  { %1557 = vmatpush.xpose.msra.mxu2 %v4227_v11  ;;  %1580 = vmatpush.xpose.msra.mxu3 %v4245_v21  ;;  %v539_v2 = vmul.f32 %v4499_v56, %v538_v55 }
 0x2c3   :  { %3703 = vmatmul.msk.f32.gmra.mxu1 %vm362_vm4, %v859_v53 }
 0x2c4   :  { %3708 = vmatmul.msk.f32.vlgmr.msrb.gmra.mxu0 %vm362_vm4, %v509_v44 }
 0x2c5   :  { %1475 = vmatpush.msrb.mxu0 %v1110_v9  ;;  %1132 = vmatmul.f32.gmra.mxu2 %v1098_v5  ;;  %v5594_v5 = vld [vmem:[#allocation19_spill] sm:$0xff] }
 0x2c6   :  { %1155 = vmatmul.f32.gmra.mxu3 %v1100_v6 }
 0x2c7   :  { %1476 = vmatpush.msrb.mxu0 %v1109_v57  ;;  %v1103_v57 = vmul.f32 %v4181_v59, %v5594_v5 }
 0x2cb   :  { %3710 = vmatmul.msk.f32.vlgmr.msrb.gmra.mxu1 %vm362_vm4, %v539_v2  ;;  %v5596_v2 = vld [vmem:[#allocation20_spill] sm:$0xff] }
 0x2cc   :  { %1504 = vmatpush.msrb.mxu1 %v1112_v35 }
 0x2ce   :  { %1505 = vmatpush.msrb.mxu1 %v1111_v10 }
 0x2fe   :  { %v428_v31 = vpop.xlane.xlu0 %427 }
 0x2ff   :  { %3837 = vrcp.f32 %v428_v31  ;;  %v521_v0 = vand.u32 2147483648, %v428_v31  ;;  %v519_v49 = vand.u32 2147483647, %v428_v31  ;;  %vm515_vm1 = vweird.f32 %v428_v31 }
 0x301   :  { %v522_v42 = vor.u32 1.1754944e-38, %v521_v0  ;;  %vm520_vm3 = vcmp.eq.f32.partialorder %v519_v49, 8.507059e+37 }
 0x305   :  { %v3838_v37 = vpop.eup %3837 }
 0x306   :  { %v511_v36 = vmul.f32 %v3838_v37, %v428_v31  ;;  %vm516_vm0 = vweird.f32 %v3838_v37 }
 0x307   :  { %vm517_vm2 = vmor %vm515_vm1, %vm516_vm0 }
 0x308   :  { %v512_v40 = vsub.f32 1.0, %v511_v36 }
 0x30a   :  { %v513_v27 = vmul.f32 %v3838_v37, %v512_v40 }
 0x30c   :  { %v514_v56 = vadd.f32 %v3838_v37, %v513_v27 }
 0x30d   :  { %v4785_v15 = vpop.f32.mrf.mxu2 }
 0x30e   :  { %v518_v17 = vsel %vm517_vm2, %v3838_v37, %v514_v56 }
 0x30f   :  { %v523_v38 = vsel %vm520_vm3, %v522_v42, %v518_v17 }
 0x310   :  { %v524_v60 = vmul.f32 %v5590_v29, %v523_v38 }
 0x312   :  { %3709 = vmatmul.msk.f32.gmra.mxu0 %vm362_vm4, %v524_v60 }
 0x318   :  { %v434_v46 = vpop.xlane.xlu1 %433 }
 0x319   :  { %3839 = vrcp.f32 %v434_v46  ;;  %v551_v12 = vand.u32 2147483648, %v434_v46  ;;  %v549_v48 = vand.u32 2147483647, %v434_v46  ;;  %vm545_vm6 = vweird.f32 %v434_v46 }
 0x31a   :  { %1175 = vmatmul.f32.vlgmr.msra.gmra.mxu0 %v1101_v4 }
 0x31b   :  { %1602 = vmatpush.xpose.msra.mxu0 %v4258_v28  ;;  %v552_v1 = vor.u32 1.1754944e-38, %v551_v12  ;;  %vm550_vm7 = vcmp.eq.f32.partialorder %v549_v48, 8.507059e+37 }
 0x31e   :  { %v4781_v30 = vpop.f32.mrf.mxu3 }
 0x31f   :  { %1603 = vmatpush.xpose.msra.mxu0 %v4270_v32  ;;  %v3840_v61 = vpop.eup %3839  ;;  %v4811_v49 = vpop.f32.mrf.mxu0 }
 0x320   :  { %v541_v16 = vmul.f32 %v3840_v61, %v434_v46  ;;  %vm546_vm5 = vweird.f32 %v3840_v61  ;;  %5597 = vst [vmem:[#allocation17_spill] sm:$0xff] %v4811_v49 }
 0x321   :  { %vm547_vm9 = vmor %vm545_vm6, %vm546_vm5 }
 0x322   :  { %1178 = vmatmul.f32.gmra.mxu0 %v1102_v58  ;;  %v542_v23 = vsub.f32 1.0, %v541_v16 }
 0x324   :  { %v543_v54 = vmul.f32 %v3840_v61, %v542_v23 }
 0x326   :  { %v544_v3 = vadd.f32 %v3840_v61, %v543_v54 }
 0x327   :  { %v4787_v39 = vpop.f32.mrf.mxu2 }
 0x328   :  { %v4789_v26 = vpop.f32.mrf.mxu3  ;;  %v548_v53 = vsel %vm547_vm9, %v3840_v61, %v544_v3 }
 0x329   :  { %5593 = vst [vmem:[#allocation21_spill] sm:$0xff] %v4789_v26  ;;  %v553_v44 = vsel %vm550_vm7, %v552_v1, %v548_v53 }
 0x32a   :  { %v554_v47 = vmul.f32 %v4621_v62, %v553_v44  ;;  %v1104_v62 = vmul.f32 %v4181_v59, %v5596_v2 }
 0x32c   :  { %3711 = vmatmul.msk.f32.gmra.mxu1 %vm362_vm4, %v554_v47 }
 0x32f   :  { %v4793_v9 = vpop.f32.mrf.mxu2 }
 0x330   :  { %v4795_v50 = vpop.f32.mrf.mxu3 }
 0x334   :  { %1198 = vmatmul.f32.vlgmr.msra.gmra.mxu1 %v1103_v57 }
 0x335   :  { %1625 = vmatpush.xpose.msra.mxu1 %v4287_v41 }
 0x338   :  { %v4800_v55 = vpop.f32.mrf.mxu2  ;;  %v4802_v6 = vpop.f32.mrf.mxu3 }
 0x339   :  { %5595 = vst [vmem:[#allocation22_spill] sm:$0xff] %v4802_v6  ;;  %1626 = vmatpush.xpose.msra.mxu1 %v4295_v43  ;;  %v4813_v59 = vpop.f32.mrf.mxu0  ;;  %v4817_v42 = vpop.f32.mrf.mxu1 }
 0x33a   :  { %5598 = vst [vmem:[#allocation18_spill] sm:$0xff] %v4813_v59 }
 0x33b   :  { %5600 = vst [vmem:[#allocation20_spill] sm:$0xff] %v4817_v42 }
 0x33c   :  { %1201 = vmatmul.f32.gmra.mxu1 %v1104_v62 }
 0x340   :  { %v1130_v35 = vpop.f32.mrf.mxu2  ;;  %v1153_v10 = vpop.f32.mrf.mxu3 }
 0x341   :  { %v1205_v31 = vsel %vm362_vm4, %v1130_v35, -inf  ;;  %v1211_v37 = vsel %vm362_vm4, %v1153_v10, -inf  ;;  %v4815_v56 = vpop.f32.mrf.mxu0  ;;  %v4822_v60 = vpop.f32.mrf.mxu1 }
 0x342   :  { %1206 = vmax.xlane.f32.xlu2 %v1205_v31  ;;  %1212 = vmax.xlane.f32.xlu0 %v1211_v37  ;;  %5599 = vst [vmem:[#allocation19_spill] sm:$0xff] %v4815_v56 }
 0x343   :  { %5602 = vst [vmem:[#allocation24_spill] sm:$0xff] %v4822_v60 }
 0x348   :  { %v1133_v36 = vpop.f32.mrf.mxu2 }
 0x349   :  { %v1156_v40 = vpop.f32.mrf.mxu3  ;;  %v1208_v0 = vsel %vm362_vm4, %v1133_v36, -inf  ;;  %v4825_v58 = vpop.f32.mrf.mxu1 }
 0x34a   :  { %v1214_v27 = vsel %vm362_vm4, %v1156_v40, -inf  ;;  %1209 = vmax.xlane.f32.xlu1 %v1208_v0  ;;  %5603 = vst [vmem:[#allocation25_spill] sm:$0xff] %v4825_v58 }
 0x34b   :  { %1215 = vmax.xlane.f32.xlu2 %v1214_v27 }
 0x38f   :  { %v4819_v17 = vpop.f32.mrf.mxu0 }
 0x390   :  { %5601 = vst [vmem:[#allocation23_spill] sm:$0xff] %v4819_v17 }
 0x397   :  { %v1176_v38 = vpop.f32.mrf.mxu0 }
 0x398   :  { %v1217_v29 = vsel %vm362_vm4, %v1176_v38, -inf }
 0x399   :  { %1218 = vmax.xlane.f32.xlu0 %v1217_v29 }
 0x39f   :  { %v1179_v4 = vpop.f32.mrf.mxu0 }
 0x3a0   :  { %v1220_v46 = vsel %vm362_vm4, %v1179_v4, -inf }
 0x3a1   :  { %1221 = vmax.xlane.f32.xlu2 %v1220_v46 }
 0x3a9   :  { %v4827_v61 = vpop.f32.mrf.mxu1 }
 0x3aa   :  { %5604 = vst [vmem:[#allocation26_spill] sm:$0xff] %v4827_v61 }
 0x3b1   :  { %v1199_v16 = vpop.f32.mrf.mxu1 }
 0x3b2   :  { %v1223_v23 = vsel %vm362_vm4, %v1199_v16, -inf }
 0x3b3   :  { %1224 = vmax.xlane.f32.xlu1 %v1223_v23 }
 0x3b5   :  { %v1207_v12 = vpop.xlane.xlu2 %1206  ;;  %v1213_v54 = vpop.xlane.xlu0 %1212 }
 0x3b6   :  { %v1229_v48 = vsub.f32 %v1130_v35, %v1207_v12  ;;  %v1231_v3 = vsub.f32 %v1153_v10, %v1213_v54 }
 0x3b8   :  { %v1237_v1 = vmul.f32 1.442695, %v1229_v48  ;;  %v1241_v53 = vmul.f32 1.442695, %v1231_v3 }
 0x3b9   :  { %v1202_v44 = vpop.f32.mrf.mxu1 }
 0x3ba   :  { %3841 = vpow2.f32 %v1237_v1  ;;  %v1226_v47 = vsel %vm362_vm4, %v1202_v44, -inf }
 0x3bb   :  { %3843 = vpow2.f32 %v1241_v53  ;;  %1227 = vmax.xlane.f32.xlu0 %v1226_v47 }
 0x3bd   :  { %v1210_v57 = vpop.xlane.xlu1 %1209 }
 0x3be   :  { %v1216_v62 = vpop.xlane.xlu2 %1215  ;;  %v1230_v31 = vsub.f32 %v1133_v36, %v1210_v57 }
 0x3bf   :  { %v1232_v37 = vsub.f32 %v1156_v40, %v1216_v62 }
 0x3c0   :  { %v4831_v0 = vpop.eup %3841  ;;  %v1239_v27 = vmul.f32 1.442695, %v1230_v31 }
 0x3c1   :  { %v4833_v29 = vpop.eup %3843  ;;  %v1243_v46 = vmul.f32 1.442695, %v1232_v37  ;;  %v1253_v35 = vsel %vm362_vm4, %v4831_v0, 0.0 }
 0x3c2   :  { %3845 = vpow2.f32 %v1239_v27  ;;  %v1259_v10 = vsel %vm362_vm4, %v4833_v29, 0.0  ;;  %1254 = vadd.xlane.f32.xlu1 %v1253_v35 }
 0x3c3   :  { %3847 = vpow2.f32 %v1243_v46  ;;  %1260 = vadd.xlane.f32.xlu2 %v1259_v10 }
 0x3c8   :  { %v4839_v23 = vpop.eup %3845 }
 0x3c9   :  { %v4841_v36 = vpop.eup %3847  ;;  %v1256_v40 = vsel %vm362_vm4, %v4839_v23, 0.0 }
 0x3ca   :  { %v1262_v12 = vsel %vm362_vm4, %v4841_v36, 0.0  ;;  %1257 = vadd.xlane.f32.xlu0 %v1256_v40 }
 0x3cb   :  { %1263 = vadd.xlane.f32.xlu1 %v1262_v12 }
 0x40c   :  { %v1219_v54 = vpop.xlane.xlu0 %1218 }
 0x40d   :  { %v1233_v48 = vsub.f32 %v1176_v38, %v1219_v54 }
 0x40f   :  { %v1245_v3 = vmul.f32 1.442695, %v1233_v48 }
 0x411   :  { %3849 = vpow2.f32 %v1245_v3 }
 0x414   :  { %v1222_v1 = vpop.xlane.xlu2 %1221 }
 0x415   :  { %v1234_v53 = vsub.f32 %v1179_v4, %v1222_v1 }
 0x417   :  { %v4847_v47 = vpop.eup %3849  ;;  %v1247_v57 = vmul.f32 1.442695, %v1234_v53 }
 0x418   :  { %v1265_v62 = vsel %vm362_vm4, %v4847_v47, 0.0 }
 0x419   :  { %3851 = vpow2.f32 %v1247_v57  ;;  %1266 = vadd.xlane.f32.xlu2 %v1265_v62 }
 0x41f   :  { %v4851_v31 = vpop.eup %3851 }
 0x420   :  { %v1268_v37 = vsel %vm362_vm4, %v4851_v31, 0.0 }
 0x421   :  { %1269 = vadd.xlane.f32.xlu1 %v1268_v37 }
 0x426   :  { %v1225_v27 = vpop.xlane.xlu1 %1224 }
 0x427   :  { %v1235_v38 = vsub.f32 %v1199_v16, %v1225_v27 }
 0x429   :  { %v1249_v46 = vmul.f32 1.442695, %v1235_v38 }
 0x42b   :  { %3853 = vpow2.f32 %v1249_v46 }
 0x42e   :  { %v1228_v35 = vpop.xlane.xlu0 %1227 }
 0x42f   :  { %v1236_v4 = vsub.f32 %v1202_v44, %v1228_v35 }
 0x431   :  { %v4855_v10 = vpop.eup %3853  ;;  %v1251_v40 = vmul.f32 1.442695, %v1236_v4 }
 0x432   :  { %v1271_v12 = vsel %vm362_vm4, %v4855_v10, 0.0 }
 0x433   :  { %3855 = vpow2.f32 %v1251_v40  ;;  %1272 = vadd.xlane.f32.xlu0 %v1271_v12 }
 0x435   :  { %v1255_v54 = vpop.xlane.xlu1 %1254 }
 0x436   :  { %v1261_v48 = vpop.xlane.xlu2 %1260  ;;  %3857 = vrcp.f32 %v1255_v54  ;;  %v1288_v46 = vand.u32 2147483648, %v1255_v54  ;;  %v1286_v40 = vand.u32 2147483647, %v1255_v54  ;;  %vm1282_vm11 = vweird.f32 %v1255_v54 }
 0x437   :  { %3859 = vrcp.f32 %v1261_v48  ;;  %v1318_v35 = vand.u32 2147483648, %v1261_v48  ;;  %vm1312_vm12 = vweird.f32 %v1261_v48 }
 0x438   :  { %v1289_v42 = vor.u32 1.1754944e-38, %v1288_v46  ;;  %vm1287_vm15 = vcmp.eq.f32.partialorder %v1286_v40, 8.507059e+37 }
 0x439   :  { %v4859_v3 = vpop.eup %3855 }
 0x43a   :  { %v1274_v16 = vsel %vm362_vm4, %v4859_v3, 0.0 }
 0x43b   :  { %1275 = vadd.xlane.f32.xlu2 %v1274_v16  ;;  %v1316_v16 = vand.u32 2147483647, %v1261_v48 }
 0x43c   :  { %v3858_v1 = vpop.eup %3857 }
 0x43d   :  { %v3860_v44 = vpop.eup %3859  ;;  %v1278_v53 = vmul.f32 %v3858_v1, %v1255_v54  ;;  %v4863_v57 = vpop.xlane.xlu0 %1257  ;;  %vm1283_vm8 = vweird.f32 %v3858_v1  ;;  %vm1317_vm0 = vcmp.eq.f32.partialorder %v1316_v16, 8.507059e+37 }
 0x43e   :  { %v1308_v62 = vmul.f32 %v3860_v44, %v1261_v48  ;;  %3861 = vrcp.f32 %v4863_v57  ;;  %v4866_v37 = vpop.xlane.xlu1 %1263  ;;  %vm1313_vm10 = vweird.f32 %v3860_v44  ;;  %vm1284_vm13 = vmor %vm1282_vm11, %vm1283_vm8  ;;  %v5605_v48 = vld [vmem:[#allocation12_spill] sm:$0xff]  ;;  %v1303_v46 = vand.u32 2147483648, %v4863_v57 }
 0x43f   :  { %v1279_v27 = vsub.f32 1.0, %v1278_v53  ;;  %3863 = vrcp.f32 %v4866_v37  ;;  %vm1314_vm14 = vmor %vm1312_vm12, %vm1313_vm10  ;;  %v1319_v53 = vor.u32 1.1754944e-38, %v1318_v35  ;;  %vm1297_vm3 = vweird.f32 %v4863_v57 }
 0x440   :  { %v1309_v38 = vsub.f32 1.0, %v1308_v62  ;;  %v1304_v35 = vor.u32 1.1754944e-38, %v1303_v46  ;;  %vm1327_vm5 = vweird.f32 %v4866_v37 }
 0x441   :  { %v1280_v4 = vmul.f32 %v3858_v1, %v1279_v27 }
 0x442   :  { %v1310_v12 = vmul.f32 %v3860_v44, %v1309_v38 }
 0x443   :  { %v1281_v61 = vadd.f32 %v3858_v1, %v1280_v4 }
 0x444   :  { %v3862_v60 = vpop.eup %3861  ;;  %v1311_v58 = vadd.f32 %v3860_v44, %v1310_v12  ;;  %v1535_v12 = vmul.f32 %v5605_v48, %v4377_v51 }
 0x445   :  { %v3864_v17 = vpop.eup %3863  ;;  %v1285_v59 = vsel %vm1284_vm13, %v3858_v1, %v1281_v61  ;;  %v1293_v62 = vmul.f32 %v3862_v60, %v4863_v57  ;;  %v1537_v1 = vmul.f32 %v5605_v48, %v4397_v25  ;;  %vm1298_vm1 = vweird.f32 %v3862_v60 }
 0x446   :  { %v1315_v27 = vsel %vm1314_vm14, %v3860_v44, %v1311_v58  ;;  %v1290_v56 = vsel %vm1287_vm15, %v1289_v42, %v1285_v59  ;;  %v1323_v38 = vmul.f32 %v3864_v17, %v4866_v37  ;;  %v1333_v59 = vand.u32 2147483648, %v4866_v37  ;;  %vm1299_vm6 = vmor %vm1297_vm3, %vm1298_vm1 }
 0x447   :  { %v1320_v49 = vsel %vm1317_vm0, %v1319_v53, %v1315_v27  ;;  %v1294_v4 = vsub.f32 1.0, %v1293_v62  ;;  %v1291_v54 = vmul.f32 %v4831_v0, %v1290_v56  ;;  %v1301_v42 = vand.u32 2147483647, %v4863_v57 }
 0x448   :  { %v1324_v6 = vsub.f32 1.0, %v1323_v38  ;;  %v1321_v61 = vmul.f32 %v4833_v29, %v1320_v49  ;;  %v1534_v0 = vmul.f32 %v5605_v48, %v4379_v52  ;;  %vm1328_vm2 = vweird.f32 %v3864_v17 }
 0x449   :  { %v1295_v58 = vmul.f32 %v3862_v60, %v1294_v4  ;;  %3713 = vmatmul.msk.f32.vlgmr.msrb.gmra.mxu2 %vm362_vm4, %v1291_v54  ;;  %v1331_v49 = vand.u32 2147483647, %v4866_v37  ;;  %v1536_v29 = vmul.f32 %v5605_v48, %v4395_v20  ;;  %v1334_v40 = vor.u32 1.1754944e-38, %v1333_v59  ;;  %vm1329_vm7 = vmor %vm1327_vm5, %vm1328_vm2 }
 0x44a   :  { %v1325_v56 = vmul.f32 %v3864_v17, %v1324_v6  ;;  %3715 = vmatmul.msk.f32.vlgmr.msrb.gmra.mxu3 %vm362_vm4, %v1321_v61  ;;  %1846 = vmatpush.msrb.mxu2 %v1535_v12  ;;  %vm1302_vm9 = vcmp.eq.f32.partialorder %v1301_v42, 8.507059e+37  ;;  %v1526_v37 = vmul.f32 %v5605_v48, %v4220_v8 }
 0x44b   :  { %1875 = vmatpush.msrb.mxu3 %v1537_v1  ;;  %v1296_v44 = vadd.f32 %v3862_v60, %v1295_v58  ;;  %vm1332_vm8 = vcmp.eq.f32.partialorder %v1331_v49, 8.507059e+37 }
 0x44c   :  { %1847 = vmatpush.msrb.mxu2 %v1534_v0  ;;  %v1326_v6 = vadd.f32 %v3864_v17, %v1325_v56 }
 0x44d   :  { %1876 = vmatpush.msrb.mxu3 %v1536_v29  ;;  %v1300_v16 = vsel %vm1299_vm6, %v3862_v60, %v1296_v44  ;;  %v1528_v60 = vmul.f32 %v5605_v48, %v4241_v19 }
 0x44e   :  { %v1305_v53 = vsel %vm1302_vm9, %v1304_v35, %v1300_v16  ;;  %v1330_v57 = vsel %vm1329_vm7, %v3864_v17, %v1326_v6  ;;  %v1527_v17 = vmul.f32 %v5605_v48, %v4233_v14 }
 0x44f   :  { %v1306_v62 = vmul.f32 %v4839_v23, %v1305_v53  ;;  %v1335_v27 = vsel %vm1332_vm8, %v1334_v40, %v1330_v57  ;;  %v1529_v23 = vmul.f32 %v5605_v48, %v4251_v24  ;;  %v1539_v40 = vmul.f32 %v5605_v48, %v4407_v13 }
 0x450   :  { %v1336_v38 = vmul.f32 %v4841_v36, %v1335_v27  ;;  %v1538_v57 = vmul.f32 %v5605_v48, %v4409_v22 }
 0x451   :  { %3714 = vmatmul.msk.f32.gmra.mxu2 %vm362_vm4, %v1306_v62 }
 0x452   :  { %3716 = vmatmul.msk.f32.gmra.mxu3 %vm362_vm4, %v1336_v38 }
 0x459   :  { %1558 = vmatmul.f32.vlgmr.msra.gmra.mxu2 %v1526_v37 }
 0x45a   :  { %1581 = vmatmul.f32.vlgmr.msra.gmra.mxu3 %v1528_v60  ;;  %1985 = vmatpush.xpose.msra.mxu2 %v4217_v7 }
 0x45b   :  { %2008 = vmatpush.xpose.msra.mxu3 %v4238_v18 }
 0x45e   :  { %1986 = vmatpush.xpose.msra.mxu2 %v4227_v11 }
 0x45f   :  { %2009 = vmatpush.xpose.msra.mxu3 %v4245_v21 }
 0x461   :  { %1561 = vmatmul.f32.gmra.mxu2 %v1527_v17  ;;  %v1530_v17 = vmul.f32 %v5605_v48, %v5591_v33 }
 0x462   :  { %1584 = vmatmul.f32.gmra.mxu3 %v1529_v23 }
 0x48c   :  { %v1267_v36 = vpop.xlane.xlu2 %1266 }
 0x48d   :  { %3865 = vrcp.f32 %v1267_v36  ;;  %v1348_v61 = vand.u32 2147483648, %v1267_v36  ;;  %v1346_v58 = vand.u32 2147483647, %v1267_v36  ;;  %vm1342_vm11 = vweird.f32 %v1267_v36 }
 0x48f   :  { %v1349_v56 = vor.u32 1.1754944e-38, %v1348_v61  ;;  %vm1347_vm13 = vcmp.eq.f32.partialorder %v1346_v58, 8.507059e+37 }
 0x493   :  { %v3866_v4 = vpop.eup %3865 }
 0x494   :  { %v1338_v54 = vmul.f32 %v3866_v4, %v1267_v36  ;;  %v1270_v12 = vpop.xlane.xlu1 %1269  ;;  %vm1343_vm10 = vweird.f32 %v3866_v4 }
 0x495   :  { %3867 = vrcp.f32 %v1270_v12  ;;  %vm1344_vm12 = vmor %vm1342_vm11, %vm1343_vm10  ;;  %v1363_v6 = vand.u32 2147483648, %v1270_v12  ;;  %v1361_v53 = vand.u32 2147483647, %v1270_v12  ;;  %vm1357_vm15 = vweird.f32 %v1270_v12 }
 0x496   :  { %v1339_v46 = vsub.f32 1.0, %v1338_v54 }
 0x497   :  { %v1364_v27 = vor.u32 1.1754944e-38, %v1363_v6  ;;  %vm1362_vm1 = vcmp.eq.f32.partialorder %v1361_v53, 8.507059e+37 }
 0x498   :  { %v1340_v1 = vmul.f32 %v3866_v4, %v1339_v46 }
 0x49a   :  { %v1341_v59 = vadd.f32 %v3866_v4, %v1340_v1  ;;  %v1531_v1 = vmul.f32 %v5605_v48, %v5592_v63 }
 0x49b   :  { %v3868_v42 = vpop.eup %3867 }
 0x49c   :  { %v1345_v0 = vsel %vm1344_vm12, %v3866_v4, %v1341_v59  ;;  %v1353_v49 = vmul.f32 %v3868_v42, %v1270_v12  ;;  %vm1358_vm14 = vweird.f32 %v3868_v42 }
 0x49d   :  { %v1350_v29 = vsel %vm1347_vm13, %v1349_v56, %v1345_v0  ;;  %vm1359_vm0 = vmor %vm1357_vm15, %vm1358_vm14 }
 0x49e   :  { %v1354_v44 = vsub.f32 1.0, %v1353_v49  ;;  %v1351_v35 = vmul.f32 %v4847_v47, %v1350_v29 }
 0x4a0   :  { %v1355_v16 = vmul.f32 %v3868_v42, %v1354_v44  ;;  %3717 = vmatmul.msk.f32.vlgmr.msrb.gmra.mxu0 %vm362_vm4, %v1351_v35  ;;  %v1541_v35 = vmul.f32 %v5605_v48, %v4419_v34 }
 0x4a1   :  { %1904 = vmatpush.msrb.mxu0 %v1539_v40 }
 0x4a2   :  { %v1356_v62 = vadd.f32 %v3868_v42, %v1355_v16  ;;  %v1540_v16 = vmul.f32 %v5605_v48, %v5589_v45 }
 0x4a3   :  { %1905 = vmatpush.msrb.mxu0 %v1538_v57 }
 0x4a4   :  { %v1360_v38 = vsel %vm1359_vm0, %v3868_v42, %v1356_v62 }
 0x4a5   :  { %v1365_v47 = vsel %vm1362_vm1, %v1364_v27, %v1360_v38  ;;  %v1532_v38 = vmul.f32 %v5605_v48, %v5594_v5 }
 0x4a6   :  { %v1366_v37 = vmul.f32 %v4851_v31, %v1365_v47  ;;  %v1273_v60 = vpop.xlane.xlu0 %1272 }
 0x4a7   :  { %3869 = vrcp.f32 %v1273_v60  ;;  %v1378_v12 = vand.u32 2147483648, %v1273_v60  ;;  %v1376_v61 = vand.u32 2147483647, %v1273_v60  ;;  %vm1372_vm3 = vweird.f32 %v1273_v60 }
 0x4a8   :  { %3718 = vmatmul.msk.f32.gmra.mxu0 %vm362_vm4, %v1366_v37 }
 0x4a9   :  { %v1379_v59 = vor.u32 1.1754944e-38, %v1378_v12  ;;  %vm1377_vm6 = vcmp.eq.f32.partialorder %v1376_v61, 8.507059e+37 }
 0x4ad   :  { %v3870_v23 = vpop.eup %3869 }
 0x4ae   :  { %v1368_v36 = vmul.f32 %v3870_v23, %v1273_v60  ;;  %v1276_v4 = vpop.xlane.xlu2 %1275  ;;  %vm1373_vm2 = vweird.f32 %v3870_v23  ;;  %v1533_v60 = vmul.f32 %v5605_v48, %v5596_v2 }
 0x4af   :  { %3871 = vrcp.f32 %v1276_v4  ;;  %vm1374_vm5 = vmor %vm1372_vm3, %vm1373_vm2  ;;  %v1393_v44 = vand.u32 2147483648, %v1276_v4  ;;  %v1391_v40 = vand.u32 2147483647, %v1276_v4  ;;  %vm1387_vm7 = vweird.f32 %v1276_v4 }
 0x4b0   :  { %1604 = vmatmul.f32.vlgmr.msra.gmra.mxu0 %v1530_v17  ;;  %v1369_v54 = vsub.f32 1.0, %v1368_v36 }
 0x4b1   :  { %2031 = vmatpush.xpose.msra.mxu0 %v4258_v28  ;;  %v1394_v57 = vor.u32 1.1754944e-38, %v1393_v44  ;;  %vm1392_vm10 = vcmp.eq.f32.partialorder %v1391_v40, 8.507059e+37 }
 0x4b2   :  { %v1370_v46 = vmul.f32 %v3870_v23, %v1369_v54 }
 0x4b4   :  { %v1371_v31 = vadd.f32 %v3870_v23, %v1370_v46 }
 0x4b5   :  { %2032 = vmatpush.xpose.msra.mxu0 %v4270_v32  ;;  %v3872_v58 = vpop.eup %3871 }
 0x4b6   :  { %v1375_v42 = vsel %vm1374_vm5, %v3870_v23, %v1371_v31  ;;  %v1383_v56 = vmul.f32 %v3872_v58, %v1276_v4  ;;  %vm1388_vm9 = vweird.f32 %v3872_v58 }
 0x4b7   :  { %v1380_v0 = vsel %vm1377_vm6, %v1379_v59, %v1375_v42  ;;  %vm1389_vm8 = vmor %vm1387_vm7, %vm1388_vm9 }
 0x4b8   :  { %1607 = vmatmul.f32.gmra.mxu0 %v1531_v1  ;;  %v1384_v49 = vsub.f32 1.0, %v1383_v56  ;;  %v1381_v29 = vmul.f32 %v4855_v10, %v1380_v0 }
 0x4ba   :  { %v1385_v6 = vmul.f32 %v3872_v58, %v1384_v49  ;;  %3719 = vmatmul.msk.f32.vlgmr.msrb.gmra.mxu1 %vm362_vm4, %v1381_v29 }
 0x4bb   :  { %1933 = vmatpush.msrb.mxu1 %v1541_v35 }
 0x4bc   :  { %v1386_v53 = vadd.f32 %v3872_v58, %v1385_v6 }
 0x4bd   :  { %1934 = vmatpush.msrb.mxu1 %v1540_v16 }
 0x4be   :  { %v1390_v62 = vsel %vm1389_vm8, %v3872_v58, %v1386_v53 }
 0x4bf   :  { %v1395_v10 = vsel %vm1392_vm10, %v1394_v57, %v1390_v62 }
 0x4c0   :  { %v1396_v27 = vmul.f32 %v4859_v3, %v1395_v10 }
 0x4c2   :  { %3720 = vmatmul.msk.f32.gmra.mxu1 %vm362_vm4, %v1396_v27 }
 0x4ca   :  { %1627 = vmatmul.f32.vlgmr.msra.gmra.mxu1 %v1532_v38 }
 0x4cb   :  { %2054 = vmatpush.xpose.msra.mxu1 %v4287_v41 }
 0x4cc   :  { %v4932_v47 = vpop.f32.mrf.mxu2 }
 0x4cd   :  { %v4934_v37 = vpop.f32.mrf.mxu3 }
 0x4cf   :  { %2055 = vmatpush.xpose.msra.mxu1 %v4295_v43 }
 0x4d2   :  { %1630 = vmatmul.f32.gmra.mxu1 %v1533_v60 }
 0x4d4   :  { %v4939_v17 = vpop.f32.mrf.mxu2 }
 0x4d5   :  { %5606 = vst [vmem:[#allocation12_spill] sm:$0xff] %v4939_v17  ;;  %v4941_v3 = vpop.f32.mrf.mxu3 }
 0x4d6   :  { %5607 = vst [vmem:[#allocation27_spill] sm:$0xff] %v4941_v3 }
 0x4dc   :  { %v1559_v23 = vpop.f32.mrf.mxu2 }
 0x4dd   :  { %v1582_v36 = vpop.f32.mrf.mxu3  ;;  %v1634_v4 = vsel %vm362_vm4, %v1559_v23, -inf }
 0x4de   :  { %1635 = vmax.xlane.f32.xlu0 %v1634_v4  ;;  %v1640_v54 = vsel %vm362_vm4, %v1582_v36, -inf }
 0x4df   :  { %1641 = vmax.xlane.f32.xlu1 %v1640_v54 }
 0x4e4   :  { %v1562_v12 = vpop.f32.mrf.mxu2 }
 0x4e5   :  { %v1585_v46 = vpop.f32.mrf.mxu3  ;;  %v1637_v61 = vsel %vm362_vm4, %v1562_v12, -inf }
 0x4e6   :  { %1638 = vmax.xlane.f32.xlu2 %v1637_v61  ;;  %v1643_v48 = vsel %vm362_vm4, %v1585_v46, -inf }
 0x4e7   :  { %1644 = vmax.xlane.f32.xlu0 %v1643_v48 }
 0x51d   :  { %v4947_v31 = vpop.f32.mrf.mxu0 }
 0x51e   :  { %5608 = vst [vmem:[#allocation28_spill] sm:$0xff] %v4947_v31 }
 0x525   :  { %v4949_v1 = vpop.f32.mrf.mxu0 }
 0x526   :  { %5609 = vst [vmem:[#allocation29_spill] sm:$0xff] %v4949_v1 }
 0x52d   :  { %v1605_v58 = vpop.f32.mrf.mxu0 }
 0x52e   :  { %v1646_v59 = vsel %vm362_vm4, %v1605_v58, -inf }
 0x52f   :  { %1647 = vmax.xlane.f32.xlu1 %v1646_v59 }
 0x535   :  { %v1608_v42 = vpop.f32.mrf.mxu0 }
 0x536   :  { %v1649_v56 = vsel %vm362_vm4, %v1608_v42, -inf }
 0x537   :  { %1650 = vmax.xlane.f32.xlu0 %v1649_v56  ;;  %v4953_v0 = vpop.f32.mrf.mxu1 }
 0x538   :  { %5610 = vst [vmem:[#allocation30_spill] sm:$0xff] %v4953_v0 }
 0x53f   :  { %v4955_v49 = vpop.f32.mrf.mxu1 }
 0x540   :  { %5611 = vst [vmem:[#allocation31_spill] sm:$0xff] %v4955_v49 }
 0x547   :  { %v1628_v29 = vpop.f32.mrf.mxu1 }
 0x548   :  { %v1652_v44 = vsel %vm362_vm4, %v1628_v29, -inf }
 0x549   :  { %1653 = vmax.xlane.f32.xlu2 %v1652_v44 }
 0x54f   :  { %v1631_v35 = vpop.f32.mrf.mxu1 }
 0x550   :  { %v1655_v40 = vsel %vm362_vm4, %v1631_v35, -inf }
 0x551   :  { %v1636_v6 = vpop.xlane.xlu0 %1635  ;;  %1656 = vmax.xlane.f32.xlu1 %v1655_v40 }
 0x552   :  { %v1658_v16 = vsub.f32 %v1559_v23, %v1636_v6  ;;  %v1642_v53 = vpop.xlane.xlu1 %1641 }
 0x553   :  { %v1660_v57 = vsub.f32 %v1582_v36, %v1642_v53 }
 0x554   :  { %v1666_v62 = vmul.f32 1.442695, %v1658_v16 }
 0x555   :  { %v1670_v10 = vmul.f32 1.442695, %v1660_v57 }
 0x556   :  { %3873 = vpow2.f32 %v1666_v62 }
 0x557   :  { %3875 = vpow2.f32 %v1670_v10 }
 0x559   :  { %v1639_v27 = vpop.xlane.xlu2 %1638 }
 0x55a   :  { %v1659_v38 = vsub.f32 %v1562_v12, %v1639_v27  ;;  %v1645_v60 = vpop.xlane.xlu0 %1644 }
 0x55b   :  { %v1661_v4 = vsub.f32 %v1585_v46, %v1645_v60 }
 0x55c   :  { %v4959_v54 = vpop.eup %3873  ;;  %v1668_v61 = vmul.f32 1.442695, %v1659_v38 }
 0x55d   :  { %v4961_v48 = vpop.eup %3875  ;;  %v1672_v59 = vmul.f32 1.442695, %v1661_v4  ;;  %v1682_v23 = vsel %vm362_vm4, %v4959_v54, 0.0 }
 0x55e   :  { %3877 = vpow2.f32 %v1668_v61  ;;  %1683 = vadd.xlane.f32.xlu2 %v1682_v23  ;;  %v1688_v36 = vsel %vm362_vm4, %v4961_v48, 0.0 }
 0x55f   :  { %3879 = vpow2.f32 %v1672_v59  ;;  %1689 = vadd.xlane.f32.xlu0 %v1688_v36 }
 0x564   :  { %v4967_v56 = vpop.eup %3877 }
 0x565   :  { %v4969_v12 = vpop.eup %3879  ;;  %v1685_v46 = vsel %vm362_vm4, %v4967_v56, 0.0 }
 0x566   :  { %v1691_v44 = vsel %vm362_vm4, %v4969_v12, 0.0  ;;  %1686 = vadd.xlane.f32.xlu1 %v1685_v46 }
 0x567   :  { %1692 = vadd.xlane.f32.xlu2 %v1691_v44 }
 0x5a2   :  { %v1648_v6 = vpop.xlane.xlu1 %1647 }
 0x5a3   :  { %v1662_v40 = vsub.f32 %v1605_v58, %v1648_v6 }
 0x5a5   :  { %v1674_v16 = vmul.f32 1.442695, %v1662_v40 }
 0x5a7   :  { %3881 = vpow2.f32 %v1674_v16 }
 0x5aa   :  { %v1651_v53 = vpop.xlane.xlu0 %1650 }
 0x5ab   :  { %v1663_v57 = vsub.f32 %v1608_v42, %v1651_v53 }
 0x5ad   :  { %v4975_v62 = vpop.eup %3881  ;;  %v1676_v10 = vmul.f32 1.442695, %v1663_v57 }
 0x5ae   :  { %v1694_v27 = vsel %vm362_vm4, %v4975_v62, 0.0 }
 0x5af   :  { %3883 = vpow2.f32 %v1676_v10  ;;  %1695 = vadd.xlane.f32.xlu0 %v1694_v27 }
 0x5b5   :  { %v4979_v38 = vpop.eup %3883 }
 0x5b6   :  { %v1697_v60 = vsel %vm362_vm4, %v4979_v38, 0.0 }
 0x5b7   :  { %1698 = vadd.xlane.f32.xlu2 %v1697_v60 }
 0x5bc   :  { %v1654_v4 = vpop.xlane.xlu2 %1653 }
 0x5bd   :  { %v1664_v58 = vsub.f32 %v1628_v29, %v1654_v4 }
 0x5bf   :  { %v1678_v61 = vmul.f32 1.442695, %v1664_v58 }
 0x5c1   :  { %3885 = vpow2.f32 %v1678_v61 }
 0x5c4   :  { %v1657_v59 = vpop.xlane.xlu1 %1656 }
 0x5c5   :  { %v1665_v42 = vsub.f32 %v1631_v35, %v1657_v59 }
 0x5c7   :  { %v4983_v23 = vpop.eup %3885  ;;  %v1680_v36 = vmul.f32 1.442695, %v1665_v42 }
 0x5c8   :  { %v1700_v46 = vsel %vm362_vm4, %v4983_v23, 0.0 }
 0x5c9   :  { %3887 = vpow2.f32 %v1680_v36  ;;  %1701 = vadd.xlane.f32.xlu1 %v1700_v46 }
 0x5cf   :  { %v4987_v44 = vpop.eup %3887 }
 0x5d0   :  { %v1703_v40 = vsel %vm362_vm4, %v4987_v44, 0.0 }
 0x5d1   :  { %v1684_v6 = vpop.xlane.xlu2 %1683  ;;  %1704 = vadd.xlane.f32.xlu0 %v1703_v40 }
 0x5d2   :  { %3889 = vrcp.f32 %v1684_v6  ;;  %v1690_v29 = vpop.xlane.xlu0 %1689  ;;  %v1717_v4 = vand.u32 2147483648, %v1684_v6  ;;  %v1715_v59 = vand.u32 2147483647, %v1684_v6  ;;  %vm1711_vm13 = vweird.f32 %v1684_v6 }
 0x5d3   :  { %3891 = vrcp.f32 %v1690_v29  ;;  %v1747_v42 = vand.u32 2147483648, %v1690_v29  ;;  %v1745_v46 = vand.u32 2147483647, %v1690_v29  ;;  %vm1741_vm15 = vweird.f32 %v1690_v29 }
 0x5d4   :  { %v1718_v0 = vor.u32 1.1754944e-38, %v1717_v4  ;;  %vm1716_vm0 = vcmp.eq.f32.partialorder %v1715_v59, 8.507059e+37  ;;  %v5612_v4 = vld [vmem:[#allocation13_spill] sm:$0xff] }
 0x5d5   :  { %v1748_v3 = vor.u32 1.1754944e-38, %v1747_v42  ;;  %vm1746_vm2 = vcmp.eq.f32.partialorder %v1745_v46, 8.507059e+37  ;;  %v1966_v42 = vmul.f32 %v5612_v4, %v4397_v25 }
 0x5d8   :  { %v3890_v16 = vpop.eup %3889 }
 0x5d9   :  { %v3892_v35 = vpop.eup %3891  ;;  %v1707_v53 = vmul.f32 %v3890_v16, %v1684_v6  ;;  %v4991_v57 = vpop.xlane.xlu1 %1686  ;;  %vm1712_vm11 = vweird.f32 %v3890_v16 }
 0x5da   :  { %v1737_v10 = vmul.f32 %v3892_v35, %v1690_v29  ;;  %v4993_v27 = vpop.xlane.xlu2 %1692  ;;  %3893 = vrcp.f32 %v4991_v57  ;;  %vm1742_vm12 = vweird.f32 %v3892_v35  ;;  %vm1713_vm14 = vmor %vm1711_vm13, %vm1712_vm11  ;;  %vm1726_vm6 = vweird.f32 %v4991_v57 }
 0x5db   :  { %v1708_v60 = vsub.f32 1.0, %v1707_v53  ;;  %3895 = vrcp.f32 %v4993_v27  ;;  %vm1743_vm1 = vmor %vm1741_vm15, %vm1742_vm12  ;;  %vm1756_vm9 = vweird.f32 %v4993_v27 }
 0x5dc   :  { %v1738_v58 = vsub.f32 1.0, %v1737_v10 }
 0x5dd   :  { %v1709_v61 = vmul.f32 %v3890_v16, %v1708_v60 }
 0x5de   :  { %v1739_v36 = vmul.f32 %v3892_v35, %v1738_v58 }
 0x5df   :  { %v1710_v40 = vadd.f32 %v3890_v16, %v1709_v61 }
 0x5e0   :  { %v3894_v49 = vpop.eup %3893  ;;  %v1740_v1 = vadd.f32 %v3892_v35, %v1739_v36  ;;  %v1964_v36 = vmul.f32 %v5612_v4, %v4377_v51 }
 0x5e1   :  { %v3896_v31 = vpop.eup %3895  ;;  %v1714_v53 = vsel %vm1713_vm14, %v3890_v16, %v1710_v40  ;;  %v1722_v10 = vmul.f32 %v3894_v49, %v4991_v57  ;;  %v1732_v16 = vand.u32 2147483648, %v4991_v57  ;;  %vm1727_vm3 = vweird.f32 %v3894_v49 }
 0x5e2   :  { %v1719_v60 = vsel %vm1716_vm0, %v1718_v0, %v1714_v53  ;;  %v1744_v17 = vsel %vm1743_vm1, %v3892_v35, %v1740_v1  ;;  %v1752_v58 = vmul.f32 %v3896_v31, %v4993_v27  ;;  %v1762_v1 = vand.u32 2147483648, %v4993_v27  ;;  %vm1728_vm7 = vmor %vm1726_vm6, %vm1727_vm3 }
 0x5e3   :  { %v1749_v26 = vsel %vm1746_vm2, %v1748_v3, %v1744_v17  ;;  %v1723_v61 = vsub.f32 1.0, %v1722_v10  ;;  %v1720_v6 = vmul.f32 %v4959_v54, %v1719_v60  ;;  %v1730_v17 = vand.u32 2147483647, %v4991_v57 }
 0x5e4   :  { %v1753_v29 = vsub.f32 1.0, %v1752_v58  ;;  %v1750_v59 = vmul.f32 %v4961_v48, %v1749_v26  ;;  %v1963_v54 = vmul.f32 %v5612_v4, %v4379_v52  ;;  %vm1757_vm5 = vweird.f32 %v3896_v31 }
 0x5e5   :  { %v1724_v0 = vmul.f32 %v3894_v49, %v1723_v61  ;;  %3722 = vmatmul.msk.f32.vlgmr.msrb.gmra.mxu2 %vm362_vm4, %v1720_v6  ;;  %v1760_v26 = vand.u32 2147483647, %v4993_v27  ;;  %v1965_v48 = vmul.f32 %v5612_v4, %v4395_v20  ;;  %v1733_v46 = vor.u32 1.1754944e-38, %v1732_v16  ;;  %vm1758_vm10 = vmor %vm1756_vm9, %vm1757_vm5 }
 0x5e6   :  { %v1754_v3 = vmul.f32 %v3896_v31, %v1753_v29  ;;  %3724 = vmatmul.msk.f32.vlgmr.msrb.gmra.mxu3 %vm362_vm4, %v1750_v59  ;;  %2275 = vmatpush.msrb.mxu2 %v1964_v36  ;;  %v1763_v53 = vor.u32 1.1754944e-38, %v1762_v1  ;;  %vm1731_vm8 = vcmp.eq.f32.partialorder %v1730_v17, 8.507059e+37  ;;  %v1955_v27 = vmul.f32 %v5612_v4, %v4220_v8 }
 0x5e7   :  { %2304 = vmatpush.msrb.mxu3 %v1966_v42  ;;  %v1725_v35 = vadd.f32 %v3894_v49, %v1724_v0  ;;  %vm1761_vm11 = vcmp.eq.f32.partialorder %v1760_v26, 8.507059e+37 }
 0x5e8   :  { %2276 = vmatpush.msrb.mxu2 %v1963_v54  ;;  %v1755_v40 = vadd.f32 %v3896_v31, %v1754_v3 }
 0x5e9   :  { %2305 = vmatpush.msrb.mxu3 %v1965_v48  ;;  %v1729_v10 = vsel %vm1728_vm7, %v3894_v49, %v1725_v35  ;;  %v1957_v49 = vmul.f32 %v5612_v4, %v4241_v19 }
 0x5ea   :  { %v1734_v60 = vsel %vm1731_vm8, %v1733_v46, %v1729_v10  ;;  %v1759_v57 = vsel %vm1758_vm10, %v3896_v31, %v1755_v40  ;;  %v1956_v31 = vmul.f32 %v5612_v4, %v4233_v14  ;;  %v1968_v10 = vmul.f32 %v5612_v4, %v4407_v13 }
 0x5eb   :  { %v1735_v58 = vmul.f32 %v4967_v56, %v1734_v60  ;;  %v1764_v61 = vsel %vm1761_vm11, %v1763_v53, %v1759_v57  ;;  %v1958_v56 = vmul.f32 %v5612_v4, %v4251_v24 }
 0x5ec   :  { %v1765_v6 = vmul.f32 %v4969_v12, %v1764_v61 }
 0x5ed   :  { %3723 = vmatmul.msk.f32.gmra.mxu2 %vm362_vm4, %v1735_v58  ;;  %v1967_v58 = vmul.f32 %v5612_v4, %v4409_v22 }
 0x5ee   :  { %3725 = vmatmul.msk.f32.gmra.mxu3 %vm362_vm4, %v1765_v6 }
 0x5f5   :  { %1987 = vmatmul.f32.vlgmr.msra.gmra.mxu2 %v1955_v27 }
 0x5f6   :  { %2010 = vmatmul.f32.vlgmr.msra.gmra.mxu3 %v1957_v49  ;;  %2414 = vmatpush.xpose.msra.mxu2 %v4217_v7 }
 0x5f7   :  { %2437 = vmatpush.xpose.msra.mxu3 %v4238_v18 }
 0x5fa   :  { %2415 = vmatpush.xpose.msra.mxu2 %v4227_v11 }
 0x5fb   :  { %2438 = vmatpush.xpose.msra.mxu3 %v4245_v21 }
 0x5fd   :  { %1990 = vmatmul.f32.gmra.mxu2 %v1956_v31 }
 0x5fe   :  { %2013 = vmatmul.f32.gmra.mxu3 %v1958_v56  ;;  %v1959_v56 = vmul.f32 %v5612_v4, %v5591_v33 }
 0x622   :  { %v1696_v12 = vpop.xlane.xlu0 %1695 }
 0x623   :  { %3897 = vrcp.f32 %v1696_v12  ;;  %v1777_v42 = vand.u32 2147483648, %v1696_v12  ;;  %v1775_v0 = vand.u32 2147483647, %v1696_v12  ;;  %vm1771_vm13 = vweird.f32 %v1696_v12 }
 0x625   :  { %v1778_v54 = vor.u32 1.1754944e-38, %v1777_v42  ;;  %vm1776_vm15 = vcmp.eq.f32.partialorder %v1775_v0, 8.507059e+37  ;;  %v1960_v0 = vmul.f32 %v5612_v4, %v5592_v63 }
 0x629   :  { %v3898_v36 = vpop.eup %3897 }
 0x62a   :  { %v1767_v29 = vmul.f32 %v3898_v36, %v1696_v12  ;;  %v1699_v16 = vpop.xlane.xlu2 %1698  ;;  %vm1772_vm12 = vweird.f32 %v3898_v36 }
 0x62b   :  { %3899 = vrcp.f32 %v1699_v16  ;;  %vm1773_vm14 = vmor %vm1771_vm13, %vm1772_vm12  ;;  %v1792_v53 = vand.u32 2147483648, %v1699_v16  ;;  %v1790_v57 = vand.u32 2147483647, %v1699_v16  ;;  %vm1786_vm1 = vweird.f32 %v1699_v16 }
 0x62c   :  { %v1768_v59 = vsub.f32 1.0, %v1767_v29 }
 0x62d   :  { %v1793_v6 = vor.u32 1.1754944e-38, %v1792_v53  ;;  %vm1791_vm3 = vcmp.eq.f32.partialorder %v1790_v57, 8.507059e+37  ;;  %v1970_v53 = vmul.f32 %v5612_v4, %v4419_v34  ;;  %v1969_v57 = vmul.f32 %v5612_v4, %v5589_v45 }
 0x62e   :  { %v1769_v1 = vmul.f32 %v3898_v36, %v1768_v59 }
 0x630   :  { %v1770_v17 = vadd.f32 %v3898_v36, %v1769_v1 }
 0x631   :  { %v3900_v3 = vpop.eup %3899 }
 0x632   :  { %v1774_v26 = vsel %vm1773_vm14, %v3898_v36, %v1770_v17  ;;  %v1782_v48 = vmul.f32 %v3900_v3, %v1699_v16  ;;  %vm1787_vm0 = vweird.f32 %v3900_v3 }
 0x633   :  { %v1779_v35 = vsel %vm1776_vm15, %v1778_v54, %v1774_v26  ;;  %vm1788_vm2 = vmor %vm1786_vm1, %vm1787_vm0 }
 0x634   :  { %v1783_v46 = vsub.f32 1.0, %v1782_v48  ;;  %v1780_v40 = vmul.f32 %v4975_v62, %v1779_v35 }
 0x636   :  { %v1784_v60 = vmul.f32 %v3900_v3, %v1783_v46  ;;  %3726 = vmatmul.msk.f32.vlgmr.msrb.gmra.mxu0 %vm362_vm4, %v1780_v40 }
 0x637   :  { %2333 = vmatpush.msrb.mxu0 %v1968_v10 }
 0x638   :  { %v1785_v61 = vadd.f32 %v3900_v3, %v1784_v60 }
 0x639   :  { %2334 = vmatpush.msrb.mxu0 %v1967_v58 }
 0x63a   :  { %v1789_v27 = vsel %vm1788_vm2, %v3900_v3, %v1785_v61 }
 0x63b   :  { %v1794_v62 = vsel %vm1791_vm3, %v1793_v6, %v1789_v27 }
 0x63c   :  { %v1795_v49 = vmul.f32 %v4979_v38, %v1794_v62  ;;  %v1702_v31 = vpop.xlane.xlu1 %1701  ;;  %v1961_v62 = vmul.f32 %v5612_v4, %v5594_v5 }
 0x63d   :  { %3901 = vrcp.f32 %v1702_v31  ;;  %v1807_v59 = vand.u32 2147483648, %v1702_v31  ;;  %v1805_v1 = vand.u32 2147483647, %v1702_v31  ;;  %vm1801_vm6 = vweird.f32 %v1702_v31 }
 0x63e   :  { %3727 = vmatmul.msk.f32.gmra.mxu0 %vm362_vm4, %v1795_v49  ;;  %v1000_v49 = vadd.f32 %v4793_v9, %v4785_v15  ;;  %v1003_v15 = vadd.f32 %v4800_v55, %v4787_v39  ;;  %v5614_v9 = vld [vmem:[#allocation22_spill] sm:$0xff] }
 0x63f   :  { %v1808_v3 = vor.u32 1.1754944e-38, %v1807_v59  ;;  %vm1806_vm7 = vcmp.eq.f32.partialorder %v1805_v1, 8.507059e+37  ;;  %v5616_v1 = vld [vmem:[#allocation27_spill] sm:$0xff] }
 0x643   :  { %v3902_v12 = vpop.eup %3901 }
 0x644   :  { %v1797_v36 = vmul.f32 %v3902_v12, %v1702_v31  ;;  %v1705_v29 = vpop.xlane.xlu0 %1704  ;;  %vm1802_vm5 = vweird.f32 %v3902_v12  ;;  %v1029_v31 = vadd.f32 %v4795_v50, %v4781_v30  ;;  %v5613_v30 = vld [vmem:[#allocation21_spill] sm:$0xff] }
 0x645   :  { %3903 = vrcp.f32 %v1705_v29  ;;  %vm1803_vm9 = vmor %vm1801_vm6, %vm1802_vm5  ;;  %v1822_v40 = vand.u32 2147483648, %v1705_v29  ;;  %v1820_v60 = vand.u32 2147483647, %v1705_v29  ;;  %vm1816_vm10 = vweird.f32 %v1705_v29 }
 0x646   :  { %2033 = vmatmul.f32.vlgmr.msra.gmra.mxu0 %v1959_v56  ;;  %v1798_v16 = vsub.f32 1.0, %v1797_v36  ;;  %v1513_v56 = vadd.f32 %v4932_v47, %v1000_v49  ;;  %v1032_v50 = vadd.f32 %v5614_v9, %v5613_v30 }
 0x647   :  { %2460 = vmatpush.xpose.msra.mxu0 %v4258_v28  ;;  %v1823_v61 = vor.u32 1.1754944e-38, %v1822_v40  ;;  %vm1821_vm12 = vcmp.eq.f32.partialorder %v1820_v60, 8.507059e+37  ;;  %v5617_v40 = vld [vmem:[#allocation17_spill] sm:$0xff]  ;;  %v5619_v60 = vld [vmem:[#allocation28_spill] sm:$0xff] }
 0x648   :  { %v1799_v42 = vmul.f32 %v3902_v12, %v1798_v16 }
 0x64a   :  { %v1800_v38 = vadd.f32 %v3902_v12, %v1799_v42  ;;  %v5615_v42 = vld [vmem:[#allocation12_spill] sm:$0xff] }
 0x64b   :  { %2461 = vmatpush.xpose.msra.mxu0 %v4270_v32  ;;  %v3904_v17 = vpop.eup %3903  ;;  %v1514_v47 = vadd.f32 %v5615_v42, %v1003_v15  ;;  %v5624_v15 = vld [vmem:[#allocation25_spill] sm:$0xff] }
 0x64c   :  { %v1804_v54 = vsel %vm1803_vm9, %v3902_v12, %v1800_v38  ;;  %v1812_v26 = vmul.f32 %v3904_v17, %v1705_v29  ;;  %vm1817_vm8 = vweird.f32 %v3904_v17  ;;  %v1515_v12 = vadd.f32 %v4934_v37, %v1029_v31 }
 0x64d   :  { %v1809_v48 = vsel %vm1806_vm7, %v1808_v3, %v1804_v54  ;;  %vm1818_vm11 = vmor %vm1816_vm10, %vm1817_vm8  ;;  %v1516_v38 = vadd.f32 %v5616_v1, %v1032_v50  ;;  %v5625_v50 = vld [vmem:[#allocation30_spill] sm:$0xff] }
 0x64e   :  { %2036 = vmatmul.f32.gmra.mxu0 %v1960_v0  ;;  %v1813_v35 = vsub.f32 1.0, %v1812_v26  ;;  %v1810_v46 = vmul.f32 %v4983_v23, %v1809_v48 }
 0x650   :  { %v1814_v10 = vmul.f32 %v3904_v17, %v1813_v35  ;;  %3728 = vmatmul.msk.f32.vlgmr.msrb.gmra.mxu1 %vm362_vm4, %v1810_v46 }
 0x651   :  { %2362 = vmatpush.msrb.mxu1 %v1970_v53  ;;  %v5618_v53 = vld [vmem:[#allocation19_spill] sm:$0xff] }
 0x652   :  { %v1815_v58 = vadd.f32 %v3904_v17, %v1814_v10  ;;  %v1058_v10 = vadd.f32 %v5618_v53, %v5617_v40 }
 0x653   :  { %2363 = vmatpush.msrb.mxu1 %v1969_v57 }
 0x654   :  { %v1819_v6 = vsel %vm1818_vm11, %v3904_v17, %v1815_v58  ;;  %v1517_v57 = vadd.f32 %v5619_v60, %v1058_v10 }
 0x655   :  { %v1824_v23 = vsel %vm1821_vm12, %v1823_v61, %v1819_v6  ;;  %v5620_v6 = vld [vmem:[#allocation18_spill] sm:$0xff] }
 0x656   :  { %v1825_v27 = vmul.f32 %v4987_v44, %v1824_v23  ;;  %v1962_v44 = vmul.f32 %v5612_v4, %v5596_v2  ;;  %v5621_v23 = vld [vmem:[#allocation23_spill] sm:$0xff] }
 0x658   :  { %3729 = vmatmul.msk.f32.gmra.mxu1 %vm362_vm4, %v1825_v27  ;;  %v1061_v27 = vadd.f32 %v5621_v23, %v5620_v6 }
 0x660   :  { %2056 = vmatmul.f32.vlgmr.msra.gmra.mxu1 %v1961_v62  ;;  %v5622_v62 = vld [vmem:[#allocation29_spill] sm:$0xff] }
 0x661   :  { %2483 = vmatpush.xpose.msra.mxu1 %v4287_v41  ;;  %v1518_v49 = vadd.f32 %v5622_v62, %v1061_v27 }
 0x665   :  { %2484 = vmatpush.xpose.msra.mxu1 %v4295_v43 }
 0x668   :  { %v1849_v36 = vpop.f32.mrf.mxu2  ;;  %2059 = vmatmul.f32.gmra.mxu1 %v1962_v44 }
 0x669   :  { %v5069_v29 = vadd.f32 %v1849_v36, %v1513_v56  ;;  %v1878_v16 = vpop.f32.mrf.mxu3 }
 0x66a   :  { %v5071_v59 = vadd.f32 %v1878_v16, %v1515_v12  ;;  %v5623_v16 = vld [vmem:[#allocation20_spill] sm:$0xff] }
 0x66b   :  { %v1087_v30 = vadd.f32 %v5624_v15, %v5623_v16 }
 0x66d   :  { %v1519_v42 = vadd.f32 %v5625_v50, %v1087_v30 }
 0x670   :  { %v1852_v4 = vpop.f32.mrf.mxu2 }
 0x671   :  { %v5079_v0 = vadd.f32 %v1852_v4, %v1514_v47  ;;  %v1881_v37 = vpop.f32.mrf.mxu3  ;;  %v5627_v4 = vld [vmem:[#allocation26_spill] sm:$0xff] }
 0x672   :  { %v5081_v17 = vadd.f32 %v1881_v37, %v1516_v38  ;;  %v5626_v38 = vld [vmem:[#allocation24_spill] sm:$0xff] }
 0x673   :  { %v1090_v37 = vadd.f32 %v5627_v4, %v5626_v38 }
 0x678   :  { %v1988_v3 = vpop.f32.mrf.mxu2 }
 0x679   :  { %v2011_v54 = vpop.f32.mrf.mxu3  ;;  %v2063_v26 = vsel %vm362_vm4, %v1988_v3, -inf }
 0x67a   :  { %v2069_v48 = vsel %vm362_vm4, %v2011_v54, -inf  ;;  %2064 = vmax.xlane.f32.xlu1 %v2063_v26  ;;  %v5628_v26 = vld [vmem:[#allocation31_spill] sm:$0xff] }
 0x67b   :  { %2070 = vmax.xlane.f32.xlu2 %v2069_v48  ;;  %v1520_v48 = vadd.f32 %v5628_v26, %v1090_v37 }
 0x680   :  { %v1991_v39 = vpop.f32.mrf.mxu2 }
 0x681   :  { %v2014_v55 = vpop.f32.mrf.mxu3  ;;  %v2066_v35 = vsel %vm362_vm4, %v1991_v39, -inf }
 0x682   :  { %v2072_v46 = vsel %vm362_vm4, %v2014_v55, -inf  ;;  %2067 = vmax.xlane.f32.xlu0 %v2066_v35 }
 0x683   :  { %2073 = vmax.xlane.f32.xlu1 %v2072_v46 }
 0x6b3   :  { %v1907_v58 = vpop.f32.mrf.mxu0 }
 0x6b4   :  { %v5090_v61 = vadd.f32 %v1907_v58, %v1517_v57 }
 0x6bb   :  { %v1910_v31 = vpop.f32.mrf.mxu0 }
 0x6bc   :  { %v5095_v56 = vadd.f32 %v1910_v31, %v1518_v49 }
 0x6c3   :  { %v2034_v44 = vpop.f32.mrf.mxu0 }
 0x6c4   :  { %v2075_v12 = vsel %vm362_vm4, %v2034_v44, -inf }
 0x6c5   :  { %2076 = vmax.xlane.f32.xlu2 %v2075_v12 }
 0x6cb   :  { %v2037_v36 = vpop.f32.mrf.mxu0 }
 0x6cc   :  { %v2078_v9 = vsel %vm362_vm4, %v2037_v36, -inf }
 0x6cd   :  { %2079 = vmax.xlane.f32.xlu1 %v2078_v9  ;;  %v1936_v47 = vpop.f32.mrf.mxu1 }
 0x6ce   :  { %v5102_v1 = vadd.f32 %v1936_v47, %v1519_v42 }
 0x6d5   :  { %v1939_v35 = vpop.f32.mrf.mxu1 }
 0x6d6   :  { %v5107_v46 = vadd.f32 %v1939_v35, %v1520_v48 }
 0x6d8   :  { %5629 = vst [vmem:[#allocation13_spill] sm:$0xff] %v5107_v46 }
 0x6dd   :  { %v2057_v40 = vpop.f32.mrf.mxu1 }
 0x6de   :  { %v2081_v53 = vsel %vm362_vm4, %v2057_v40, -inf }
 0x6df   :  { %2082 = vmax.xlane.f32.xlu0 %v2081_v53 }
 0x6e5   :  { %v2060_v10 = vpop.f32.mrf.mxu1 }
 0x6e6   :  { %v2084_v60 = vsel %vm362_vm4, %v2060_v10, -inf }
 0x6e7   :  { %2085 = vmax.xlane.f32.xlu2 %v2084_v60 }
 0x6ed   :  { %v2065_v57 = vpop.xlane.xlu1 %2064 }
 0x6ee   :  { %v2071_v58 = vpop.xlane.xlu2 %2070  ;;  %v2087_v6 = vsub.f32 %v1988_v3, %v2065_v57 }
 0x6ef   :  { %v2089_v23 = vsub.f32 %v2011_v54, %v2071_v58 }
 0x6f0   :  { %v2095_v27 = vmul.f32 1.442695, %v2087_v6 }
 0x6f1   :  { %v2099_v62 = vmul.f32 1.442695, %v2089_v23 }
 0x6f2   :  { %3905 = vpow2.f32 %v2095_v27 }
 0x6f3   :  { %3907 = vpow2.f32 %v2099_v62 }
 0x6f5   :  { %v2068_v49 = vpop.xlane.xlu0 %2067 }
 0x6f6   :  { %v2088_v31 = vsub.f32 %v1991_v39, %v2068_v49  ;;  %v2074_v12 = vpop.xlane.xlu1 %2073 }
 0x6f7   :  { %v2090_v16 = vsub.f32 %v2014_v55, %v2074_v12 }
 0x6f8   :  { %v5111_v15 = vpop.eup %3905  ;;  %v2097_v30 = vmul.f32 1.442695, %v2088_v31 }
 0x6f9   :  { %v5113_v9 = vpop.eup %3907  ;;  %v2101_v50 = vmul.f32 1.442695, %v2090_v16  ;;  %v2111_v42 = vsel %vm362_vm4, %v5111_v15, 0.0 }
 0x6fa   :  { %3909 = vpow2.f32 %v2097_v30  ;;  %v2117_v3 = vsel %vm362_vm4, %v5113_v9, 0.0  ;;  %2112 = vadd.xlane.f32.xlu0 %v2111_v42 }
 0x6fb   :  { %3911 = vpow2.f32 %v2101_v50  ;;  %2118 = vadd.xlane.f32.xlu1 %v2117_v3 }
 0x700   :  { %v5119_v54 = vpop.eup %3909 }
 0x701   :  { %v5121_v39 = vpop.eup %3911  ;;  %v2114_v55 = vsel %vm362_vm4, %v5119_v54, 0.0 }
 0x702   :  { %2115 = vadd.xlane.f32.xlu2 %v2114_v55  ;;  %v2120_v47 = vsel %vm362_vm4, %v5121_v39, 0.0 }
 0x703   :  { %2121 = vadd.xlane.f32.xlu0 %v2120_v47 }
 0x738   :  { %v2077_v38 = vpop.xlane.xlu2 %2076 }
 0x739   :  { %v2091_v4 = vsub.f32 %v2034_v44, %v2077_v38 }
 0x73b   :  { %v2103_v37 = vmul.f32 1.442695, %v2091_v4 }
 0x73d   :  { %3913 = vpow2.f32 %v2103_v37 }
 0x740   :  { %v2080_v26 = vpop.xlane.xlu1 %2079 }
 0x741   :  { %v2092_v48 = vsub.f32 %v2037_v36, %v2080_v26 }
 0x743   :  { %v5127_v35 = vpop.eup %3913  ;;  %v2105_v53 = vmul.f32 1.442695, %v2092_v48 }
 0x744   :  { %v2123_v60 = vsel %vm362_vm4, %v5127_v35, 0.0 }
 0x745   :  { %3915 = vpow2.f32 %v2105_v53  ;;  %2124 = vadd.xlane.f32.xlu1 %v2123_v60 }
 0x74b   :  { %v5131_v57 = vpop.eup %3915 }
 0x74c   :  { %v2126_v58 = vsel %vm362_vm4, %v5131_v57, 0.0 }
 0x74d   :  { %2127 = vadd.xlane.f32.xlu0 %v2126_v58 }
 0x752   :  { %v2083_v6 = vpop.xlane.xlu0 %2082 }
 0x753   :  { %v2093_v44 = vsub.f32 %v2057_v40, %v2083_v6 }
 0x755   :  { %v2107_v23 = vmul.f32 1.442695, %v2093_v44 }
 0x757   :  { %3917 = vpow2.f32 %v2107_v23 }
 0x75a   :  { %v2086_v27 = vpop.xlane.xlu2 %2085 }
 0x75b   :  { %v2094_v36 = vsub.f32 %v2060_v10, %v2086_v27 }
 0x75d   :  { %v5135_v62 = vpop.eup %3917  ;;  %v2109_v49 = vmul.f32 1.442695, %v2094_v36 }
 0x75e   :  { %v2129_v31 = vsel %vm362_vm4, %v5135_v62, 0.0 }
 0x75f   :  { %3919 = vpow2.f32 %v2109_v49  ;;  %2130 = vadd.xlane.f32.xlu2 %v2129_v31 }
 0x765   :  { %v5139_v12 = vpop.eup %3919 }
 0x766   :  { %v2132_v16 = vsel %vm362_vm4, %v5139_v12, 0.0 }
 0x767   :  { %2133 = vadd.xlane.f32.xlu1 %v2132_v16 }
 0x76d   :  { %v2113_v30 = vpop.xlane.xlu0 %2112 }
 0x76e   :  { %3921 = vrcp.f32 %v2113_v30  ;;  %v2119_v40 = vpop.xlane.xlu1 %2118  ;;  %v2146_v4 = vand.u32 2147483648, %v2113_v30  ;;  %v2144_v48 = vand.u32 2147483647, %v2113_v30  ;;  %vm2140_vm15 = vweird.f32 %v2113_v30 }
 0x76f   :  { %3923 = vrcp.f32 %v2119_v40  ;;  %v2176_v53 = vand.u32 2147483648, %v2119_v40  ;;  %v2174_v58 = vand.u32 2147483647, %v2119_v40  ;;  %vm2170_vm1 = vweird.f32 %v2119_v40 }
 0x770   :  { %v2147_v23 = vor.u32 1.1754944e-38, %v2146_v4  ;;  %vm2145_vm2 = vcmp.eq.f32.partialorder %v2144_v48, 8.507059e+37 }
 0x771   :  { %v2177_v31 = vor.u32 1.1754944e-38, %v2176_v53  ;;  %vm2175_vm5 = vcmp.eq.f32.partialorder %v2174_v58, 8.507059e+37 }
 0x774   :  { %v3922_v50 = vpop.eup %3921 }
 0x775   :  { %v3924_v10 = vpop.eup %3923  ;;  %v2136_v42 = vmul.f32 %v3922_v50, %v2113_v30  ;;  %v2116_v3 = vpop.xlane.xlu2 %2115  ;;  %vm2141_vm13 = vweird.f32 %v3922_v50 }
 0x776   :  { %v2166_v55 = vmul.f32 %v3924_v10, %v2119_v40  ;;  %3925 = vrcp.f32 %v2116_v3  ;;  %v5143_v47 = vpop.xlane.xlu0 %2121  ;;  %vm2171_vm14 = vweird.f32 %v3924_v10  ;;  %vm2142_vm0 = vmor %vm2140_vm15, %vm2141_vm13  ;;  %vm2155_vm7 = vweird.f32 %v2116_v3 }
 0x777   :  { %v2137_v38 = vsub.f32 1.0, %v2136_v42  ;;  %3927 = vrcp.f32 %v5143_v47  ;;  %vm2172_vm3 = vmor %vm2170_vm1, %vm2171_vm14  ;;  %v2191_v58 = vand.u32 2147483648, %v5143_v47  ;;  %vm2185_vm10 = vweird.f32 %v5143_v47 }
 0x778   :  { %v2167_v37 = vsub.f32 1.0, %v2166_v55 }
 0x779   :  { %v2138_v26 = vmul.f32 %v3922_v50, %v2137_v38 }
 0x77a   :  { %v2168_v60 = vmul.f32 %v3924_v10, %v2167_v37 }
 0x77b   :  { %v2139_v6 = vadd.f32 %v3922_v50, %v2138_v26  ;;  %v5630_v26 = vld [vmem:[#allocation15_spill] sm:$0xff] }
 0x77c   :  { %v3926_v44 = vpop.eup %3925  ;;  %v2169_v27 = vadd.f32 %v3924_v10, %v2168_v60  ;;  %v2393_v4 = vmul.f32 %v5630_v26, %v4377_v51  ;;  %v2161_v60 = vand.u32 2147483648, %v2116_v3  ;;  %v2395_v48 = vmul.f32 %v5630_v26, %v4397_v25 }
 0x77d   :  { %v3928_v36 = vpop.eup %3927  ;;  %v2143_v49 = vsel %vm2142_vm0, %v3922_v50, %v2139_v6  ;;  %v2151_v16 = vmul.f32 %v3926_v44, %v2116_v3  ;;  %vm2156_vm6 = vweird.f32 %v3926_v44 }
 0x77e   :  { %v2148_v42 = vsel %vm2145_vm2, %v2147_v23, %v2143_v49  ;;  %v2173_v55 = vsel %vm2172_vm3, %v3924_v10, %v2169_v27  ;;  %v2181_v38 = vmul.f32 %v3928_v36, %v5143_v47  ;;  %v2159_v10 = vand.u32 2147483647, %v2116_v3  ;;  %vm2157_vm8 = vmor %vm2155_vm7, %vm2156_vm6 }
 0x77f   :  { %v2178_v37 = vsel %vm2175_vm5, %v2177_v31, %v2173_v55  ;;  %v2152_v46 = vsub.f32 1.0, %v2151_v16  ;;  %v2149_v30 = vmul.f32 %v5111_v15, %v2148_v42  ;;  %vm2186_vm9 = vweird.f32 %v3928_v36 }
 0x780   :  { %v2179_v40 = vmul.f32 %v5113_v9, %v2178_v37  ;;  %v2182_v50 = vsub.f32 1.0, %v2181_v38  ;;  %v2189_v15 = vand.u32 2147483647, %v5143_v47  ;;  %v2392_v9 = vmul.f32 %v5630_v26, %v4379_v52  ;;  %vm2187_vm12 = vmor %vm2185_vm10, %vm2186_vm9 }
 0x781   :  { %v2153_v53 = vmul.f32 %v3926_v44, %v2152_v46  ;;  %3731 = vmatmul.msk.f32.vlgmr.msrb.gmra.mxu2 %vm362_vm4, %v2149_v30  ;;  %v2394_v46 = vmul.f32 %v5630_v26, %v4395_v20  ;;  %v2162_v27 = vor.u32 1.1754944e-38, %v2161_v60  ;;  %vm2160_vm11 = vcmp.eq.f32.partialorder %v2159_v10, 8.507059e+37 }
 0x782   :  { %v2183_v6 = vmul.f32 %v3928_v36, %v2182_v50  ;;  %3733 = vmatmul.msk.f32.vlgmr.msrb.gmra.mxu3 %vm362_vm4, %v2179_v40  ;;  %2704 = vmatpush.msrb.mxu2 %v2393_v4  ;;  %v2192_v31 = vor.u32 1.1754944e-38, %v2191_v58  ;;  %vm2190_vm13 = vcmp.eq.f32.partialorder %v2189_v15, 8.507059e+37  ;;  %v2384_v47 = vmul.f32 %v5630_v26, %v4220_v8 }
 0x783   :  { %v2154_v23 = vadd.f32 %v3926_v44, %v2153_v53  ;;  %2733 = vmatpush.msrb.mxu3 %v2395_v48  ;;  %v2386_v30 = vmul.f32 %v5630_v26, %v4241_v19 }
 0x784   :  { %v2184_v49 = vadd.f32 %v3928_v36, %v2183_v6  ;;  %2705 = vmatpush.msrb.mxu2 %v2392_v9 }
 0x785   :  { %2734 = vmatpush.msrb.mxu3 %v2394_v46  ;;  %v2158_v16 = vsel %vm2157_vm8, %v3926_v44, %v2154_v23 }
 0x786   :  { %v2163_v42 = vsel %vm2160_vm11, %v2162_v27, %v2158_v16  ;;  %v2188_v55 = vsel %vm2187_vm12, %v3928_v36, %v2184_v49 }
 0x787   :  { %v2164_v3 = vmul.f32 %v5119_v54, %v2163_v42  ;;  %v2193_v38 = vsel %vm2190_vm13, %v2192_v31, %v2188_v55  ;;  %v2385_v54 = vmul.f32 %v5630_v26, %v4233_v14  ;;  %v2397_v31 = vmul.f32 %v5630_v26, %v4407_v13 }
 0x788   :  { %v2194_v37 = vmul.f32 %v5121_v39, %v2193_v38  ;;  %v2387_v39 = vmul.f32 %v5630_v26, %v4251_v24  ;;  %v2396_v55 = vmul.f32 %v5630_v26, %v4409_v22 }
 0x789   :  { %3732 = vmatmul.msk.f32.gmra.mxu2 %vm362_vm4, %v2164_v3 }
 0x78a   :  { %3734 = vmatmul.msk.f32.gmra.mxu3 %vm362_vm4, %v2194_v37 }
 0x791   :  { %2416 = vmatmul.f32.vlgmr.msra.gmra.mxu2 %v2384_v47 }
 0x792   :  { %2439 = vmatmul.f32.vlgmr.msra.gmra.mxu3 %v2386_v30  ;;  %2843 = vmatpush.xpose.msra.mxu2 %v4217_v7 }
 0x793   :  { %2866 = vmatpush.xpose.msra.mxu3 %v4238_v18 }
 0x796   :  { %2844 = vmatpush.xpose.msra.mxu2 %v4227_v11 }
 0x797   :  { %2867 = vmatpush.xpose.msra.mxu3 %v4245_v21 }
 0x799   :  { %2419 = vmatmul.f32.gmra.mxu2 %v2385_v54  ;;  %v2388_v54 = vmul.f32 %v5630_v26, %v5591_v33 }
 0x79a   :  { %2442 = vmatmul.f32.gmra.mxu3 %v2387_v39 }
 0x7b8   :  { %v2125_v44 = vpop.xlane.xlu1 %2124 }
 0x7b9   :  { %3929 = vrcp.f32 %v2125_v44  ;;  %v2206_v50 = vand.u32 2147483648, %v2125_v44  ;;  %v2204_v53 = vand.u32 2147483647, %v2125_v44  ;;  %vm2200_vm15 = vweird.f32 %v2125_v44 }
 0x7bb   :  { %v2207_v6 = vor.u32 1.1754944e-38, %v2206_v50  ;;  %vm2205_vm1 = vcmp.eq.f32.partialorder %v2204_v53, 8.507059e+37 }
 0x7bf   :  { %v3930_v36 = vpop.eup %3929 }
 0x7c0   :  { %v2196_v4 = vmul.f32 %v3930_v36, %v2125_v44  ;;  %v2128_v40 = vpop.xlane.xlu0 %2127  ;;  %vm2201_vm14 = vweird.f32 %v3930_v36 }
 0x7c1   :  { %3931 = vrcp.f32 %v2128_v40  ;;  %vm2202_vm0 = vmor %vm2200_vm15, %vm2201_vm14  ;;  %v2221_v49 = vand.u32 2147483648, %v2128_v40  ;;  %v2219_v42 = vand.u32 2147483647, %v2128_v40  ;;  %vm2215_vm3 = vweird.f32 %v2128_v40 }
 0x7c2   :  { %v2197_v60 = vsub.f32 1.0, %v2196_v4 }
 0x7c3   :  { %v2222_v38 = vor.u32 1.1754944e-38, %v2221_v49  ;;  %vm2220_vm6 = vcmp.eq.f32.partialorder %v2219_v42, 8.507059e+37 }
 0x7c4   :  { %v2198_v48 = vmul.f32 %v3930_v36, %v2197_v60 }
 0x7c6   :  { %v2199_v10 = vadd.f32 %v3930_v36, %v2198_v48  ;;  %v2389_v48 = vmul.f32 %v5630_v26, %v5592_v63 }
 0x7c7   :  { %v3932_v58 = vpop.eup %3931 }
 0x7c8   :  { %v2203_v15 = vsel %vm2202_vm0, %v3930_v36, %v2199_v10  ;;  %v2211_v9 = vmul.f32 %v3932_v58, %v2128_v40  ;;  %vm2216_vm2 = vweird.f32 %v3932_v58 }
 0x7c9   :  { %v2208_v23 = vsel %vm2205_vm1, %v2207_v6, %v2203_v15  ;;  %vm2217_vm5 = vmor %vm2215_vm3, %vm2216_vm2 }
 0x7ca   :  { %v2212_v46 = vsub.f32 1.0, %v2211_v9  ;;  %v2209_v27 = vmul.f32 %v5127_v35, %v2208_v23 }
 0x7cc   :  { %v2213_v16 = vmul.f32 %v3932_v58, %v2212_v46  ;;  %3735 = vmatmul.msk.f32.vlgmr.msrb.gmra.mxu0 %vm362_vm4, %v2209_v27  ;;  %v2399_v27 = vmul.f32 %v5630_v26, %v4419_v34 }
 0x7cd   :  { %2762 = vmatpush.msrb.mxu0 %v2397_v31 }
 0x7ce   :  { %v2214_v3 = vadd.f32 %v3932_v58, %v2213_v16  ;;  %v2398_v16 = vmul.f32 %v5630_v26, %v5589_v45 }
 0x7cf   :  { %2763 = vmatpush.msrb.mxu0 %v2396_v55 }
 0x7d0   :  { %v2218_v35 = vsel %vm2217_vm5, %v3932_v58, %v2214_v3 }
 0x7d1   :  { %v2223_v37 = vsel %vm2220_vm6, %v2222_v38, %v2218_v35  ;;  %v2390_v35 = vmul.f32 %v5630_v26, %v5594_v5 }
 0x7d2   :  { %v2224_v47 = vmul.f32 %v5131_v57, %v2223_v37  ;;  %v2131_v30 = vpop.xlane.xlu2 %2130  ;;  %v2391_v37 = vmul.f32 %v5630_v26, %v5596_v2 }
 0x7d3   :  { %3933 = vrcp.f32 %v2131_v30  ;;  %v2236_v40 = vand.u32 2147483648, %v2131_v30  ;;  %v2234_v50 = vand.u32 2147483647, %v2131_v30  ;;  %vm2230_vm7 = vweird.f32 %v2131_v30 }
 0x7d4   :  { %3736 = vmatmul.msk.f32.gmra.mxu0 %vm362_vm4, %v2224_v47 }
 0x7d5   :  { %v2237_v10 = vor.u32 1.1754944e-38, %v2236_v40  ;;  %vm2235_vm10 = vcmp.eq.f32.partialorder %v2234_v50, 8.507059e+37 }
 0x7d9   :  { %v3934_v39 = vpop.eup %3933 }
 0x7da   :  { %v2226_v44 = vmul.f32 %v3934_v39, %v2131_v30  ;;  %v2134_v36 = vpop.xlane.xlu1 %2133  ;;  %vm2231_vm9 = vweird.f32 %v3934_v39 }
 0x7db   :  { %3935 = vrcp.f32 %v2134_v36  ;;  %vm2232_vm8 = vmor %vm2230_vm7, %vm2231_vm9  ;;  %v2251_v46 = vand.u32 2147483648, %v2134_v36  ;;  %v2249_v31 = vand.u32 2147483647, %v2134_v36  ;;  %vm2245_vm12 = vweird.f32 %v2134_v36 }
 0x7dc   :  { %2462 = vmatmul.f32.vlgmr.msra.gmra.mxu0 %v2388_v54  ;;  %v2227_v4 = vsub.f32 1.0, %v2226_v44 }
 0x7dd   :  { %2889 = vmatpush.xpose.msra.mxu0 %v4258_v28  ;;  %v2252_v55 = vor.u32 1.1754944e-38, %v2251_v46  ;;  %vm2250_vm14 = vcmp.eq.f32.partialorder %v2249_v31, 8.507059e+37 }
 0x7de   :  { %v2228_v60 = vmul.f32 %v3934_v39, %v2227_v4 }
 0x7e0   :  { %v2229_v57 = vadd.f32 %v3934_v39, %v2228_v60 }
 0x7e1   :  { %2890 = vmatpush.xpose.msra.mxu0 %v4270_v32  ;;  %v3936_v53 = vpop.eup %3935 }
 0x7e2   :  { %v2233_v58 = vsel %vm2232_vm8, %v3934_v39, %v2229_v57  ;;  %v2241_v6 = vmul.f32 %v3936_v53, %v2134_v36  ;;  %vm2246_vm11 = vweird.f32 %v3936_v53 }
 0x7e3   :  { %v2238_v15 = vsel %vm2235_vm10, %v2237_v10, %v2233_v58  ;;  %vm2247_vm13 = vmor %vm2245_vm12, %vm2246_vm11 }
 0x7e4   :  { %2465 = vmatmul.f32.gmra.mxu0 %v2389_v48  ;;  %v2239_v9 = vmul.f32 %v5135_v62, %v2238_v15  ;;  %v2242_v23 = vsub.f32 1.0, %v2241_v6 }
 0x7e6   :  { %v2243_v49 = vmul.f32 %v3936_v53, %v2242_v23  ;;  %3737 = vmatmul.msk.f32.vlgmr.msrb.gmra.mxu1 %vm362_vm4, %v2239_v9 }
 0x7e7   :  { %2791 = vmatpush.msrb.mxu1 %v2399_v27 }
 0x7e8   :  { %v2244_v42 = vadd.f32 %v3936_v53, %v2243_v49  ;;  %v5632_v49 = vld [vmem:[#allocation13_spill] sm:$0xff] }
 0x7e9   :  { %2792 = vmatpush.msrb.mxu1 %v2398_v16 }
 0x7ea   :  { %v2248_v62 = vsel %vm2247_vm13, %v3936_v53, %v2244_v42 }
 0x7eb   :  { %v2253_v3 = vsel %vm2250_vm14, %v2252_v55, %v2248_v62 }
 0x7ec   :  { %v2254_v38 = vmul.f32 %v5139_v12, %v2253_v3 }
 0x7ee   :  { %3738 = vmatmul.msk.f32.gmra.mxu1 %vm362_vm4, %v2254_v38 }
 0x7f6   :  { %2485 = vmatmul.f32.vlgmr.msra.gmra.mxu1 %v2390_v35 }
 0x7f7   :  { %2912 = vmatpush.xpose.msra.mxu1 %v4287_v41 }
 0x7fb   :  { %2913 = vmatpush.xpose.msra.mxu1 %v4295_v43 }
 0x7fe   :  { %2488 = vmatmul.f32.gmra.mxu1 %v2391_v37 }
 0x804   :  { %v2278_v47 = vpop.f32.mrf.mxu2 }
 0x805   :  { %v5208_v30 = vadd.f32 %v2278_v47, %v5069_v29  ;;  %v2307_v54 = vpop.f32.mrf.mxu3 }
 0x806   :  { %v5211_v12 = vadd.f32 %v2307_v54, %v5071_v59 }
 0x80c   :  { %v2281_v39 = vpop.f32.mrf.mxu2 }
 0x80d   :  { %v5214_v44 = vadd.f32 %v2281_v39, %v5079_v0  ;;  %v2310_v36 = vpop.f32.mrf.mxu3 }
 0x80e   :  { %v5217_v4 = vadd.f32 %v2310_v36, %v5081_v17 }
 0x814   :  { %v2417_v40 = vpop.f32.mrf.mxu2 }
 0x815   :  { %v2440_v60 = vpop.f32.mrf.mxu3  ;;  %v2492_v26 = vsel %vm362_vm4, %v2417_v40, -inf }
 0x816   :  { %2493 = vmax.xlane.f32.xlu2 %v2492_v26  ;;  %v2498_v29 = vsel %vm362_vm4, %v2440_v60, -inf }
 0x817   :  { %2499 = vmax.xlane.f32.xlu0 %v2498_v29 }
 0x81c   :  { %v2420_v50 = vpop.f32.mrf.mxu2 }
 0x81d   :  { %v2443_v57 = vpop.f32.mrf.mxu3  ;;  %v2495_v59 = vsel %vm362_vm4, %v2420_v50, -inf }
 0x81e   :  { %2496 = vmax.xlane.f32.xlu1 %v2495_v59  ;;  %v2501_v0 = vsel %vm362_vm4, %v2443_v57, -inf }
 0x81f   :  { %2502 = vmax.xlane.f32.xlu2 %v2501_v0 }
 0x849   :  { %v2336_v48 = vpop.f32.mrf.mxu0 }
 0x84a   :  { %v5224_v17 = vadd.f32 %v2336_v48, %v5090_v61 }
 0x851   :  { %v2339_v53 = vpop.f32.mrf.mxu0 }
 0x852   :  { %v5227_v10 = vadd.f32 %v2339_v53, %v5095_v56 }
 0x859   :  { %v2463_v58 = vpop.f32.mrf.mxu0 }
 0x85a   :  { %v2504_v6 = vsel %vm362_vm4, %v2463_v58, -inf }
 0x85b   :  { %2505 = vmax.xlane.f32.xlu0 %v2504_v6 }
 0x861   :  { %v2466_v15 = vpop.f32.mrf.mxu0 }
 0x862   :  { %v2507_v9 = vsel %vm362_vm4, %v2466_v15, -inf }
 0x863   :  { %2508 = vmax.xlane.f32.xlu2 %v2507_v9  ;;  %v2365_v23 = vpop.f32.mrf.mxu1 }
 0x864   :  { %v5232_v46 = vadd.f32 %v2365_v23, %v5102_v1 }
 0x866   :  { %5631 = vst [vmem:[#allocation21_spill] sm:$0xff] %v5232_v46 }
 0x86b   :  { %v2368_v27 = vpop.f32.mrf.mxu1 }
 0x86c   :  { %v5235_v61 = vadd.f32 %v2368_v27, %v5632_v49 }
 0x86e   :  { %5633 = vst [vmem:[#allocation22_spill] sm:$0xff] %v5235_v61 }
 0x873   :  { %v2486_v31 = vpop.f32.mrf.mxu1 }
 0x874   :  { %v2510_v56 = vsel %vm362_vm4, %v2486_v31, -inf }
 0x875   :  { %2511 = vmax.xlane.f32.xlu1 %v2510_v56 }
 0x87b   :  { %v2489_v16 = vpop.f32.mrf.mxu1 }
 0x87c   :  { %v2513_v42 = vsel %vm362_vm4, %v2489_v16, -inf }
 0x87d   :  { %2514 = vmax.xlane.f32.xlu0 %v2513_v42 }
 0x889   :  { %v2494_v55 = vpop.xlane.xlu2 %2493 }
 0x88a   :  { %v2516_v62 = vsub.f32 %v2417_v40, %v2494_v55  ;;  %v2500_v3 = vpop.xlane.xlu0 %2499 }
 0x88b   :  { %v2518_v38 = vsub.f32 %v2440_v60, %v2500_v3 }
 0x88c   :  { %v2524_v35 = vmul.f32 1.442695, %v2516_v62 }
 0x88d   :  { %v2528_v37 = vmul.f32 1.442695, %v2518_v38 }
 0x88e   :  { %3937 = vpow2.f32 %v2524_v35 }
 0x88f   :  { %3939 = vpow2.f32 %v2528_v37 }
 0x891   :  { %v2497_v1 = vpop.xlane.xlu1 %2496 }
 0x892   :  { %v2503_v47 = vpop.xlane.xlu2 %2502  ;;  %v2517_v54 = vsub.f32 %v2420_v50, %v2497_v1 }
 0x893   :  { %v2519_v39 = vsub.f32 %v2443_v57, %v2503_v47 }
 0x894   :  { %v5239_v36 = vpop.eup %3937  ;;  %v2526_v26 = vmul.f32 1.442695, %v2517_v54 }
 0x895   :  { %v5241_v29 = vpop.eup %3939  ;;  %v2530_v59 = vmul.f32 1.442695, %v2519_v39  ;;  %v2540_v0 = vsel %vm362_vm4, %v5239_v36, 0.0 }
 0x896   :  { %3941 = vpow2.f32 %v2526_v26  ;;  %v2546_v40 = vsel %vm362_vm4, %v5241_v29, 0.0  ;;  %2541 = vadd.xlane.f32.xlu1 %v2540_v0 }
 0x897   :  { %3943 = vpow2.f32 %v2530_v59  ;;  %2547 = vadd.xlane.f32.xlu2 %v2546_v40 }
 0x89c   :  { %v5247_v60 = vpop.eup %3941 }
 0x89d   :  { %v5249_v50 = vpop.eup %3943  ;;  %v2543_v57 = vsel %vm362_vm4, %v5247_v60, 0.0 }
 0x89e   :  { %v2549_v48 = vsel %vm362_vm4, %v5249_v50, 0.0  ;;  %2544 = vadd.xlane.f32.xlu0 %v2543_v57 }
 0x89f   :  { %2550 = vadd.xlane.f32.xlu1 %v2549_v48 }
 0x8ce   :  { %v2506_v53 = vpop.xlane.xlu0 %2505 }
 0x8cf   :  { %v2520_v6 = vsub.f32 %v2463_v58, %v2506_v53 }
 0x8d1   :  { %v2532_v9 = vmul.f32 1.442695, %v2520_v6 }
 0x8d3   :  { %3945 = vpow2.f32 %v2532_v9 }
 0x8d6   :  { %v2509_v23 = vpop.xlane.xlu2 %2508 }
 0x8d7   :  { %v2521_v27 = vsub.f32 %v2466_v15, %v2509_v23 }
 0x8d9   :  { %v5255_v49 = vpop.eup %3945  ;;  %v2534_v56 = vmul.f32 1.442695, %v2521_v27 }
 0x8da   :  { %v2552_v42 = vsel %vm362_vm4, %v5255_v49, 0.0 }
 0x8db   :  { %3947 = vpow2.f32 %v2534_v56  ;;  %2553 = vadd.xlane.f32.xlu2 %v2552_v42 }
 0x8e1   :  { %v5259_v55 = vpop.eup %3947 }
 0x8e2   :  { %v2555_v62 = vsel %vm362_vm4, %v5259_v55, 0.0 }
 0x8e3   :  { %2556 = vadd.xlane.f32.xlu1 %v2555_v62 }
 0x8e8   :  { %v2512_v3 = vpop.xlane.xlu1 %2511 }
 0x8e9   :  { %v2522_v58 = vsub.f32 %v2486_v31, %v2512_v3 }
 0x8eb   :  { %v2536_v38 = vmul.f32 1.442695, %v2522_v58 }
 0x8ed   :  { %3949 = vpow2.f32 %v2536_v38 }
 0x8f0   :  { %v2515_v35 = vpop.xlane.xlu0 %2514 }
 0x8f1   :  { %v2523_v15 = vsub.f32 %v2489_v16, %v2515_v35 }
 0x8f3   :  { %v5263_v37 = vpop.eup %3949  ;;  %v2538_v1 = vmul.f32 1.442695, %v2523_v15 }
 0x8f4   :  { %v2558_v47 = vsel %vm362_vm4, %v5263_v37, 0.0 }
 0x8f5   :  { %3951 = vpow2.f32 %v2538_v1  ;;  %2559 = vadd.xlane.f32.xlu0 %v2558_v47 }
 0x8fb   :  { %v5267_v54 = vpop.eup %3951 }
 0x8fc   :  { %v2561_v39 = vsel %vm362_vm4, %v5267_v54, 0.0 }
 0x8fd   :  { %2562 = vadd.xlane.f32.xlu2 %v2561_v39 }
 0x909   :  { %v2542_v26 = vpop.xlane.xlu1 %2541 }
 0x90a   :  { %v2548_v31 = vpop.xlane.xlu2 %2547  ;;  %3953 = vrcp.f32 %v2542_v26  ;;  %v2575_v9 = vand.u32 2147483648, %v2542_v26  ;;  %v2573_v56 = vand.u32 2147483647, %v2542_v26  ;;  %vm2569_vm1 = vweird.f32 %v2542_v26 }
 0x90b   :  { %3955 = vrcp.f32 %v2548_v31  ;;  %v2605_v23 = vand.u32 2147483648, %v2548_v31  ;;  %v2603_v62 = vand.u32 2147483647, %v2548_v31  ;;  %vm2599_vm2 = vweird.f32 %v2548_v31 }
 0x90c   :  { %v2576_v35 = vor.u32 1.1754944e-38, %v2575_v9  ;;  %vm2574_vm6 = vcmp.eq.f32.partialorder %v2573_v56, 8.507059e+37 }
 0x90d   :  { %v2606_v1 = vor.u32 1.1754944e-38, %v2605_v23  ;;  %vm2604_vm9 = vcmp.eq.f32.partialorder %v2603_v62, 8.507059e+37 }
 0x910   :  { %v3954_v59 = vpop.eup %3953 }
 0x911   :  { %v3956_v16 = vpop.eup %3955  ;;  %v2565_v0 = vmul.f32 %v3954_v59, %v2542_v26  ;;  %v2545_v40 = vpop.xlane.xlu0 %2544  ;;  %vm2570_vm15 = vweird.f32 %v3954_v59 }
 0x912   :  { %v2595_v57 = vmul.f32 %v3956_v16, %v2548_v31  ;;  %3957 = vrcp.f32 %v2545_v40  ;;  %v5271_v48 = vpop.xlane.xlu1 %2550  ;;  %vm2600_vm0 = vweird.f32 %v3956_v16  ;;  %vm2571_vm3 = vmor %vm2569_vm1, %vm2570_vm15  ;;  %v2590_v61 = vand.u32 2147483648, %v2545_v40 }
 0x913   :  { %v2566_v53 = vsub.f32 1.0, %v2565_v0  ;;  %3959 = vrcp.f32 %v5271_v48  ;;  %vm2601_vm5 = vmor %vm2599_vm2, %vm2600_vm0  ;;  %v2620_v56 = vand.u32 2147483648, %v5271_v48  ;;  %vm2584_vm10 = vweird.f32 %v2545_v40 }
 0x914   :  { %v2596_v6 = vsub.f32 1.0, %v2595_v57  ;;  %vm2614_vm12 = vweird.f32 %v5271_v48 }
 0x915   :  { %v2567_v27 = vmul.f32 %v3954_v59, %v2566_v53 }
 0x916   :  { %v2597_v42 = vmul.f32 %v3956_v16, %v2596_v6 }
 0x917   :  { %v2568_v3 = vadd.f32 %v3954_v59, %v2567_v27 }
 0x918   :  { %v3958_v58 = vpop.eup %3957  ;;  %v2598_v38 = vadd.f32 %v3956_v16, %v2597_v42  ;;  %v5634_v42 = vld [vmem:[#allocation16_spill] sm:$0xff] }
 0x919   :  { %v3960_v15 = vpop.eup %3959  ;;  %v2572_v47 = vsel %vm2571_vm3, %v3954_v59, %v2568_v3  ;;  %v2580_v39 = vmul.f32 %v3958_v58, %v2545_v40  ;;  %v2822_v31 = vmul.f32 %v5634_v42, %v4377_v51  ;;  %v2824_v59 = vmul.f32 %v5634_v42, %v4397_v25 }
 0x91a   :  { %v2602_v0 = vsel %vm2601_vm5, %v3956_v16, %v2598_v38  ;;  %v2577_v57 = vsel %vm2574_vm6, %v2576_v35, %v2572_v47  ;;  %v2610_v53 = vmul.f32 %v3960_v15, %v5271_v48  ;;  %vm2585_vm7 = vweird.f32 %v3958_v58 }
 0x91b   :  { %v2607_v6 = vsel %vm2604_vm9, %v2606_v1, %v2602_v0  ;;  %v2578_v27 = vmul.f32 %v5239_v36, %v2577_v57  ;;  %v2581_v26 = vsub.f32 1.0, %v2580_v39  ;;  %v2588_v16 = vand.u32 2147483647, %v2545_v40  ;;  %vm2586_vm11 = vmor %vm2584_vm10, %vm2585_vm7 }
 0x91c   :  { %v2608_v9 = vmul.f32 %v5241_v29, %v2607_v6  ;;  %v2611_v46 = vsub.f32 1.0, %v2610_v53  ;;  %vm2615_vm8 = vweird.f32 %v3960_v15  ;;  %v2618_v36 = vand.u32 2147483647, %v5271_v48 }
 0x91d   :  { %v2582_v23 = vmul.f32 %v3958_v58, %v2581_v26  ;;  %3740 = vmatmul.msk.f32.vlgmr.msrb.gmra.mxu2 %vm362_vm4, %v2578_v27  ;;  %v2821_v29 = vmul.f32 %v5634_v42, %v4379_v52  ;;  %v2823_v38 = vmul.f32 %v5634_v42, %v4395_v20  ;;  %v2591_v35 = vor.u32 1.1754944e-38, %v2590_v61  ;;  %vm2616_vm14 = vmor %vm2614_vm12, %vm2615_vm8 }
 0x91e   :  { %v2612_v62 = vmul.f32 %v3960_v15, %v2611_v46  ;;  %3742 = vmatmul.msk.f32.vlgmr.msrb.gmra.mxu3 %vm362_vm4, %v2608_v9  ;;  %3133 = vmatpush.msrb.mxu2 %v2822_v31  ;;  %vm2589_vm13 = vcmp.eq.f32.partialorder %v2588_v16, 8.507059e+37  ;;  %v2621_v46 = vor.u32 1.1754944e-38, %v2620_v56  ;;  %vm2619_vm15 = vcmp.eq.f32.partialorder %v2618_v36, 8.507059e+37 }
 0x91f   :  { %v2583_v3 = vadd.f32 %v3958_v58, %v2582_v23  ;;  %3162 = vmatpush.msrb.mxu3 %v2824_v59  ;;  %v2813_v61 = vmul.f32 %v5634_v42, %v4220_v8  ;;  %v2815_v48 = vmul.f32 %v5634_v42, %v4241_v19 }
 0x920   :  { %v2613_v1 = vadd.f32 %v3960_v15, %v2612_v62  ;;  %3134 = vmatpush.msrb.mxu2 %v2821_v29  ;;  %v2826_v29 = vmul.f32 %v5634_v42, %v4407_v13 }
 0x921   :  { %3163 = vmatpush.msrb.mxu3 %v2823_v38  ;;  %v2587_v47 = vsel %vm2586_vm11, %v3958_v58, %v2583_v3 }
 0x922   :  { %v2592_v39 = vsel %vm2589_vm13, %v2591_v35, %v2587_v47  ;;  %v2617_v0 = vsel %vm2616_vm14, %v3960_v15, %v2613_v1  ;;  %v2825_v35 = vmul.f32 %v5634_v42, %v4409_v22 }
 0x923   :  { %v2593_v40 = vmul.f32 %v5247_v60, %v2592_v39  ;;  %v2622_v57 = vsel %vm2619_vm15, %v2621_v46, %v2617_v0  ;;  %v2814_v60 = vmul.f32 %v5634_v42, %v4233_v14 }
 0x924   :  { %v2623_v53 = vmul.f32 %v5249_v50, %v2622_v57  ;;  %v2816_v50 = vmul.f32 %v5634_v42, %v4251_v24 }
 0x925   :  { %3741 = vmatmul.msk.f32.gmra.mxu2 %vm362_vm4, %v2593_v40  ;;  %v2817_v40 = vmul.f32 %v5634_v42, %v5591_v33 }
 0x926   :  { %3743 = vmatmul.msk.f32.gmra.mxu3 %vm362_vm4, %v2623_v53 }
 0x92d   :  { %2845 = vmatmul.f32.vlgmr.msra.gmra.mxu2 %v2813_v61 }
 0x92e   :  { %2868 = vmatmul.f32.vlgmr.msra.gmra.mxu3 %v2815_v48  ;;  %3272 = vmatpush.xpose.msra.mxu2 %v4217_v7 }
 0x92f   :  { %3295 = vmatpush.xpose.msra.mxu3 %v4238_v18 }
 0x932   :  { %3273 = vmatpush.xpose.msra.mxu2 %v4227_v11 }
 0x933   :  { %3296 = vmatpush.xpose.msra.mxu3 %v4245_v21 }
 0x935   :  { %2848 = vmatmul.f32.gmra.mxu2 %v2814_v60 }
 0x936   :  { %2871 = vmatmul.f32.gmra.mxu3 %v2816_v50 }
 0x94e   :  { %v2554_v58 = vpop.xlane.xlu2 %2553 }
 0x94f   :  { %3961 = vrcp.f32 %v2554_v58  ;;  %v2635_v18 = vand.u32 2147483648, %v2554_v58  ;;  %v2633_v11 = vand.u32 2147483647, %v2554_v58  ;;  %vm2629_vm1 = vweird.f32 %v2554_v58 }
 0x951   :  { %v2636_v9 = vor.u32 1.1754944e-38, %v2635_v18  ;;  %vm2634_vm3 = vcmp.eq.f32.partialorder %v2633_v11, 8.507059e+37 }
 0x955   :  { %v3962_v15 = vpop.eup %3961 }
 0x956   :  { %v2625_v6 = vmul.f32 %v3962_v15, %v2554_v58  ;;  %v2557_v27 = vpop.xlane.xlu1 %2556  ;;  %vm2630_vm0 = vweird.f32 %v3962_v15 }
 0x957   :  { %3963 = vrcp.f32 %v2557_v27  ;;  %vm2631_vm2 = vmor %vm2629_vm1, %vm2630_vm0  ;;  %v2650_v36 = vand.u32 2147483648, %v2557_v27  ;;  %v2648_v38 = vand.u32 2147483647, %v2557_v27  ;;  %vm2644_vm6 = vweird.f32 %v2557_v27 }
 0x958   :  { %v2626_v7 = vsub.f32 1.0, %v2625_v6 }
 0x959   :  { %v2651_v46 = vor.u32 1.1754944e-38, %v2650_v36  ;;  %vm2649_vm7 = vcmp.eq.f32.partialorder %v2648_v38, 8.507059e+37  ;;  %v2819_v36 = vmul.f32 %v5634_v42, %v5594_v5 }
 0x95a   :  { %v2627_v26 = vmul.f32 %v3962_v15, %v2626_v7 }
 0x95c   :  { %v2628_v21 = vadd.f32 %v3962_v15, %v2627_v26 }
 0x95d   :  { %v3964_v31 = vpop.eup %3963 }
 0x95e   :  { %v2632_v59 = vsel %vm2631_vm2, %v3962_v15, %v2628_v21  ;;  %v2640_v23 = vmul.f32 %v3964_v31, %v2557_v27  ;;  %vm2645_vm5 = vweird.f32 %v3964_v31  ;;  %v2818_v15 = vmul.f32 %v5634_v42, %v5592_v63 }
 0x95f   :  { %v2637_v16 = vsel %vm2634_vm3, %v2636_v9, %v2632_v59  ;;  %vm2646_vm9 = vmor %vm2644_vm6, %vm2645_vm5  ;;  %v2827_v59 = vmul.f32 %v5634_v42, %v5589_v45 }
 0x960   :  { %v2638_v56 = vmul.f32 %v5255_v49, %v2637_v16  ;;  %v2641_v62 = vsub.f32 1.0, %v2640_v23 }
 0x962   :  { %v2642_v3 = vmul.f32 %v3964_v31, %v2641_v62  ;;  %3744 = vmatmul.msk.f32.vlgmr.msrb.gmra.mxu0 %vm362_vm4, %v2638_v56 }
 0x963   :  { %3191 = vmatpush.msrb.mxu0 %v2826_v29  ;;  %v2820_v29 = vmul.f32 %v5634_v42, %v5596_v2 }
 0x964   :  { %v2643_v1 = vadd.f32 %v3964_v31, %v2642_v3 }
 0x965   :  { %3192 = vmatpush.msrb.mxu0 %v2825_v35 }
 0x966   :  { %v2647_v49 = vsel %vm2646_vm9, %v3964_v31, %v2643_v1 }
 0x967   :  { %v2652_v47 = vsel %vm2649_vm7, %v2651_v46, %v2647_v49 }
 0x968   :  { %v2653_v39 = vmul.f32 %v5259_v55, %v2652_v47  ;;  %v2560_v0 = vpop.xlane.xlu0 %2559 }
 0x969   :  { %3965 = vrcp.f32 %v2560_v0  ;;  %v2665_v60 = vand.u32 2147483648, %v2560_v0  ;;  %v2663_v58 = vand.u32 2147483647, %v2560_v0  ;;  %vm2659_vm10 = vweird.f32 %v2560_v0 }
 0x96a   :  { %3745 = vmatmul.msk.f32.gmra.mxu0 %vm362_vm4, %v2653_v39 }
 0x96b   :  { %v2666_v27 = vor.u32 1.1754944e-38, %v2665_v60  ;;  %vm2664_vm12 = vcmp.eq.f32.partialorder %v2663_v58, 8.507059e+37 }
 0x96f   :  { %v3966_v57 = vpop.eup %3965 }
 0x970   :  { %v2655_v53 = vmul.f32 %v3966_v57, %v2560_v0  ;;  %v2563_v61 = vpop.xlane.xlu2 %2562  ;;  %vm2660_vm8 = vweird.f32 %v3966_v57 }
 0x971   :  { %3967 = vrcp.f32 %v2563_v61  ;;  %vm2661_vm11 = vmor %vm2659_vm10, %vm2660_vm8  ;;  %v2680_v21 = vand.u32 2147483648, %v2563_v61  ;;  %v2678_v9 = vand.u32 2147483647, %v2563_v61  ;;  %vm2674_vm14 = vweird.f32 %v2563_v61 }
 0x972   :  { %2891 = vmatmul.f32.vlgmr.msra.gmra.mxu0 %v2817_v40  ;;  %v2656_v48 = vsub.f32 1.0, %v2655_v53 }
 0x973   :  { %3318 = vmatpush.xpose.msra.mxu0 %v4258_v28  ;;  %v2681_v16 = vor.u32 1.1754944e-38, %v2680_v21  ;;  %vm2679_vm0 = vcmp.eq.f32.partialorder %v2678_v9, 8.507059e+37 }
 0x974   :  { %v2657_v50 = vmul.f32 %v3966_v57, %v2656_v48 }
 0x976   :  { %v2658_v55 = vadd.f32 %v3966_v57, %v2657_v50 }
 0x977   :  { %3319 = vmatpush.xpose.msra.mxu0 %v4270_v32  ;;  %v3968_v6 = vpop.eup %3967  ;;  %v2828_v32 = vmul.f32 %v5634_v42, %v4419_v34 }
 0x978   :  { %v2662_v7 = vsel %vm2661_vm11, %v3966_v57, %v2658_v55  ;;  %v2670_v18 = vmul.f32 %v3968_v6, %v2563_v61  ;;  %vm2675_vm13 = vweird.f32 %v3968_v6  ;;  %v5635_v55 = vld [vmem:[#allocation21_spill] sm:$0xff] }
 0x979   :  { %v2667_v28 = vsel %vm2664_vm12, %v2666_v27, %v2662_v7  ;;  %vm2676_vm15 = vmor %vm2674_vm14, %vm2675_vm13  ;;  %v5636_v27 = vld [vmem:[#allocation22_spill] sm:$0xff] }
 0x97a   :  { %2894 = vmatmul.f32.gmra.mxu0 %v2818_v15  ;;  %v2668_v26 = vmul.f32 %v5263_v37, %v2667_v28  ;;  %v2671_v11 = vsub.f32 1.0, %v2670_v18 }
 0x97c   :  { %v2672_v31 = vmul.f32 %v3968_v6, %v2671_v11  ;;  %3746 = vmatmul.msk.f32.vlgmr.msrb.gmra.mxu1 %vm362_vm4, %v2668_v26 }
 0x97d   :  { %3220 = vmatpush.msrb.mxu1 %v2828_v32 }
 0x97e   :  { %v2673_v23 = vadd.f32 %v3968_v6, %v2672_v31 }
 0x97f   :  { %3221 = vmatpush.msrb.mxu1 %v2827_v59 }
 0x980   :  { %v2677_v37 = vsel %vm2676_vm15, %v3968_v6, %v2673_v23 }
 0x981   :  { %v2682_v56 = vsel %vm2679_vm0, %v2681_v16, %v2677_v37 }
 0x982   :  { %v2683_v62 = vmul.f32 %v5267_v54, %v2682_v56 }
 0x984   :  { %3747 = vmatmul.msk.f32.gmra.mxu1 %vm362_vm4, %v2683_v62 }
 0x98c   :  { %2914 = vmatmul.f32.vlgmr.msra.gmra.mxu1 %v2819_v36 }
 0x98d   :  { %3341 = vmatpush.xpose.msra.mxu1 %v4287_v41 }
 0x991   :  { %3342 = vmatpush.xpose.msra.mxu1 %v4295_v43 }
 0x994   :  { %2917 = vmatmul.f32.gmra.mxu1 %v2820_v29 }
 0x9a0   :  { %v2707_v3 = vpop.f32.mrf.mxu2 }
 0x9a1   :  { %v5336_v38 = vadd.f32 %v2707_v3, %v5208_v30  ;;  %v2736_v35 = vpop.f32.mrf.mxu3 }
 0x9a2   :  { %v5339_v54 = vadd.f32 %v2736_v35, %v5211_v12 }
 0x9a8   :  { %v2710_v1 = vpop.f32.mrf.mxu2 }
 0x9a9   :  { %v5342_v46 = vadd.f32 %v2710_v1, %v5214_v44  ;;  %v2739_v49 = vpop.f32.mrf.mxu3 }
 0x9aa   :  { %v5345_v41 = vadd.f32 %v2739_v49, %v5217_v4 }
 0x9b0   :  { %v2846_v43 = vpop.f32.mrf.mxu2 }
 0x9b1   :  { %v2869_v47 = vpop.f32.mrf.mxu3  ;;  %v2921_v42 = vsel %vm362_vm4, %v2846_v43, -inf }
 0x9b2   :  { %2922 = vmax.xlane.f32.xlu0 %v2921_v42  ;;  %v2927_v30 = vsel %vm362_vm4, %v2869_v47, -inf }
 0x9b3   :  { %2928 = vmax.xlane.f32.xlu1 %v2927_v30 }
 0x9b8   :  { %v2849_v39 = vpop.f32.mrf.mxu2 }
 0x9b9   :  { %v2872_v0 = vpop.f32.mrf.mxu3  ;;  %v2924_v12 = vsel %vm362_vm4, %v2849_v39, -inf }
 0x9ba   :  { %2925 = vmax.xlane.f32.xlu2 %v2924_v12  ;;  %v2930_v44 = vsel %vm362_vm4, %v2872_v0, -inf }
 0x9bb   :  { %2931 = vmax.xlane.f32.xlu0 %v2930_v44 }
 0x9df   :  { %v2765_v40 = vpop.f32.mrf.mxu0 }
 0x9e0   :  { %v5352_v4 = vadd.f32 %v2765_v40, %v5224_v17 }
 0x9e7   :  { %v2768_v57 = vpop.f32.mrf.mxu0 }
 0x9e8   :  { %v5355_v53 = vadd.f32 %v2768_v57, %v5227_v10 }
 0x9ef   :  { %v2892_v61 = vpop.f32.mrf.mxu0 }
 0x9f0   :  { %v2933_v48 = vsel %vm362_vm4, %v2892_v61, -inf }
 0x9f1   :  { %2934 = vmax.xlane.f32.xlu1 %v2933_v48 }
 0x9f7   :  { %v2895_v60 = vpop.f32.mrf.mxu0 }
 0x9f8   :  { %v2936_v50 = vsel %vm362_vm4, %v2895_v60, -inf }
 0x9f9   :  { %2937 = vmax.xlane.f32.xlu0 %v2936_v50  ;;  %v2794_v58 = vpop.f32.mrf.mxu1 }
 0x9fa   :  { %v5360_v15 = vadd.f32 %v2794_v58, %v5635_v55 }
 0xa01   :  { %v2797_v6 = vpop.f32.mrf.mxu1 }
 0xa02   :  { %v5363_v17 = vadd.f32 %v2797_v6, %v5636_v27 }
 0xa09   :  { %v2915_v7 = vpop.f32.mrf.mxu1 }
 0xa0a   :  { %v2939_v10 = vsel %vm362_vm4, %v2915_v7, -inf }
 0xa0b   :  { %2940 = vmax.xlane.f32.xlu2 %v2939_v10 }
 0xa11   :  { %v2918_v18 = vpop.f32.mrf.mxu1 }
 0xa12   :  { %v2942_v28 = vsel %vm362_vm4, %v2918_v18, -inf }
 0xa13   :  { %2943 = vmax.xlane.f32.xlu1 %v2942_v28 }
 0xa25   :  { %v2923_v26 = vpop.xlane.xlu0 %2922 }
 0xa26   :  { %v2945_v11 = vsub.f32 %v2846_v43, %v2923_v26  ;;  %v2929_v21 = vpop.xlane.xlu1 %2928 }
 0xa27   :  { %v2947_v32 = vsub.f32 %v2869_v47, %v2929_v21 }
 0xa28   :  { %v2953_v31 = vmul.f32 1.442695, %v2945_v11 }
 0xa29   :  { %v2957_v9 = vmul.f32 1.442695, %v2947_v32 }
 0xa2a   :  { %3969 = vpow2.f32 %v2953_v31 }
 0xa2b   :  { %3971 = vpow2.f32 %v2957_v9 }
 0xa2d   :  { %v2926_v59 = vpop.xlane.xlu2 %2925 }
 0xa2e   :  { %v2946_v23 = vsub.f32 %v2849_v39, %v2926_v59  ;;  %v2932_v16 = vpop.xlane.xlu0 %2931 }
 0xa2f   :  { %v2948_v37 = vsub.f32 %v2872_v0, %v2932_v16 }
 0xa30   :  { %v5367_v56 = vpop.eup %3969  ;;  %v2955_v62 = vmul.f32 1.442695, %v2946_v23 }
 0xa31   :  { %v5369_v36 = vpop.eup %3971  ;;  %v2959_v29 = vmul.f32 1.442695, %v2948_v37  ;;  %v2969_v3 = vsel %vm362_vm4, %v5367_v56, 0.0 }
 0xa32   :  { %3973 = vpow2.f32 %v2955_v62  ;;  %2970 = vadd.xlane.f32.xlu2 %v2969_v3  ;;  %v2975_v35 = vsel %vm362_vm4, %v5369_v36, 0.0 }
 0xa33   :  { %3975 = vpow2.f32 %v2959_v29  ;;  %2976 = vadd.xlane.f32.xlu0 %v2975_v35 }
 0xa38   :  { %v5375_v1 = vpop.eup %3973 }
 0xa39   :  { %v5377_v49 = vpop.eup %3975  ;;  %v2972_v43 = vsel %vm362_vm4, %v5375_v1, 0.0 }
 0xa3a   :  { %v2978_v47 = vsel %vm362_vm4, %v5377_v49, 0.0  ;;  %2973 = vadd.xlane.f32.xlu1 %v2972_v43 }
 0xa3b   :  { %2979 = vadd.xlane.f32.xlu2 %v2978_v47 }
 0xa64   :  { %v2935_v42 = vpop.xlane.xlu1 %2934 }
 0xa65   :  { %v2949_v30 = vsub.f32 %v2892_v61, %v2935_v42 }
 0xa67   :  { %v2961_v39 = vmul.f32 1.442695, %v2949_v30 }
 0xa69   :  { %3977 = vpow2.f32 %v2961_v39 }
 0xa6c   :  { %v2938_v0 = vpop.xlane.xlu0 %2937 }
 0xa6d   :  { %v2950_v12 = vsub.f32 %v2895_v60, %v2938_v0 }
 0xa6f   :  { %v5383_v44 = vpop.eup %3977  ;;  %v2963_v40 = vmul.f32 1.442695, %v2950_v12 }
 0xa70   :  { %v2981_v57 = vsel %vm362_vm4, %v5383_v44, 0.0 }
 0xa71   :  { %3979 = vpow2.f32 %v2963_v40  ;;  %2982 = vadd.xlane.f32.xlu0 %v2981_v57 }
 0xa77   :  { %v5387_v48 = vpop.eup %3979 }
 0xa78   :  { %v2984_v50 = vsel %vm362_vm4, %v5387_v48, 0.0 }
 0xa79   :  { %2985 = vadd.xlane.f32.xlu2 %v2984_v50 }
 0xa7e   :  { %v2941_v58 = vpop.xlane.xlu2 %2940 }
 0xa7f   :  { %v2951_v61 = vsub.f32 %v2915_v7, %v2941_v58 }
 0xa81   :  { %v2965_v55 = vmul.f32 1.442695, %v2951_v61 }
 0xa83   :  { %3981 = vpow2.f32 %v2965_v55 }
 0xa86   :  { %v2944_v6 = vpop.xlane.xlu1 %2943 }
 0xa87   :  { %v2952_v60 = vsub.f32 %v2918_v18, %v2944_v6 }
 0xa89   :  { %v5391_v27 = vpop.eup %3981  ;;  %v2967_v10 = vmul.f32 1.442695, %v2952_v60 }
 0xa8a   :  { %v2987_v28 = vsel %vm362_vm4, %v5391_v27, 0.0 }
 0xa8b   :  { %3983 = vpow2.f32 %v2967_v10  ;;  %2988 = vadd.xlane.f32.xlu1 %v2987_v28  ;;  %v5637_v28 = vld [vmem:[#allocation14_spill] sm:$0xff] }
 0xa91   :  { %v5395_v26 = vpop.eup %3983 }
 0xa92   :  { %v2990_v11 = vsel %vm362_vm4, %v5395_v26, 0.0 }
 0xa93   :  { %2991 = vadd.xlane.f32.xlu0 %v2990_v11  ;;  %v3251_v11 = vmul.f32 %v5637_v28, %v4377_v51  ;;  %v3250_v51 = vmul.f32 %v5637_v28, %v4379_v52 }
 0xaa5   :  { %v2971_v21 = vpop.xlane.xlu2 %2970 }
 0xaa6   :  { %3985 = vrcp.f32 %v2971_v21  ;;  %v2977_v7 = vpop.xlane.xlu0 %2976  ;;  %v3004_v37 = vand.u32 2147483648, %v2971_v21  ;;  %v3002_v3 = vand.u32 2147483647, %v2971_v21  ;;  %vm2998_vm3 = vweird.f32 %v2971_v21 }
 0xaa7   :  { %3987 = vrcp.f32 %v2977_v7  ;;  %v3034_v35 = vand.u32 2147483648, %v2977_v7  ;;  %v3032_v47 = vand.u32 2147483647, %v2977_v7  ;;  %vm3028_vm6 = vweird.f32 %v2977_v7 }
 0xaa8   :  { %v3005_v39 = vor.u32 1.1754944e-38, %v3004_v37  ;;  %vm3003_vm9 = vcmp.eq.f32.partialorder %v3002_v3, 8.507059e+37 }
 0xaa9   :  { %v3035_v57 = vor.u32 1.1754944e-38, %v3034_v35  ;;  %vm3033_vm8 = vcmp.eq.f32.partialorder %v3032_v47, 8.507059e+37 }
 0xaac   :  { %v3986_v32 = vpop.eup %3985 }
 0xaad   :  { %v3988_v18 = vpop.eup %3987  ;;  %v2994_v31 = vmul.f32 %v3986_v32, %v2971_v21  ;;  %v2974_v9 = vpop.xlane.xlu1 %2973  ;;  %vm2999_vm1 = vweird.f32 %v3986_v32 }
 0xaae   :  { %v3024_v59 = vmul.f32 %v3988_v18, %v2977_v7  ;;  %v5399_v23 = vpop.xlane.xlu2 %2979  ;;  %3989 = vrcp.f32 %v2974_v9  ;;  %vm3029_vm2 = vweird.f32 %v3988_v18  ;;  %vm3000_vm5 = vmor %vm2998_vm3, %vm2999_vm1  ;;  %vm3013_vm12 = vweird.f32 %v2974_v9 }
 0xaaf   :  { %v2995_v16 = vsub.f32 1.0, %v2994_v31  ;;  %3991 = vrcp.f32 %v5399_v23  ;;  %vm3030_vm7 = vmor %vm3028_vm6, %vm3029_vm2  ;;  %v3253_v31 = vmul.f32 %v5637_v28, %v4397_v25  ;;  %v3047_v37 = vand.u32 2147483647, %v5399_v23 }
 0xab0   :  { %v3025_v62 = vsub.f32 1.0, %v3024_v59  ;;  %v3049_v59 = vand.u32 2147483648, %v5399_v23  ;;  %v3252_v25 = vmul.f32 %v5637_v28, %v4395_v20  ;;  %vm3043_vm13 = vweird.f32 %v5399_v23 }
 0xab1   :  { %v2996_v29 = vmul.f32 %v3986_v32, %v2995_v16  ;;  %v3017_v16 = vand.u32 2147483647, %v2974_v9  ;;  %vm3048_vm1 = vcmp.eq.f32.partialorder %v3047_v37, 8.507059e+37 }
 0xab2   :  { %v3026_v43 = vmul.f32 %v3988_v18, %v3025_v62  ;;  %v3050_v3 = vor.u32 1.1754944e-38, %v3049_v59 }
 0xab3   :  { %v2997_v42 = vadd.f32 %v3986_v32, %v2996_v29  ;;  %vm3018_vm0 = vcmp.eq.f32.partialorder %v3017_v16, 8.507059e+37 }
 0xab4   :  { %v3990_v30 = vpop.eup %3989  ;;  %v3027_v0 = vadd.f32 %v3988_v18, %v3026_v43 }
 0xab5   :  { %v3992_v12 = vpop.eup %3991  ;;  %v3001_v40 = vsel %vm3000_vm5, %v3986_v32, %v2997_v42  ;;  %v3009_v50 = vmul.f32 %v3990_v30, %v2974_v9  ;;  %v3019_v32 = vand.u32 2147483648, %v2974_v9  ;;  %vm3014_vm10 = vweird.f32 %v3990_v30 }
 0xab6   :  { %v3006_v58 = vsel %vm3003_vm9, %v3005_v39, %v3001_v40  ;;  %v3031_v61 = vsel %vm3030_vm7, %v3988_v18, %v3027_v0  ;;  %v3039_v55 = vmul.f32 %v3992_v12, %v5399_v23  ;;  %vm3044_vm11 = vweird.f32 %v3992_v12  ;;  %vm3015_vm14 = vmor %vm3013_vm12, %vm3014_vm10 }
 0xab7   :  { %v3007_v6 = vmul.f32 %v5367_v56, %v3006_v58  ;;  %v3036_v60 = vsel %vm3033_vm8, %v3035_v57, %v3031_v61  ;;  %v3010_v10 = vsub.f32 1.0, %v3009_v50  ;;  %v3020_v29 = vor.u32 1.1754944e-38, %v3019_v32  ;;  %vm3045_vm15 = vmor %vm3043_vm13, %vm3044_vm11 }
 0xab8   :  { %v3037_v21 = vmul.f32 %v5369_v36, %v3036_v60  ;;  %v3040_v7 = vsub.f32 1.0, %v3039_v55  ;;  %v3242_v23 = vmul.f32 %v5637_v28, %v4220_v8  ;;  %v3244_v42 = vmul.f32 %v5637_v28, %v4241_v19 }
 0xab9   :  { %v3011_v18 = vmul.f32 %v3990_v30, %v3010_v10  ;;  %3749 = vmatmul.msk.f32.vlgmr.msrb.gmra.mxu2 %vm362_vm4, %v3007_v6  ;;  %v3254_v32 = vmul.f32 %v5637_v28, %v4409_v22 }
 0xaba   :  { %v3041_v56 = vmul.f32 %v3992_v12, %v3040_v7  ;;  %3751 = vmatmul.msk.f32.vlgmr.msrb.gmra.mxu3 %vm362_vm4, %v3037_v21  ;;  %3562 = vmatpush.msrb.mxu2 %v3251_v11  ;;  %v3255_v11 = vmul.f32 %v5637_v28, %v4407_v13 }
 0xabb   :  { %v3012_v36 = vadd.f32 %v3990_v30, %v3011_v18  ;;  %3591 = vmatpush.msrb.mxu3 %v3253_v31 }
 0xabc   :  { %v3042_v62 = vadd.f32 %v3992_v12, %v3041_v56  ;;  %3563 = vmatpush.msrb.mxu2 %v3250_v51  ;;  %v3246_v56 = vmul.f32 %v5637_v28, %v5591_v33 }
 0xabd   :  { %3592 = vmatpush.msrb.mxu3 %v3252_v25  ;;  %v3016_v35 = vsel %vm3015_vm14, %v3990_v30, %v3012_v36  ;;  %v3243_v30 = vmul.f32 %v5637_v28, %v4233_v14 }
 0xabe   :  { %v3021_v52 = vsel %vm3018_vm0, %v3020_v29, %v3016_v35  ;;  %v3046_v43 = vsel %vm3045_vm15, %v3992_v12, %v3042_v62 }
 0xabf   :  { %v3022_v9 = vmul.f32 %v5375_v1, %v3021_v52  ;;  %v3051_v47 = vsel %vm3048_vm1, %v3050_v3, %v3046_v43  ;;  %v3245_v1 = vmul.f32 %v5637_v28, %v4251_v24 }
 0xac0   :  { %v3052_v20 = vmul.f32 %v5377_v49, %v3051_v47 }
 0xac1   :  { %3750 = vmatmul.msk.f32.gmra.mxu2 %vm362_vm4, %v3022_v9 }
 0xac2   :  { %3752 = vmatmul.msk.f32.gmra.mxu3 %vm362_vm4, %v3052_v20 }
 0xac9   :  { %3274 = vmatmul.f32.vlgmr.msra.gmra.mxu2 %v3242_v23 }
 0xaca   :  { %3297 = vmatmul.f32.vlgmr.msra.gmra.mxu3 %v3244_v42  ;;  %v3257_v42 = vmul.f32 %v5637_v28, %v4419_v34  ;;  %v3248_v34 = vmul.f32 %v5637_v28, %v5594_v5 }
 0xad1   :  { %3277 = vmatmul.f32.gmra.mxu2 %v3243_v30 }
 0xad2   :  { %3300 = vmatmul.f32.gmra.mxu3 %v3245_v1 }
 0xae4   :  { %v2983_v49 = vpop.xlane.xlu0 %2982 }
 0xae5   :  { %3993 = vrcp.f32 %v2983_v49  ;;  %v3064_v40 = vand.u32 2147483648, %v2983_v49  ;;  %v3062_v19 = vand.u32 2147483647, %v2983_v49  ;;  %vm3058_vm3 = vweird.f32 %v2983_v49 }
 0xae7   :  { %v3065_v14 = vor.u32 1.1754944e-38, %v3064_v40  ;;  %vm3063_vm6 = vcmp.eq.f32.partialorder %v3062_v19, 8.507059e+37 }
 0xaeb   :  { %v3994_v39 = vpop.eup %3993 }
 0xaec   :  { %v3054_v0 = vmul.f32 %v3994_v39, %v2983_v49  ;;  %v2986_v12 = vpop.xlane.xlu2 %2985  ;;  %vm3059_vm2 = vweird.f32 %v3994_v39 }
 0xaed   :  { %3995 = vrcp.f32 %v2986_v12  ;;  %vm3060_vm5 = vmor %vm3058_vm3, %vm3059_vm2  ;;  %v3079_v10 = vand.u32 2147483648, %v2986_v12  ;;  %v3077_v7 = vand.u32 2147483647, %v2986_v12  ;;  %vm3073_vm7 = vweird.f32 %v2986_v12 }
 0xaee   :  { %v3055_v8 = vsub.f32 1.0, %v3054_v0 }
 0xaef   :  { %v3080_v59 = vor.u32 1.1754944e-38, %v3079_v10  ;;  %vm3078_vm10 = vcmp.eq.f32.partialorder %v3077_v7, 8.507059e+37 }
 0xaf0   :  { %v3056_v57 = vmul.f32 %v3994_v39, %v3055_v8  ;;  %v3249_v8 = vmul.f32 %v5637_v28, %v5596_v2 }
 0xaf2   :  { %v3057_v50 = vadd.f32 %v3994_v39, %v3056_v57 }
 0xaf3   :  { %v3996_v58 = vpop.eup %3995 }
 0xaf4   :  { %v3061_v61 = vsel %vm3060_vm5, %v3994_v39, %v3057_v50  ;;  %v3069_v24 = vmul.f32 %v3996_v58, %v2986_v12  ;;  %vm3074_vm9 = vweird.f32 %v3996_v58 }
 0xaf5   :  { %v3066_v55 = vsel %vm3063_vm6, %v3065_v14, %v3061_v61  ;;  %vm3075_vm8 = vmor %vm3073_vm7, %vm3074_vm9 }
 0xaf6   :  { %v3067_v6 = vmul.f32 %v5383_v44, %v3066_v55  ;;  %v3070_v60 = vsub.f32 1.0, %v3069_v24 }
 0xaf8   :  { %v3071_v21 = vmul.f32 %v3996_v58, %v3070_v60  ;;  %3753 = vmatmul.msk.f32.vlgmr.msrb.gmra.mxu0 %vm362_vm4, %v3067_v6 }
 0xaf9   :  { %3620 = vmatpush.msrb.mxu0 %v3255_v11 }
 0xafa   :  { %v3072_v31 = vadd.f32 %v3996_v58, %v3071_v21 }
 0xafb   :  { %3621 = vmatpush.msrb.mxu0 %v3254_v32 }
 0xafc   :  { %v3076_v44 = vsel %vm3075_vm8, %v3996_v58, %v3072_v31 }
 0xafd   :  { %v3081_v18 = vsel %vm3078_vm10, %v3080_v59, %v3076_v44 }
 0xafe   :  { %v3082_v16 = vmul.f32 %v5387_v48, %v3081_v18  ;;  %v2989_v13 = vpop.xlane.xlu1 %2988  ;;  %v3247_v48 = vmul.f32 %v5637_v28, %v5592_v63  ;;  %v3256_v63 = vmul.f32 %v5637_v28, %v5589_v45 }
 0xaff   :  { %3997 = vrcp.f32 %v2989_v13  ;;  %v3094_v25 = vand.u32 2147483648, %v2989_v13  ;;  %v3092_v29 = vand.u32 2147483647, %v2989_v13  ;;  %vm3088_vm12 = vweird.f32 %v2989_v13 }
 0xb00   :  { %3754 = vmatmul.msk.f32.gmra.mxu0 %vm362_vm4, %v3082_v16 }
 0xb01   :  { %v3095_v52 = vor.u32 1.1754944e-38, %v3094_v25  ;;  %vm3093_vm14 = vcmp.eq.f32.partialorder %v3092_v29, 8.507059e+37 }
 0xb05   :  { %v3998_v37 = vpop.eup %3997 }
 0xb06   :  { %v3084_v51 = vmul.f32 %v3998_v37, %v2989_v13  ;;  %v2992_v22 = vpop.xlane.xlu0 %2991  ;;  %vm3089_vm11 = vweird.f32 %v3998_v37 }
 0xb07   :  { %3999 = vrcp.f32 %v2992_v22  ;;  %vm3090_vm13 = vmor %vm3088_vm12, %vm3089_vm11  ;;  %v3109_v23 = vand.u32 2147483648, %v2992_v22  ;;  %v3107_v1 = vand.u32 2147483647, %v2992_v22  ;;  %vm3103_vm0 = vweird.f32 %v2992_v22 }
 0xb08   :  { %3320 = vmatmul.f32.vlgmr.msra.gmra.mxu0 %v3246_v56  ;;  %v3085_v36 = vsub.f32 1.0, %v3084_v51 }
 0xb09   :  { %v3110_v39 = vor.u32 1.1754944e-38, %v3109_v23  ;;  %vm3108_vm2 = vcmp.eq.f32.partialorder %v3107_v1, 8.507059e+37 }
 0xb0a   :  { %v3086_v62 = vmul.f32 %v3998_v37, %v3085_v36 }
 0xb0c   :  { %v3087_v3 = vadd.f32 %v3998_v37, %v3086_v62 }
 0xb0d   :  { %v4000_v35 = vpop.eup %3999 }
 0xb0e   :  { %v3091_v43 = vsel %vm3090_vm13, %v3998_v37, %v3087_v3  ;;  %v3099_v33 = vmul.f32 %v4000_v35, %v2992_v22  ;;  %vm3104_vm15 = vweird.f32 %v4000_v35 }
 0xb0f   :  { %v3096_v9 = vsel %vm3093_vm14, %v3095_v52, %v3091_v43  ;;  %vm3105_vm1 = vmor %vm3103_vm0, %vm3104_vm15 }
 0xb10   :  { %3323 = vmatmul.f32.gmra.mxu0 %v3247_v48  ;;  %v3097_v47 = vmul.f32 %v5391_v27, %v3096_v9  ;;  %v3100_v20 = vsub.f32 1.0, %v3099_v33 }
 0xb12   :  { %v3101_v30 = vmul.f32 %v4000_v35, %v3100_v20  ;;  %3755 = vmatmul.msk.f32.vlgmr.msrb.gmra.mxu1 %vm362_vm4, %v3097_v47 }
 0xb13   :  { %3649 = vmatpush.msrb.mxu1 %v3257_v42 }
 0xb14   :  { %v3102_v49 = vadd.f32 %v4000_v35, %v3101_v30 }
 0xb15   :  { %3650 = vmatpush.msrb.mxu1 %v3256_v63 }
 0xb16   :  { %v3106_v27 = vsel %vm3105_vm1, %v4000_v35, %v3102_v49 }
 0xb17   :  { %v3111_v0 = vsel %vm3108_vm2, %v3110_v39, %v3106_v27 }
 0xb18   :  { %v3112_v12 = vmul.f32 %v5395_v26, %v3111_v0 }
 0xb1a   :  { %3756 = vmatmul.msk.f32.gmra.mxu1 %vm362_vm4, %v3112_v12 }
 0xb22   :  { %3343 = vmatmul.f32.vlgmr.msra.gmra.mxu1 %v3248_v34 }
 0xb2a   :  { %3346 = vmatmul.f32.gmra.mxu1 %v3249_v8 }
 0xb3c   :  { %v3136_v45 = vpop.f32.mrf.mxu2 }
 0xb3d   :  { %v5456_v40 = vadd.f32 %v3136_v45, %v5336_v38  ;;  %v3165_v57 = vpop.f32.mrf.mxu3 }
 0xb3e   :  { %v5459_v19 = vadd.f32 %v3165_v57, %v5339_v54 }
 0xb44   :  { %v3139_v50 = vpop.f32.mrf.mxu2 }
 0xb45   :  { %v5462_v26 = vadd.f32 %v3139_v50, %v5342_v46  ;;  %v3168_v58 = vpop.f32.mrf.mxu3 }
 0xb46   :  { %v5465_v5 = vadd.f32 %v3168_v58, %v5345_v41 }
 0xb4c   :  { %v3275_v14 = vpop.f32.mrf.mxu2 }
 0xb4d   :  { %v3298_v61 = vpop.f32.mrf.mxu3  ;;  %v3350_v2 = vsel %vm362_vm4, %v3275_v14, -inf }
 0xb4e   :  { %v3356_v28 = vsel %vm362_vm4, %v3298_v61, -inf  ;;  %3351 = vmax.xlane.f32.xlu1 %v3350_v2 }
 0xb4f   :  { %3357 = vmax.xlane.f32.xlu2 %v3356_v28 }
 0xb54   :  { %v3278_v38 = vpop.f32.mrf.mxu2 }
 0xb55   :  { %v3353_v54 = vsel %vm362_vm4, %v3278_v38, -inf  ;;  %v3301_v10 = vpop.f32.mrf.mxu3 }
 0xb56   :  { %v3359_v11 = vsel %vm362_vm4, %v3301_v10, -inf }
 0xb57   :  { %3354 = vmax.xlane.f32.xlu2 %v3353_v54 }
 0xb75   :  { %v3194_v24 = vpop.f32.mrf.mxu0 }
 0xb76   :  { %v5471_v46 = vadd.f32 %v3194_v24, %v5352_v4 }
 0xb7d   :  { %v3197_v55 = vpop.f32.mrf.mxu0 }
 0xb7e   :  { %v5474_v41 = vadd.f32 %v3197_v55, %v5355_v53 }
 0xb85   :  { %v3321_v6 = vpop.f32.mrf.mxu0 }
 0xb86   :  { %v3362_v60 = vsel %vm362_vm4, %v3321_v6, -inf }
 0xb87   :  { %3363 = vmax.xlane.f32.xlu0 %v3362_v60 }
 0xb8d   :  { %v3324_v59 = vpop.f32.mrf.mxu0 }
 0xb8e   :  { %v3365_v18 = vsel %vm362_vm4, %v3324_v59, -inf }
 0xb8f   :  { %3360 = vmax.xlane.f32.xlu0 %v3359_v11  ;;  %v3223_v21 = vpop.f32.mrf.mxu1 }
 0xb90   :  { %v5479_v7 = vadd.f32 %v3223_v21, %v5360_v15 }
 0xb97   :  { %v3226_v32 = vpop.f32.mrf.mxu1 }
 0xb98   :  { %v5482_v4 = vadd.f32 %v3226_v32, %v5363_v17 }
 0xb9f   :  { %v3344_v31 = vpop.f32.mrf.mxu1 }
 0xba0   :  { %v3368_v53 = vsel %vm362_vm4, %v3344_v31, -inf }
 0xba1   :  { %3369 = vmax.xlane.f32.xlu1 %v3368_v53 }
 0xba7   :  { %v3347_v44 = vpop.f32.mrf.mxu1 }
 0xba8   :  { %v3371_v16 = vsel %vm362_vm4, %v3347_v44, -inf }
 0xba9   :  { %3366 = vmax.xlane.f32.xlu1 %v3365_v18  ;;  %3372 = vmax.xlane.f32.xlu2 %v3371_v16 }
 0xbc1   :  { %v3352_v13 = vpop.xlane.xlu1 %3351 }
 0xbc2   :  { %v3358_v56 = vpop.xlane.xlu2 %3357  ;;  %v3374_v15 = vsub.f32 %v3275_v14, %v3352_v13 }
 0xbc3   :  { %v3376_v37 = vsub.f32 %v3298_v61, %v3358_v56 }
 0xbc4   :  { %v3382_v51 = vmul.f32 1.442695, %v3374_v15 }
 0xbc5   :  { %v3386_v22 = vmul.f32 1.442695, %v3376_v37 }
 0xbc6   :  { %4001 = vpow2.f32 %v3382_v51 }
 0xbc7   :  { %4003 = vpow2.f32 %v3386_v22 }
 0xbca   :  { %v3355_v17 = vpop.xlane.xlu2 %3354 }
 0xbcb   :  { %v3375_v36 = vsub.f32 %v3278_v38, %v3355_v17 }
 0xbcc   :  { %v5487_v25 = vpop.eup %4001 }
 0xbcd   :  { %v5489_v62 = vpop.eup %4003  ;;  %v3384_v29 = vmul.f32 1.442695, %v3375_v36  ;;  %v3398_v3 = vsel %vm362_vm4, %v5487_v25, 0.0 }
 0xbce   :  { %v3404_v48 = vsel %vm362_vm4, %v5489_v62, 0.0  ;;  %3399 = vadd.xlane.f32.xlu0 %v3398_v3 }
 0xbcf   :  { %4005 = vpow2.f32 %v3384_v29  ;;  %3405 = vadd.xlane.f32.xlu1 %v3404_v48 }
 0xbd5   :  { %v5495_v35 = vpop.eup %4005 }
 0xbd6   :  { %v3401_v52 = vsel %vm362_vm4, %v5495_v35, 0.0 }
 0xbd7   :  { %3402 = vadd.xlane.f32.xlu1 %v3401_v52 }
 0xbfa   :  { %v3364_v43 = vpop.xlane.xlu0 %3363 }
 0xbfb   :  { %v3378_v33 = vsub.f32 %v3321_v6, %v3364_v43 }
 0xbfd   :  { %v3390_v9 = vmul.f32 1.442695, %v3378_v33 }
 0xbff   :  { %4007 = vpow2.f32 %v3390_v9 }
 0xc02   :  { %v3361_v47 = vpop.xlane.xlu0 %3360 }
 0xc03   :  { %v3377_v20 = vsub.f32 %v3301_v10, %v3361_v47 }
 0xc05   :  { %v5499_v23 = vpop.eup %4007  ;;  %v3388_v42 = vmul.f32 1.442695, %v3377_v20 }
 0xc06   :  { %v3410_v30 = vsel %vm362_vm4, %v5499_v23, 0.0 }
 0xc07   :  { %4009 = vpow2.f32 %v3388_v42  ;;  %3411 = vadd.xlane.f32.xlu2 %v3410_v30 }
 0xc0d   :  { %v5503_v1 = vpop.eup %4009 }
 0xc0e   :  { %v3407_v63 = vsel %vm362_vm4, %v5503_v1, 0.0 }
 0xc0f   :  { %3408 = vadd.xlane.f32.xlu2 %v3407_v63 }
 0xc14   :  { %v3370_v49 = vpop.xlane.xlu1 %3369 }
 0xc15   :  { %v3380_v39 = vsub.f32 %v3344_v31, %v3370_v49 }
 0xc17   :  { %v3394_v27 = vmul.f32 1.442695, %v3380_v39 }
 0xc19   :  { %4011 = vpow2.f32 %v3394_v27 }
 0xc1c   :  { %v3373_v0 = vpop.xlane.xlu2 %3372  ;;  %v3367_v12 = vpop.xlane.xlu1 %3366 }
 0xc1d   :  { %v3381_v34 = vsub.f32 %v3347_v44, %v3373_v0  ;;  %v3379_v8 = vsub.f32 %v3324_v59, %v3367_v12 }
 0xc1f   :  { %v5507_v45 = vpop.eup %4011  ;;  %v3396_v57 = vmul.f32 1.442695, %v3381_v34  ;;  %v3392_v50 = vmul.f32 1.442695, %v3379_v8 }
 0xc20   :  { %v3416_v58 = vsel %vm362_vm4, %v5507_v45, 0.0 }
 0xc21   :  { %4013 = vpow2.f32 %v3396_v57  ;;  %3417 = vadd.xlane.f32.xlu0 %v3416_v58 }
 0xc22   :  { %4015 = vpow2.f32 %v3392_v50 }
 0xc27   :  { %v5511_v14 = vpop.eup %4013 }
 0xc28   :  { %v5513_v61 = vpop.eup %4015  ;;  %v3419_v2 = vsel %vm362_vm4, %v5511_v14, 0.0 }
 0xc29   :  { %3420 = vadd.xlane.f32.xlu1 %v3419_v2  ;;  %v3413_v28 = vsel %vm362_vm4, %v5513_v61, 0.0 }
 0xc2a   :  { %3414 = vadd.xlane.f32.xlu0 %v3413_v28 }
 0xc41   :  { %v3400_v38 = vpop.xlane.xlu0 %3399 }
 0xc42   :  { %4017 = vrcp.f32 %v3400_v38  ;;  %v3406_v54 = vpop.xlane.xlu1 %3405  ;;  %v3433_v21 = vand.u32 2147483648, %v3400_v38  ;;  %v3431_v53 = vand.u32 2147483647, %v3400_v38  ;;  %vm3427_vm6 = vweird.f32 %v3400_v38 }
 0xc43   :  { %4019 = vrcp.f32 %v3406_v54  ;;  %v3463_v59 = vand.u32 2147483648, %v3406_v54  ;;  %v3461_v18 = vand.u32 2147483647, %v3406_v54  ;;  %vm3457_vm7 = vweird.f32 %v3406_v54 }
 0xc44   :  { %v3434_v13 = vor.u32 1.1754944e-38, %v3433_v21  ;;  %vm3432_vm8 = vcmp.eq.f32.partialorder %v3431_v53, 8.507059e+37 }
 0xc45   :  { %v3464_v51 = vor.u32 1.1754944e-38, %v3463_v59  ;;  %vm3462_vm11 = vcmp.eq.f32.partialorder %v3461_v18, 8.507059e+37 }
 0xc48   :  { %v4018_v24 = vpop.eup %4017 }
 0xc49   :  { %v4020_v55 = vpop.eup %4019  ;;  %v3423_v6 = vmul.f32 %v4018_v24, %v3400_v38  ;;  %vm3428_vm3 = vweird.f32 %v4018_v24 }
 0xc4a   :  { %v3453_v60 = vmul.f32 %v4020_v55, %v3406_v54  ;;  %v3403_v10 = vpop.xlane.xlu1 %3402  ;;  %vm3458_vm5 = vweird.f32 %v4020_v55  ;;  %vm3429_vm9 = vmor %vm3427_vm6, %vm3428_vm3 }
 0xc4b   :  { %v3424_v11 = vsub.f32 1.0, %v3423_v6  ;;  %4021 = vrcp.f32 %v3403_v10  ;;  %vm3459_vm10 = vmor %vm3457_vm7, %vm3458_vm5  ;;  %v3448_v43 = vand.u32 2147483648, %v3403_v10  ;;  %v3446_v9 = vand.u32 2147483647, %v3403_v10 }
 0xc4c   :  { %v3454_v32 = vsub.f32 1.0, %v3453_v60  ;;  %vm3442_vm13 = vweird.f32 %v3403_v10 }
 0xc4d   :  { %v3425_v31 = vmul.f32 %v4018_v24, %v3424_v11  ;;  %v3449_v20 = vor.u32 1.1754944e-38, %v3448_v43  ;;  %vm3447_vm15 = vcmp.eq.f32.partialorder %v3446_v9, 8.507059e+37 }
 0xc4e   :  { %v3455_v44 = vmul.f32 %v4020_v55, %v3454_v32 }
 0xc4f   :  { %v3426_v16 = vadd.f32 %v4018_v24, %v3425_v31 }
 0xc50   :  { %v3456_v56 = vadd.f32 %v4020_v55, %v3455_v44 }
 0xc51   :  { %v4022_v15 = vpop.eup %4021  ;;  %v3430_v37 = vsel %vm3429_vm9, %v4018_v24, %v3426_v16 }
 0xc52   :  { %v3435_v22 = vsel %vm3432_vm8, %v3434_v13, %v3430_v37  ;;  %v3460_v17 = vsel %vm3459_vm10, %v4020_v55, %v3456_v56  ;;  %v3438_v36 = vmul.f32 %v4022_v15, %v3403_v10  ;;  %vm3443_vm12 = vweird.f32 %v4022_v15 }
 0xc53   :  { %v3436_v29 = vmul.f32 %v5487_v25, %v3435_v22  ;;  %v3465_v3 = vsel %vm3462_vm11, %v3464_v51, %v3460_v17  ;;  %vm3444_vm14 = vmor %vm3442_vm13, %vm3443_vm12 }
 0xc54   :  { %v3466_v48 = vmul.f32 %v5489_v62, %v3465_v3  ;;  %v3439_v52 = vsub.f32 1.0, %v3438_v36 }
 0xc55   :  { %3758 = vmatmul.msk.f32.vlgmr.msrb.gmra.mxu2 %vm362_vm4, %v3436_v29 }
 0xc56   :  { %v3440_v33 = vmul.f32 %v4022_v15, %v3439_v52  ;;  %3760 = vmatmul.msk.f32.vlgmr.msrb.gmra.mxu3 %vm362_vm4, %v3466_v48 }
 0xc58   :  { %v3441_v47 = vadd.f32 %v4022_v15, %v3440_v33 }
 0xc5a   :  { %v3445_v42 = vsel %vm3444_vm14, %v4022_v15, %v3441_v47 }
 0xc5b   :  { %v3450_v30 = vsel %vm3447_vm15, %v3449_v20, %v3445_v42 }
 0xc5c   :  { %v3451_v25 = vmul.f32 %v5495_v35, %v3450_v30 }
 0xc5e   :  { %3759 = vmatmul.msk.f32.gmra.mxu2 %vm362_vm4, %v3451_v25 }
 0xc7a   :  { %v3412_v62 = vpop.xlane.xlu2 %3411 }
 0xc7b   :  { %4023 = vrcp.f32 %v3412_v62  ;;  %v3493_v0 = vand.u32 2147483648, %v3412_v62  ;;  %v3491_v34 = vand.u32 2147483647, %v3412_v62  ;;  %vm3487_vm1 = vweird.f32 %v3412_v62 }
 0xc7d   :  { %v3494_v50 = vor.u32 1.1754944e-38, %v3493_v0  ;;  %vm3492_vm3 = vcmp.eq.f32.partialorder %v3491_v34, 8.507059e+37 }
 0xc81   :  { %v4024_v63 = vpop.eup %4023 }
 0xc82   :  { %v3483_v49 = vmul.f32 %v4024_v63, %v3412_v62  ;;  %v3409_v39 = vpop.xlane.xlu2 %3408  ;;  %vm3488_vm0 = vweird.f32 %v4024_v63 }
 0xc83   :  { %4025 = vrcp.f32 %v3409_v39  ;;  %vm3489_vm2 = vmor %vm3487_vm1, %vm3488_vm0  ;;  %v3478_v54 = vand.u32 2147483648, %v3409_v39  ;;  %v3476_v55 = vand.u32 2147483647, %v3409_v39  ;;  %vm3472_vm6 = vweird.f32 %v3409_v39 }
 0xc84   :  { %v3484_v27 = vsub.f32 1.0, %v3483_v49 }
 0xc85   :  { %v3479_v60 = vor.u32 1.1754944e-38, %v3478_v54  ;;  %vm3477_vm7 = vcmp.eq.f32.partialorder %v3476_v55, 8.507059e+37 }
 0xc86   :  { %v3485_v12 = vmul.f32 %v4024_v63, %v3484_v27 }
 0xc88   :  { %v3486_v8 = vadd.f32 %v4024_v63, %v3485_v12 }
 0xc89   :  { %v4026_v57 = vpop.eup %4025 }
 0xc8a   :  { %v3490_v58 = vsel %vm3489_vm2, %v4024_v63, %v3486_v8  ;;  %v3468_v35 = vmul.f32 %v4026_v57, %v3409_v39  ;;  %vm3473_vm5 = vweird.f32 %v4026_v57 }
 0xc8b   :  { %v3495_v2 = vsel %vm3492_vm3, %v3494_v50, %v3490_v58  ;;  %vm3474_vm9 = vmor %vm3472_vm6, %vm3473_vm5 }
 0xc8c   :  { %v3496_v28 = vmul.f32 %v5499_v23, %v3495_v2  ;;  %v3469_v38 = vsub.f32 1.0, %v3468_v35 }
 0xc8e   :  { %v3470_v24 = vmul.f32 %v4026_v57, %v3469_v38  ;;  %3762 = vmatmul.msk.f32.vlgmr.msrb.gmra.mxu0 %vm362_vm4, %v3496_v28 }
 0xc90   :  { %v3471_v6 = vadd.f32 %v4026_v57, %v3470_v24 }
 0xc92   :  { %v3475_v10 = vsel %vm3474_vm9, %v4026_v57, %v3471_v6 }
 0xc93   :  { %v3480_v11 = vsel %vm3477_vm7, %v3479_v60, %v3475_v10 }
 0xc94   :  { %v3481_v21 = vmul.f32 %v5503_v1, %v3480_v11  ;;  %v3418_v32 = vpop.xlane.xlu0 %3417 }
 0xc95   :  { %4027 = vrcp.f32 %v3418_v32  ;;  %v3523_v18 = vand.u32 2147483648, %v3418_v32  ;;  %v3521_v13 = vand.u32 2147483647, %v3418_v32  ;;  %vm3517_vm10 = vweird.f32 %v3418_v32 }
 0xc96   :  { %3761 = vmatmul.msk.f32.gmra.mxu3 %vm362_vm4, %v3481_v21 }
 0xc97   :  { %v3524_v1 = vor.u32 1.1754944e-38, %v3523_v18  ;;  %vm3522_vm12 = vcmp.eq.f32.partialorder %v3521_v13, 8.507059e+37 }
 0xc9b   :  { %v4028_v23 = vpop.eup %4027 }
 0xc9c   :  { %v3513_v31 = vmul.f32 %v4028_v23, %v3418_v32  ;;  %v3421_v53 = vpop.xlane.xlu1 %3420  ;;  %vm3518_vm8 = vweird.f32 %v4028_v23 }
 0xc9d   :  { %v3415_v59 = vpop.xlane.xlu0 %3414  ;;  %4029 = vrcp.f32 %v3421_v53  ;;  %vm3519_vm11 = vmor %vm3517_vm10, %vm3518_vm8  ;;  %v3538_v52 = vand.u32 2147483648, %v3421_v53  ;;  %v3536_v9 = vand.u32 2147483647, %v3421_v53  ;;  %vm3532_vm15 = vweird.f32 %v3421_v53 }
 0xc9e   :  { %v3514_v44 = vsub.f32 1.0, %v3513_v31  ;;  %4031 = vrcp.f32 %v3415_v59  ;;  %v3508_v43 = vand.u32 2147483648, %v3415_v59  ;;  %v3506_v20 = vand.u32 2147483647, %v3415_v59 }
 0xc9f   :  { %vm3502_vm0 = vweird.f32 %v3415_v59  ;;  %v3539_v25 = vor.u32 1.1754944e-38, %v3538_v52  ;;  %vm3537_vm3 = vcmp.eq.f32.partialorder %v3536_v9, 8.507059e+37 }
 0xca0   :  { %v3515_v16 = vmul.f32 %v4028_v23, %v3514_v44  ;;  %vm3507_vm5 = vcmp.eq.f32.partialorder %v3506_v20, 8.507059e+37 }
 0xca2   :  { %v3516_v56 = vadd.f32 %v4028_v23, %v3515_v16 }
 0xca3   :  { %v4030_v15 = vpop.eup %4029 }
 0xca4   :  { %v4032_v37 = vpop.eup %4031  ;;  %v3520_v51 = vsel %vm3519_vm11, %v4028_v23, %v3516_v56  ;;  %v3528_v22 = vmul.f32 %v4030_v15, %v3421_v53  ;;  %vm3533_vm13 = vweird.f32 %v4030_v15 }
 0xca5   :  { %v3525_v17 = vsel %vm3522_vm12, %v3524_v1, %v3520_v51  ;;  %v3498_v36 = vmul.f32 %v4032_v37, %v3415_v59  ;;  %vm3503_vm14 = vweird.f32 %v4032_v37  ;;  %vm3534_vm1 = vmor %vm3532_vm15, %vm3533_vm13 }
 0xca6   :  { %v3526_v29 = vmul.f32 %v5507_v45, %v3525_v17  ;;  %v3529_v3 = vsub.f32 1.0, %v3528_v22  ;;  %vm3504_vm2 = vmor %vm3502_vm0, %vm3503_vm14  ;;  %v3509_v45 = vor.u32 1.1754944e-38, %v3508_v43 }
 0xca7   :  { %v3499_v48 = vsub.f32 1.0, %v3498_v36 }
 0xca8   :  { %v3530_v33 = vmul.f32 %v4030_v15, %v3529_v3  ;;  %3764 = vmatmul.msk.f32.vlgmr.msrb.gmra.mxu1 %vm362_vm4, %v3526_v29 }
 0xca9   :  { %v3500_v47 = vmul.f32 %v4032_v37, %v3499_v48 }
 0xcaa   :  { %v3531_v42 = vadd.f32 %v4030_v15, %v3530_v33 }
 0xcab   :  { %v3501_v30 = vadd.f32 %v4032_v37, %v3500_v47 }
 0xcac   :  { %v3535_v62 = vsel %vm3534_vm1, %v4030_v15, %v3531_v42 }
 0xcad   :  { %v3505_v63 = vsel %vm3504_vm2, %v4032_v37, %v3501_v30  ;;  %v3540_v49 = vsel %vm3537_vm3, %v3539_v25, %v3535_v62 }
 0xcae   :  { %v3510_v39 = vsel %vm3507_vm5, %v3509_v45, %v3505_v63  ;;  %v3541_v27 = vmul.f32 %v5511_v14, %v3540_v49 }
 0xcaf   :  { %v3511_v0 = vmul.f32 %v5513_v61, %v3510_v39 }
 0xcb0   :  { %3765 = vmatmul.msk.f32.gmra.mxu1 %vm362_vm4, %v3541_v27 }
 0xcb1   :  { %3763 = vmatmul.msk.f32.gmra.mxu0 %vm362_vm4, %v3511_v0 }
 0xcd8   :  { %v3565_v12 = vpop.f32.mrf.mxu2 }
 0xcd9   :  { %v3658_v34 = vadd.f32 %v3565_v12, %v5456_v40  ;;  %v3594_v8 = vpop.f32.mrf.mxu3 }
 0xcda   :  { %v3660_v57 = vadd.f32 %v3594_v8, %v5459_v19 }
 0xcdb   :  { %3666 = vst [vmem:[#allocation8] sm:$0xff] %v3658_v34 }
 0xcdc   :  { %3668 = vst [vmem:[#allocation8 + $0x10] sm:$0xff] %v3660_v57 }
 0xce1   :  { %v3568_v50 = vpop.f32.mrf.mxu2 }
 0xce2   :  { %v3659_v58 = vadd.f32 %v3568_v50, %v5462_v26 }
 0xce4   :  { %3667 = vst [vmem:[#allocation8 + $0x8] sm:$0xff] %v3659_v58 }
 0xd0b   :  { %v3623_v35 = vpop.f32.mrf.mxu0 }
 0xd0c   :  { %v3662_v14 = vadd.f32 %v3623_v35, %v5471_v46 }
 0xd0e   :  { %3670 = vst [vmem:[#allocation8 + $0x20] sm:$0xff] %v3662_v14 }
 0xd19   :  { %v3597_v61 = vpop.f32.mrf.mxu3 }
 0xd1a   :  { %v3661_v2 = vadd.f32 %v3597_v61, %v5465_v5 }
 0xd1c   :  { %3669 = vst [vmem:[#allocation8 + $0x18] sm:$0xff] %v3661_v2 }
 0xd25   :  { %v3652_v28 = vpop.f32.mrf.mxu1 }
 0xd26   :  { %v3664_v40 = vadd.f32 %v3652_v28, %v5479_v7 }
 0xd28   :  { %3672 = vst [vmem:[#allocation8 + $0x30] sm:$0xff] %v3664_v40 }
 0xd2d   :  { %v3655_v19 = vpop.f32.mrf.mxu1 }
 0xd2e   :  { %v3626_v26 = vpop.f32.mrf.mxu0  ;;  %v3665_v38 = vadd.f32 %v3655_v19, %v5482_v4 }
 0xd2f   :  { %v3663_v46 = vadd.f32 %v3626_v26, %v5474_v41 }
 0xd30   :  { %3673 = vst [vmem:[#allocation8 + $0x38] sm:$0xff] %v3665_v38 }
 0xd31   :  { %3671 = vst [vmem:[#allocation8 + $0x28] sm:$0xff] %v3663_v46 }
 0xd32   :  { %3686 = dma.vmem_to_hbm [thread:$0]  %s3679_s29, 1024, %s3681_s5, [#allocation4], %s4139_s24, %s4139_s24, %s4140_s25  }
 0xd33   :  { %4133 = dma.done.wait [#allocation4], 1024  }
 0xd34   :  { %4134 = vsyncadd [#allocation4], 4294966272 }
 0xd35   :  { %3691 = vsyncpa [#allocation3], 1 }
 0xd36   :  { %3692 = vsyncpa [#allocation6], 1 }
 0xd37   :  { %3693 = vsyncpa [#allocation4], 1 }

</bundles_post_ra>
